<compile_context>
chip_gen: v7x
topology: tpu7x:2x2x1
jax: 0.10.0
libtpu: 0.0.40
codegen_flags: <defaults>
</compile_context>

<pallas_src>
import functools
import math

import jax
import jax.numpy as jnp
from jax import lax
from jax.experimental import pallas as pl
from jax.experimental.pallas import tpu as pltpu

SEG = 128   # lane-aligned column width of each packed-projection segment


# ----------------------------------------------------------------------------- GELU (exact/erf)
def _erf(z):
    # TODO(synk): lax.erf is not guaranteed to lower in Mosaic; Abramowitz&Stegun 7.1.26
    # polynomial (max abs err ~1.5e-7, i.e. float32-accurate) matches F.gelu('none').
    s = jnp.where(z >= 0.0, 1.0, -1.0)
    a = jnp.abs(z)
    # divide moved onto the EUP reciprocal slot (off the VALU chain)
    t = pl.reciprocal(1.0 + 0.3275911 * a, approx=True)
    poly = t * (0.254829592
                + t * (-0.284496736
                       + t * (1.421413741
                              + t * (-1.453152027 + t * 1.061405429))))
    return s * (1.0 - poly * jnp.exp(-a * a))


def _gelu_exact(x):
    return 0.5 * x * (1.0 + _erf(x * 0.7071067811865476))


# ----------------------------------------------------------------------------- fused kernel
def _res_gtn_kernel(x_ref, adj_ref, e3d_ref, wbig_ref, wedge_ref, gn_ref, out_ref, *,
                    heads, out_dim, num_groups, feat_dims, pair_gn):
    f32 = jnp.float32
    H, C = heads, out_dim
    N = adj_ref.shape[0]
    D = e3d_ref.shape[0]
    ext = 2 * C if pair_gn else C          # V/skip segments carry pair-permuted copies for GN
    scale = 1.0 / math.sqrt(C)
    inv_heads = 1.0 / H

    adj = adj_ref[...]
    mask_add = jnp.where(adj > 0.0, 0.0, -1e30).astype(f32)     # additive -inf mask (reused)
    gamma = gn_ref[0:1, 0:C]
    beta = gn_ref[1:2, 0:C]
    if not pair_gn:
        gmat = gn_ref[2:2 + C, 0:num_groups]                    # one-hot [C, num_groups]

    hfeat = x_ref[...]                                          # [N, F0]

    for l, F in enumerate(feat_dims):                           # layers fully unrolled in VMEM
        # ---- ONE fused projection per layer (bias rows folded via the augmented x~ = [x, 1]);
        #      128-aligned segments: [M_h | P_h | Vext_h | Skip_ext]
        proj = (jnp.dot(hfeat, wbig_ref[l, 0:F, :], preferred_element_type=f32)
                + wbig_ref[l, F:F + 1, :])                      # [N, (3H+1)*SEG]

        qxm = [proj[:, h * SEG:h * SEG + F + 1] for h in range(H)]           # x~ @ M_h
        qwe = [proj[:, (H + h) * SEG:(H + h) * SEG + D] for h in range(H)]   # q_h @ We_h^T

        # q.k for BOTH heads in one dot (single internal activation transpose per layer)
        qk_cat = lax.dot_general(
            jnp.concatenate([q[:, 0:F] for q in qxm], axis=0), hfeat,
            (((1,), (1,)), ((), ())), preferred_element_type=f32)            # [H*N, N]

        # q.(e @ We) factored through e_dim: D-loop of column-broadcast FMAs on [N,N] slabs
        qe = [jnp.zeros((N, N), f32) for _ in range(H)]
        for d in range(D):
            e_d = e3d_ref[d]
            for h in range(H):
                qe[h] = qe[h] + qwe[h][:, d:d + 1] * e_d

        # masked softmax over incoming edges of each target node (self loops present)
        alphas = []
        for h in range(H):
            logits = (qk_cat[h * N:(h + 1) * N, :] + qxm[h][:, F:F + 1] + qe[h]) * scale
            masked = logits + mask_add
            m = jnp.max(masked, axis=1, keepdims=True)
            p = jnp.exp(masked - m) * adj
            denom = jnp.sum(p, axis=1, keepdims=True)
            alphas.append(p * pl.reciprocal(jnp.maximum(denom, 1e-30), approx=True))

        # ---- messages: sum_h [ alpha_h @ v_h + (sum_j alpha_ij e_ij) @ We_h ] -------------
        msg = jnp.zeros((N, ext), f32)
        we = [wedge_ref[l, h] for h in range(H)]                # [D, ext] each
        for h in range(H):
            v_h = proj[:, (2 * H + h) * SEG:(2 * H + h) * SEG + ext]
            msg = msg + jnp.dot(alphas[h], v_h, preferred_element_type=f32)
        for d in range(D):                                      # edge part: rank-1 FMAs (VPU)
            e_d = e3d_ref[d]
            for h in range(H):
                coef = jnp.sum(alphas[h] * e_d, axis=1, keepdims=True)       # [N, 1]
                msg = msg + coef * we[h][d:d + 1, :]

        # concat=False -> mean over heads, then root/skip connection (bias folded)
        y = msg * inv_heads + proj[:, 3 * H * SEG:3 * H * SEG + ext]         # [N, ext]

        # ---- shared GroupNorm(num_groups, C) + exact GELU ----------------------------------
        if pair_gn:
            # group size 2 closed form: (y-mean)/sqrt(var+eps) = z * rsqrt(z^2+eps) with
            # z = (y - y_partner)/2; partner channels y[:, C:2C] were produced for free by the
            # column-permuted weight copies -> zero GroupNorm matmuls.
            z = (y[:, 0:C] - y[:, C:2 * C]) * 0.5
            yn = z * lax.rsqrt(z * z + 1e-5)
        else:
            gs = C // num_groups
            gsum = jnp.dot(y, gmat, preferred_element_type=f32)
            gsq = jnp.dot(y * y, gmat, preferred_element_type=f32)
            gmean = gsum * (1.0 / gs)
            gvar = jnp.maximum(gsq * (1.0 / gs) - gmean * gmean, 0.0)
            mean_c = lax.dot_general(gmean, gmat, (((1,), (1,)), ((), ())),
                                     preferred_element_type=f32)
            var_c = lax.dot_general(gvar, gmat, (((1,), (1,)), ((), ())),
                                    preferred_element_type=f32)
            yn = (y - mean_c) * lax.rsqrt(var_c + 1e-5)

        hfeat = _gelu_exact(yn * gamma + beta)

    out_ref[...] = hfeat.astype(out_ref.dtype)


# ----------------------------------------------------------------------------- wrapper packing
def _pack_weights(layer_params, feat_dims, heads, out_dim, e_dim, pair_gn):
    """wbig [L, Fmax+1, (3H+1)*SEG] fused projection slab; wedge [L, H, D, ext] edge weights."""
    H, C, D = heads, out_dim, e_dim
    fpad = max(feat_dims) + 1
    ext = 2 * C if pair_gn else C
    assert fpad <= SEG and ext <= SEG and D <= SEG
    perm = jnp.arange(C) ^ 1                          # channel-pair partner (group size 2)

    def aug(w, b, f):                                 # [f,C] + [1,C] -> [fpad, C], bias row at f
        parts = [w, b]
        if fpad > f + 1:
            parts.append(jnp.zeros((fpad - f - 1, C), jnp.float32))
        return jnp.concatenate(parts, axis=0)

    def ext_cols(w):                                  # append pair-permuted columns for GS==2 GN
        return jnp.concatenate([w, w[:, perm]], axis=1) if pair_gn else w

    def seg(w):                                       # place into a 128-wide lane-aligned segment
        pad = SEG - w.shape[1]
        if pad == 0:
            return w
        return jnp.concatenate([w, jnp.zeros((w.shape[0], pad), jnp.float32)], axis=1)

    wbig, wedge = [], []
    for (wq, bq, wk, bk, wv, bv, we, ws, bs), f in zip(layer_params, feat_dims):
        segs_m, segs_p, segs_v, we_l = [], [], [], []
        for h in range(H):
            q_aug = aug(wq[h], bq[h], f)
            k_aug = aug(wk[h], bk[h], f)
            segs_m.append(seg(q_aug @ k_aug.T))       # M_h = Wq_aug Wk_aug^T
            segs_p.append(seg(q_aug @ we[h].T))       # P_h = Wq_aug We_h^T
            segs_v.append(seg(ext_cols(aug(wv[h], bv[h], f))))
            we_l.append(ext_cols(we[h]))
        skip_seg = seg(ext_cols(aug(ws, bs, f)))
        wbig.append(jnp.concatenate(segs_m + segs_p + segs_v + [skip_seg], axis=1))
        wedge.append(jnp.stack(we_l, axis=0))
    return jnp.stack(wbig, axis=0), jnp.stack(wedge, axis=0)


def _pack_gn(gamma, beta, out_dim, num_groups, pair_gn):
    rows = [jnp.reshape(gamma, (1, out_dim)).astype(jnp.float32),
            jnp.reshape(beta, (1, out_dim)).astype(jnp.float32)]
    if not pair_gn:
        g = (jnp.arange(out_dim)[:, None] // (out_dim // num_groups)
             == jnp.arange(num_groups)[None, :]).astype(jnp.float32)
        if out_dim > num_groups:
            g = jnp.concatenate(
                [g, jnp.zeros((out_dim, out_dim - num_groups), jnp.float32)], axis=1)
        rows.append(g)
    return jnp.concatenate(rows, axis=0)


def _cost_estimate(N, feat_dims, e_dim, heads, out_dim, param_elems):
    C, D, H = out_dim, e_dim, heads
    ncols = (3 * H + 1) * SEG
    flops = 0
    for f in feat_dims:
        flops += 2 * N * (f + 1) * ncols          # fused projection
        flops += 2 * H * N * f * N                # q.k
        flops += 2 * H * N * N * 2 * C            # per-head message matmuls
        flops += 6 * H * D * N * N                # qe / edge-message D-loop FMAs + reduces
        flops += 16 * N * 2 * C                   # softmax, mean/skip, GroupNorm, GELU arith
    transcendentals = len(feat_dims) * (H * N * N + 2 * N * C)
    bytes_accessed = 4 * (N * feat_dims[0] + N * N + D * N * N + param_elems + N * C)
    return pl.CostEstimate(flops=int(flops), transcendentals=int(transcendentals),
                           bytes_accessed=int(bytes_accessed))


# ----------------------------------------------------------------------------- forward wrapper
def res_gtn_forward(x, adj, edge_attr_dense, layer_params, gamma, beta,
                    *, heads, out_dim, num_groups):
    N, f_in = x.shape
    e_dim = edge_attr_dense.shape[-1]
    num_layers = len(layer_params)
    feat_dims = tuple([f_in] + [out_dim] * (num_layers - 1))
    assert out_dim % num_groups == 0
    pair_gn = (out_dim // num_groups) == 2

    e3d = jnp.transpose(edge_attr_dense, (2, 0, 1))            # edge-dim-major [D, N, N]
    wbig, wedge = _pack_weights(layer_params, feat_dims, heads, out_dim, e_dim, pair_gn)
    gn = _pack_gn(gamma, beta, out_dim, num_groups, pair_gn)

    kernel = functools.partial(_res_gtn_kernel, heads=heads, out_dim=out_dim,
                               num_groups=num_groups, feat_dims=feat_dims, pair_gn=pair_gn)
    vmem = lambda: pl.BlockSpec(memory_space=pltpu.MemorySpace.VMEM)
    cost = _cost_estimate(N, feat_dims, e_dim, heads, out_dim,
                          sum(int(a.size) for a in (wbig, wedge, gn)))

    # TODO(synk): for batched graphs, add a leading grid axis over graphs with
    # dimension_semantics=("parallel",) so v7x's second TensorCore gets used.
    return pl.pallas_call(
        kernel,
        out_shape=jax.ShapeDtypeStruct((N, out_dim), jnp.float32),
        in_specs=[vmem() for _ in range(6)],
        out_specs=vmem(),
        cost_estimate=cost,
    )(x, adj, e3d, wbig, wedge, gn)


# ----------------------------------------------------------------------------- init
def init_conv_params(key, in_dim, e_dim, heads, out_dim):
    """PyTorch Linear default init; q/k/v/edge weights stored head-major [H, fan_in, C]."""
    keys = jax.random.split(key, 5)

    def lin(k, fi, fo, *, lead=None, bias=True):
        bnd = 1.0 / math.sqrt(fi)
        kw, kb = jax.random.split(k)
        wshape = (fi, fo) if lead is None else (lead, fi, fo)
        w = jax.random.uniform(kw, wshape, jnp.float32, -bnd, bnd)
        if not bias:
            return (w,)
        bshape = (1, fo) if lead is None else (lead, 1, fo)
        b = jax.random.uniform(kb, bshape, jnp.float32, -bnd, bnd)
        return w, b

    wq, bq = lin(keys[0], in_dim, out_dim, lead=heads)             # lin_query  [H, F, C]
    wk, bk = lin(keys[1], in_dim, out_dim, lead=heads)             # lin_key
    wv, bv = lin(keys[2], in_dim, out_dim, lead=heads)             # lin_value
    (we,) = lin(keys[3], e_dim, out_dim, lead=heads, bias=False)   # lin_edge (no bias)
    ws, bs = lin(keys[4], in_dim, out_dim)                         # lin_skip (root, bias)
    return (wq, bq, wk, bk, wv, bv, we, ws, bs)


# ----------------------------------------------------------------------------- main
if __name__ == "__main__":
    # Res_GTN(num_feature=16, e_dim=8, out_dim=30, heads=2, dropout=0.0) in eval mode.
    N, F_IN, E_DIM, OUT_DIM, HEADS, NGROUPS = 16, 16, 8, 30, 2, 15

    root = jax.random.PRNGKey(0)
    kx, ka, ke, k1, k2, k3 = jax.random.split(root, 6)

    x = jax.random.normal(kx, (N, F_IN), jnp.float32)
    adj = (jax.random.uniform(ka, (N, N)) < 0.35).astype(jnp.float32)
    adj = jnp.maximum(adj, jnp.eye(N, dtype=jnp.float32))              # self loops
    edge_attr_dense = jax.random.normal(ke, (N, N, E_DIM), jnp.float32) * adj[:, :, None]

    p1 = init_conv_params(k1, F_IN, E_DIM, HEADS, OUT_DIM)
    p2 = init_conv_params(k2, OUT_DIM, E_DIM, HEADS, OUT_DIM)
    p3 = init_conv_params(k3, OUT_DIM, E_DIM, HEADS, OUT_DIM)

    # shared GroupNorm(15, OUT_DIM): PyTorch default affine init (weight=1, bias=0)
    gamma = jnp.ones((1, OUT_DIM), jnp.float32)
    beta = jnp.zeros((1, OUT_DIM), jnp.float32)

    out = res_gtn_forward(x, adj, edge_attr_dense, (p1, p2, p3), gamma, beta,
                          heads=HEADS, out_dim=OUT_DIM, num_groups=NGROUPS)
    out = jax.block_until_ready(out)

    assert out.shape == (N, OUT_DIM)
    assert bool(jnp.all(jnp.isfinite(out)))
    print("KERNEL_OK")
</pallas_src>

<mosaic_0001>
module attributes {stable_mosaic.version = 11 : i64} {
  func.func @_res_gtn_kernel(%arg0: memref<16x16xf32, #tpu.memory_space<vmem>>, %arg1: memref<16x16xf32, #tpu.memory_space<vmem>>, %arg2: memref<8x16x16xf32, #tpu.memory_space<vmem>>, %arg3: memref<3x31x896xf32, #tpu.memory_space<vmem>>, %arg4: memref<3x2x8x60xf32, #tpu.memory_space<vmem>>, %arg5: memref<2x30xf32, #tpu.memory_space<vmem>>, %arg6: memref<16x30xf32, #tpu.memory_space<vmem>>) attributes {dimension_semantics = [], scalar_prefetch = 0 : i64, scratch_operands = 0 : i64, tpu.core_type = #tpu.core_type<tc>} {
    %c0 = arith.constant 0 : index
    %c0_0 = arith.constant 0 : index
    %0 = vector.load %arg1[%c0, %c0_0] : memref<16x16xf32, #tpu.memory_space<vmem>>, vector<16x16xf32>
    %cst = arith.constant 0.000000e+00 : f32
    %1 = vector.broadcast %cst : f32 to vector<16x16xf32>
    %2 = arith.cmpf ogt, %0, %1 : vector<16x16xf32>
    %cst_1 = arith.constant 0.000000e+00 : f32
    %cst_2 = arith.constant -1.000000e+30 : f32
    %3 = vector.broadcast %cst_1 : f32 to vector<16x16xf32>
    %4 = vector.broadcast %cst_2 : f32 to vector<16x16xf32>
    %5 = arith.select %2, %3, %4 : vector<16x16xi1>, vector<16x16xf32>
    %c0_3 = arith.constant 0 : index
    %c0_4 = arith.constant 0 : index
    %6 = vector.load %arg5[%c0_3, %c0_4] : memref<2x30xf32, #tpu.memory_space<vmem>>, vector<1x30xf32>
    %c1 = arith.constant 1 : index
    %c0_5 = arith.constant 0 : index
    %7 = vector.load %arg5[%c1, %c0_5] : memref<2x30xf32, #tpu.memory_space<vmem>>, vector<1x30xf32>
    %c0_6 = arith.constant 0 : index
    %c0_7 = arith.constant 0 : index
    %8 = vector.load %arg0[%c0_6, %c0_7] : memref<16x16xf32, #tpu.memory_space<vmem>>, vector<16x16xf32>
    %c0_8 = arith.constant 0 : index
    %c0_9 = arith.constant 0 : index
    %c0_10 = arith.constant 0 : index
    %9 = vector.load %arg3[%c0_8, %c0_9, %c0_10] : memref<3x31x896xf32, #tpu.memory_space<vmem>>, vector<1x16x896xf32>
    %10 = vector.shape_cast %9 : vector<1x16x896xf32> to vector<16x896xf32>
    %cst_11 = arith.constant dense<0.000000e+00> : vector<16x896xf32>
    %11 = tpu.matmul %8, %10, %cst_11 {dimension_numbers = #tpu.dot_dimension_numbers<[1], [0], [0], [1], [0, 0, 1, 1], [], []>} : vector<16x16xf32>, vector<16x896xf32>, vector<16x896xf32> -> vector<16x896xf32>
    %c0_12 = arith.constant 0 : index
    %c16 = arith.constant 16 : index
    %c0_13 = arith.constant 0 : index
    %12 = vector.load %arg3[%c0_12, %c16, %c0_13] : memref<3x31x896xf32, #tpu.memory_space<vmem>>, vector<1x1x896xf32>
    %13 = vector.shape_cast %12 : vector<1x1x896xf32> to vector<1x896xf32>
    %14 = vector.broadcast %13 : vector<1x896xf32> to vector<16x896xf32>
    %15 = arith.addf %11, %14 : vector<16x896xf32>
    %16 = vector.extract_strided_slice %15 {offsets = [0, 0], sizes = [16, 17], strides = [1, 1]} : vector<16x896xf32> to vector<16x17xf32>
    %17 = vector.extract_strided_slice %15 {offsets = [0, 128], sizes = [16, 17], strides = [1, 1]} : vector<16x896xf32> to vector<16x17xf32>
    %18 = vector.extract_strided_slice %15 {offsets = [0, 256], sizes = [16, 8], strides = [1, 1]} : vector<16x896xf32> to vector<16x8xf32>
    %19 = vector.extract_strided_slice %15 {offsets = [0, 384], sizes = [16, 8], strides = [1, 1]} : vector<16x896xf32> to vector<16x8xf32>
    %20 = vector.extract_strided_slice %16 {offsets = [0, 0], sizes = [16, 16], strides = [1, 1]} : vector<16x17xf32> to vector<16x16xf32>
    %21 = vector.extract_strided_slice %17 {offsets = [0, 0], sizes = [16, 16], strides = [1, 1]} : vector<16x17xf32> to vector<16x16xf32>
    %22 = tpu.concatenate %20, %21 in 0 : vector<16x16xf32>, vector<16x16xf32> -> vector<32x16xf32>
    %cst_14 = arith.constant dense<0.000000e+00> : vector<32x16xf32>
    %23 = tpu.matmul %22, %8, %cst_14 {dimension_numbers = #tpu.dot_dimension_numbers<[1], [1], [0], [0], [0, 0, 1, 0], [], []>} : vector<32x16xf32>, vector<16x16xf32>, vector<32x16xf32> -> vector<32x16xf32>
    %cst_15 = arith.constant 0.000000e+00 : f32
    %24 = vector.broadcast %cst_15 : f32 to vector<16x16xf32>
    %cst_16 = arith.constant 0.000000e+00 : f32
    %25 = vector.broadcast %cst_16 : f32 to vector<16x16xf32>
    %c0_17 = arith.constant 0 : index
    %c0_18 = arith.constant 0 : index
    %c0_19 = arith.constant 0 : index
    %26 = vector.load %arg2[%c0_17, %c0_18, %c0_19] : memref<8x16x16xf32, #tpu.memory_space<vmem>>, vector<1x16x16xf32>
    %27 = vector.shape_cast %26 : vector<1x16x16xf32> to vector<16x16xf32>
    %28 = vector.extract_strided_slice %18 {offsets = [0, 0], sizes = [16, 1], strides = [1, 1]} : vector<16x8xf32> to vector<16x1xf32>
    %29 = vector.broadcast %28 : vector<16x1xf32> to vector<16x16xf32>
    %30 = arith.mulf %29, %27 : vector<16x16xf32>
    %31 = arith.addf %24, %30 : vector<16x16xf32>
    %32 = vector.extract_strided_slice %19 {offsets = [0, 0], sizes = [16, 1], strides = [1, 1]} : vector<16x8xf32> to vector<16x1xf32>
    %33 = vector.broadcast %32 : vector<16x1xf32> to vector<16x16xf32>
    %34 = arith.mulf %33, %27 : vector<16x16xf32>
    %35 = arith.addf %25, %34 : vector<16x16xf32>
    %c1_20 = arith.constant 1 : index
    %c0_21 = arith.constant 0 : index
    %c0_22 = arith.constant 0 : index
    %36 = vector.load %arg2[%c1_20, %c0_21, %c0_22] : memref<8x16x16xf32, #tpu.memory_space<vmem>>, vector<1x16x16xf32>
    %37 = vector.shape_cast %36 : vector<1x16x16xf32> to vector<16x16xf32>
    %38 = vector.extract_strided_slice %18 {offsets = [0, 1], sizes = [16, 1], strides = [1, 1]} : vector<16x8xf32> to vector<16x1xf32>
    %39 = vector.broadcast %38 : vector<16x1xf32> to vector<16x16xf32>
    %40 = arith.mulf %39, %37 : vector<16x16xf32>
    %41 = arith.addf %31, %40 : vector<16x16xf32>
    %42 = vector.extract_strided_slice %19 {offsets = [0, 1], sizes = [16, 1], strides = [1, 1]} : vector<16x8xf32> to vector<16x1xf32>
    %43 = vector.broadcast %42 : vector<16x1xf32> to vector<16x16xf32>
    %44 = arith.mulf %43, %37 : vector<16x16xf32>
    %45 = arith.addf %35, %44 : vector<16x16xf32>
    %c2 = arith.constant 2 : index
    %c0_23 = arith.constant 0 : index
    %c0_24 = arith.constant 0 : index
    %46 = vector.load %arg2[%c2, %c0_23, %c0_24] : memref<8x16x16xf32, #tpu.memory_space<vmem>>, vector<1x16x16xf32>
    %47 = vector.shape_cast %46 : vector<1x16x16xf32> to vector<16x16xf32>
    %48 = vector.extract_strided_slice %18 {offsets = [0, 2], sizes = [16, 1], strides = [1, 1]} : vector<16x8xf32> to vector<16x1xf32>
    %49 = vector.broadcast %48 : vector<16x1xf32> to vector<16x16xf32>
    %50 = arith.mulf %49, %47 : vector<16x16xf32>
    %51 = arith.addf %41, %50 : vector<16x16xf32>
    %52 = vector.extract_strided_slice %19 {offsets = [0, 2], sizes = [16, 1], strides = [1, 1]} : vector<16x8xf32> to vector<16x1xf32>
    %53 = vector.broadcast %52 : vector<16x1xf32> to vector<16x16xf32>
    %54 = arith.mulf %53, %47 : vector<16x16xf32>
    %55 = arith.addf %45, %54 : vector<16x16xf32>
    %c3 = arith.constant 3 : index
    %c0_25 = arith.constant 0 : index
    %c0_26 = arith.constant 0 : index
    %56 = vector.load %arg2[%c3, %c0_25, %c0_26] : memref<8x16x16xf32, #tpu.memory_space<vmem>>, vector<1x16x16xf32>
    %57 = vector.shape_cast %56 : vector<1x16x16xf32> to vector<16x16xf32>
    %58 = vector.extract_strided_slice %18 {offsets = [0, 3], sizes = [16, 1], strides = [1, 1]} : vector<16x8xf32> to vector<16x1xf32>
    %59 = vector.broadcast %58 : vector<16x1xf32> to vector<16x16xf32>
    %60 = arith.mulf %59, %57 : vector<16x16xf32>
    %61 = arith.addf %51, %60 : vector<16x16xf32>
    %62 = vector.extract_strided_slice %19 {offsets = [0, 3], sizes = [16, 1], strides = [1, 1]} : vector<16x8xf32> to vector<16x1xf32>
    %63 = vector.broadcast %62 : vector<16x1xf32> to vector<16x16xf32>
    %64 = arith.mulf %63, %57 : vector<16x16xf32>
    %65 = arith.addf %55, %64 : vector<16x16xf32>
    %c4 = arith.constant 4 : index
    %c0_27 = arith.constant 0 : index
    %c0_28 = arith.constant 0 : index
    %66 = vector.load %arg2[%c4, %c0_27, %c0_28] : memref<8x16x16xf32, #tpu.memory_space<vmem>>, vector<1x16x16xf32>
    %67 = vector.shape_cast %66 : vector<1x16x16xf32> to vector<16x16xf32>
    %68 = vector.extract_strided_slice %18 {offsets = [0, 4], sizes = [16, 1], strides = [1, 1]} : vector<16x8xf32> to vector<16x1xf32>
    %69 = vector.broadcast %68 : vector<16x1xf32> to vector<16x16xf32>
    %70 = arith.mulf %69, %67 : vector<16x16xf32>
    %71 = arith.addf %61, %70 : vector<16x16xf32>
    %72 = vector.extract_strided_slice %19 {offsets = [0, 4], sizes = [16, 1], strides = [1, 1]} : vector<16x8xf32> to vector<16x1xf32>
    %73 = vector.broadcast %72 : vector<16x1xf32> to vector<16x16xf32>
    %74 = arith.mulf %73, %67 : vector<16x16xf32>
    %75 = arith.addf %65, %74 : vector<16x16xf32>
    %c5 = arith.constant 5 : index
    %c0_29 = arith.constant 0 : index
    %c0_30 = arith.constant 0 : index
    %76 = vector.load %arg2[%c5, %c0_29, %c0_30] : memref<8x16x16xf32, #tpu.memory_space<vmem>>, vector<1x16x16xf32>
    %77 = vector.shape_cast %76 : vector<1x16x16xf32> to vector<16x16xf32>
    %78 = vector.extract_strided_slice %18 {offsets = [0, 5], sizes = [16, 1], strides = [1, 1]} : vector<16x8xf32> to vector<16x1xf32>
    %79 = vector.broadcast %78 : vector<16x1xf32> to vector<16x16xf32>
    %80 = arith.mulf %79, %77 : vector<16x16xf32>
    %81 = arith.addf %71, %80 : vector<16x16xf32>
    %82 = vector.extract_strided_slice %19 {offsets = [0, 5], sizes = [16, 1], strides = [1, 1]} : vector<16x8xf32> to vector<16x1xf32>
    %83 = vector.broadcast %82 : vector<16x1xf32> to vector<16x16xf32>
    %84 = arith.mulf %83, %77 : vector<16x16xf32>
    %85 = arith.addf %75, %84 : vector<16x16xf32>
    %c6 = arith.constant 6 : index
    %c0_31 = arith.constant 0 : index
    %c0_32 = arith.constant 0 : index
    %86 = vector.load %arg2[%c6, %c0_31, %c0_32] : memref<8x16x16xf32, #tpu.memory_space<vmem>>, vector<1x16x16xf32>
    %87 = vector.shape_cast %86 : vector<1x16x16xf32> to vector<16x16xf32>
    %88 = vector.extract_strided_slice %18 {offsets = [0, 6], sizes = [16, 1], strides = [1, 1]} : vector<16x8xf32> to vector<16x1xf32>
    %89 = vector.broadcast %88 : vector<16x1xf32> to vector<16x16xf32>
    %90 = arith.mulf %89, %87 : vector<16x16xf32>
    %91 = arith.addf %81, %90 : vector<16x16xf32>
    %92 = vector.extract_strided_slice %19 {offsets = [0, 6], sizes = [16, 1], strides = [1, 1]} : vector<16x8xf32> to vector<16x1xf32>
    %93 = vector.broadcast %92 : vector<16x1xf32> to vector<16x16xf32>
    %94 = arith.mulf %93, %87 : vector<16x16xf32>
    %95 = arith.addf %85, %94 : vector<16x16xf32>
    %c7 = arith.constant 7 : index
    %c0_33 = arith.constant 0 : index
    %c0_34 = arith.constant 0 : index
    %96 = vector.load %arg2[%c7, %c0_33, %c0_34] : memref<8x16x16xf32, #tpu.memory_space<vmem>>, vector<1x16x16xf32>
    %97 = vector.shape_cast %96 : vector<1x16x16xf32> to vector<16x16xf32>
    %98 = vector.extract_strided_slice %18 {offsets = [0, 7], sizes = [16, 1], strides = [1, 1]} : vector<16x8xf32> to vector<16x1xf32>
    %99 = vector.broadcast %98 : vector<16x1xf32> to vector<16x16xf32>
    %100 = arith.mulf %99, %97 : vector<16x16xf32>
    %101 = arith.addf %91, %100 : vector<16x16xf32>
    %102 = vector.extract_strided_slice %19 {offsets = [0, 7], sizes = [16, 1], strides = [1, 1]} : vector<16x8xf32> to vector<16x1xf32>
    %103 = vector.broadcast %102 : vector<16x1xf32> to vector<16x16xf32>
    %104 = arith.mulf %103, %97 : vector<16x16xf32>
    %105 = arith.addf %95, %104 : vector<16x16xf32>
    %106 = vector.extract_strided_slice %23 {offsets = [0, 0], sizes = [16, 16], strides = [1, 1]} : vector<32x16xf32> to vector<16x16xf32>
    %107 = vector.extract_strided_slice %16 {offsets = [0, 16], sizes = [16, 1], strides = [1, 1]} : vector<16x17xf32> to vector<16x1xf32>
    %108 = vector.broadcast %107 : vector<16x1xf32> to vector<16x16xf32>
    %109 = arith.addf %106, %108 : vector<16x16xf32>
    %110 = arith.addf %109, %101 : vector<16x16xf32>
    %cst_35 = arith.constant 0.182574183 : f32
    %111 = vector.broadcast %cst_35 : f32 to vector<16x16xf32>
    %112 = arith.mulf %110, %111 : vector<16x16xf32>
    %113 = arith.addf %112, %5 : vector<16x16xf32>
    %cst_36 = arith.constant dense<0xFF800000> : vector<16xf32>
    %114 = vector.multi_reduction <maximumf>, %113, %cst_36 [1] : vector<16x16xf32> to vector<16xf32>
    %115 = vector.shape_cast %114 : vector<16xf32> to vector<16x1xf32>
    %116 = vector.broadcast %115 : vector<16x1xf32> to vector<16x16xf32>
    %117 = arith.subf %113, %116 : vector<16x16xf32>
    %118 = math.exp %117 : vector<16x16xf32>
    %119 = arith.mulf %118, %0 : vector<16x16xf32>
    %cst_37 = arith.constant dense<0.000000e+00> : vector<16xf32>
    %120 = vector.multi_reduction <add>, %119, %cst_37 [1] : vector<16x16xf32> to vector<16xf32>
    %121 = vector.shape_cast %120 : vector<16xf32> to vector<16x1xf32>
    %cst_38 = arith.constant 1.000000e-30 : f32
    %122 = vector.broadcast %cst_38 : f32 to vector<16x1xf32>
    %123 = arith.maximumf %121, %122 : vector<16x1xf32>
    %124 = tpu.reciprocal %123 {approx = true} : vector<16x1xf32> -> vector<16x1xf32>
    %125 = vector.broadcast %124 : vector<16x1xf32> to vector<16x16xf32>
    %126 = arith.mulf %119, %125 : vector<16x16xf32>
    %127 = vector.extract_strided_slice %23 {offsets = [16, 0], sizes = [16, 16], strides = [1, 1]} : vector<32x16xf32> to vector<16x16xf32>
    %128 = vector.extract_strided_slice %17 {offsets = [0, 16], sizes = [16, 1], strides = [1, 1]} : vector<16x17xf32> to vector<16x1xf32>
    %129 = vector.broadcast %128 : vector<16x1xf32> to vector<16x16xf32>
    %130 = arith.addf %127, %129 : vector<16x16xf32>
    %131 = arith.addf %130, %105 : vector<16x16xf32>
    %cst_39 = arith.constant 0.182574183 : f32
    %132 = vector.broadcast %cst_39 : f32 to vector<16x16xf32>
    %133 = arith.mulf %131, %132 : vector<16x16xf32>
    %134 = arith.addf %133, %5 : vector<16x16xf32>
    %cst_40 = arith.constant dense<0xFF800000> : vector<16xf32>
    %135 = vector.multi_reduction <maximumf>, %134, %cst_40 [1] : vector<16x16xf32> to vector<16xf32>
    %136 = vector.shape_cast %135 : vector<16xf32> to vector<16x1xf32>
    %137 = vector.broadcast %136 : vector<16x1xf32> to vector<16x16xf32>
    %138 = arith.subf %134, %137 : vector<16x16xf32>
    %139 = math.exp %138 : vector<16x16xf32>
    %140 = arith.mulf %139, %0 : vector<16x16xf32>
    %cst_41 = arith.constant dense<0.000000e+00> : vector<16xf32>
    %141 = vector.multi_reduction <add>, %140, %cst_41 [1] : vector<16x16xf32> to vector<16xf32>
    %142 = vector.shape_cast %141 : vector<16xf32> to vector<16x1xf32>
    %cst_42 = arith.constant 1.000000e-30 : f32
    %143 = vector.broadcast %cst_42 : f32 to vector<16x1xf32>
    %144 = arith.maximumf %142, %143 : vector<16x1xf32>
    %145 = tpu.reciprocal %144 {approx = true} : vector<16x1xf32> -> vector<16x1xf32>
    %146 = vector.broadcast %145 : vector<16x1xf32> to vector<16x16xf32>
    %147 = arith.mulf %140, %146 : vector<16x16xf32>
    %cst_43 = arith.constant 0.000000e+00 : f32
    %148 = vector.broadcast %cst_43 : f32 to vector<16x60xf32>
    %c0_44 = arith.constant 0 : index
    %c0_45 = arith.constant 0 : index
    %c0_46 = arith.constant 0 : index
    %c0_47 = arith.constant 0 : index
    %149 = vector.load %arg4[%c0_44, %c0_45, %c0_46, %c0_47] : memref<3x2x8x60xf32, #tpu.memory_space<vmem>>, vector<1x1x8x60xf32>
    %150 = vector.shape_cast %149 : vector<1x1x8x60xf32> to vector<8x60xf32>
    %c0_48 = arith.constant 0 : index
    %c1_49 = arith.constant 1 : index
    %c0_50 = arith.constant 0 : index
    %c0_51 = arith.constant 0 : index
    %151 = vector.load %arg4[%c0_48, %c1_49, %c0_50, %c0_51] : memref<3x2x8x60xf32, #tpu.memory_space<vmem>>, vector<1x1x8x60xf32>
    %152 = vector.shape_cast %151 : vector<1x1x8x60xf32> to vector<8x60xf32>
    %153 = vector.extract_strided_slice %15 {offsets = [0, 512], sizes = [16, 60], strides = [1, 1]} : vector<16x896xf32> to vector<16x60xf32>
    %cst_52 = arith.constant dense<0.000000e+00> : vector<16x60xf32>
    %154 = tpu.matmul %126, %153, %cst_52 {dimension_numbers = #tpu.dot_dimension_numbers<[1], [0], [0], [1], [0, 0, 1, 1], [], []>} : vector<16x16xf32>, vector<16x60xf32>, vector<16x60xf32> -> vector<16x60xf32>
    %155 = arith.addf %148, %154 : vector<16x60xf32>
    %156 = vector.extract_strided_slice %15 {offsets = [0, 640], sizes = [16, 60], strides = [1, 1]} : vector<16x896xf32> to vector<16x60xf32>
    %cst_53 = arith.constant dense<0.000000e+00> : vector<16x60xf32>
    %157 = tpu.matmul %147, %156, %cst_53 {dimension_numbers = #tpu.dot_dimension_numbers<[1], [0], [0], [1], [0, 0, 1, 1], [], []>} : vector<16x16xf32>, vector<16x60xf32>, vector<16x60xf32> -> vector<16x60xf32>
    %158 = arith.addf %155, %157 : vector<16x60xf32>
    %c0_54 = arith.constant 0 : index
    %c0_55 = arith.constant 0 : index
    %c0_56 = arith.constant 0 : index
    %159 = vector.load %arg2[%c0_54, %c0_55, %c0_56] : memref<8x16x16xf32, #tpu.memory_space<vmem>>, vector<1x16x16xf32>
    %160 = vector.shape_cast %159 : vector<1x16x16xf32> to vector<16x16xf32>
    %161 = arith.mulf %126, %160 : vector<16x16xf32>
    %cst_57 = arith.constant dense<0.000000e+00> : vector<16xf32>
    %162 = vector.multi_reduction <add>, %161, %cst_57 [1] : vector<16x16xf32> to vector<16xf32>
    %163 = vector.shape_cast %162 : vector<16xf32> to vector<16x1xf32>
    %164 = vector.extract_strided_slice %150 {offsets = [0, 0], sizes = [1, 60], strides = [1, 1]} : vector<8x60xf32> to vector<1x60xf32>
    %165 = vector.broadcast %163 : vector<16x1xf32> to vector<16x60xf32>
    %166 = vector.broadcast %164 : vector<1x60xf32> to vector<16x60xf32>
    %167 = arith.mulf %165, %166 : vector<16x60xf32>
    %168 = arith.addf %158, %167 : vector<16x60xf32>
    %169 = arith.mulf %147, %160 : vector<16x16xf32>
    %cst_58 = arith.constant dense<0.000000e+00> : vector<16xf32>
    %170 = vector.multi_reduction <add>, %169, %cst_58 [1] : vector<16x16xf32> to vector<16xf32>
    %171 = vector.shape_cast %170 : vector<16xf32> to vector<16x1xf32>
    %172 = vector.extract_strided_slice %152 {offsets = [0, 0], sizes = [1, 60], strides = [1, 1]} : vector<8x60xf32> to vector<1x60xf32>
    %173 = vector.broadcast %171 : vector<16x1xf32> to vector<16x60xf32>
    %174 = vector.broadcast %172 : vector<1x60xf32> to vector<16x60xf32>
    %175 = arith.mulf %173, %174 : vector<16x60xf32>
    %176 = arith.addf %168, %175 : vector<16x60xf32>
    %c1_59 = arith.constant 1 : index
    %c0_60 = arith.constant 0 : index
    %c0_61 = arith.constant 0 : index
    %177 = vector.load %arg2[%c1_59, %c0_60, %c0_61] : memref<8x16x16xf32, #tpu.memory_space<vmem>>, vector<1x16x16xf32>
    %178 = vector.shape_cast %177 : vector<1x16x16xf32> to vector<16x16xf32>
    %179 = arith.mulf %126, %178 : vector<16x16xf32>
    %cst_62 = arith.constant dense<0.000000e+00> : vector<16xf32>
    %180 = vector.multi_reduction <add>, %179, %cst_62 [1] : vector<16x16xf32> to vector<16xf32>
    %181 = vector.shape_cast %180 : vector<16xf32> to vector<16x1xf32>
    %182 = vector.extract_strided_slice %150 {offsets = [1, 0], sizes = [1, 60], strides = [1, 1]} : vector<8x60xf32> to vector<1x60xf32>
    %183 = vector.broadcast %181 : vector<16x1xf32> to vector<16x60xf32>
    %184 = vector.broadcast %182 : vector<1x60xf32> to vector<16x60xf32>
    %185 = arith.mulf %183, %184 : vector<16x60xf32>
    %186 = arith.addf %176, %185 : vector<16x60xf32>
    %187 = arith.mulf %147, %178 : vector<16x16xf32>
    %cst_63 = arith.constant dense<0.000000e+00> : vector<16xf32>
    %188 = vector.multi_reduction <add>, %187, %cst_63 [1] : vector<16x16xf32> to vector<16xf32>
    %189 = vector.shape_cast %188 : vector<16xf32> to vector<16x1xf32>
    %190 = vector.extract_strided_slice %152 {offsets = [1, 0], sizes = [1, 60], strides = [1, 1]} : vector<8x60xf32> to vector<1x60xf32>
    %191 = vector.broadcast %189 : vector<16x1xf32> to vector<16x60xf32>
    %192 = vector.broadcast %190 : vector<1x60xf32> to vector<16x60xf32>
    %193 = arith.mulf %191, %192 : vector<16x60xf32>
    %194 = arith.addf %186, %193 : vector<16x60xf32>
    %c2_64 = arith.constant 2 : index
    %c0_65 = arith.constant 0 : index
    %c0_66 = arith.constant 0 : index
    %195 = vector.load %arg2[%c2_64, %c0_65, %c0_66] : memref<8x16x16xf32, #tpu.memory_space<vmem>>, vector<1x16x16xf32>
    %196 = vector.shape_cast %195 : vector<1x16x16xf32> to vector<16x16xf32>
    %197 = arith.mulf %126, %196 : vector<16x16xf32>
    %cst_67 = arith.constant dense<0.000000e+00> : vector<16xf32>
    %198 = vector.multi_reduction <add>, %197, %cst_67 [1] : vector<16x16xf32> to vector<16xf32>
    %199 = vector.shape_cast %198 : vector<16xf32> to vector<16x1xf32>
    %200 = vector.extract_strided_slice %150 {offsets = [2, 0], sizes = [1, 60], strides = [1, 1]} : vector<8x60xf32> to vector<1x60xf32>
    %201 = vector.broadcast %199 : vector<16x1xf32> to vector<16x60xf32>
    %202 = vector.broadcast %200 : vector<1x60xf32> to vector<16x60xf32>
    %203 = arith.mulf %201, %202 : vector<16x60xf32>
    %204 = arith.addf %194, %203 : vector<16x60xf32>
    %205 = arith.mulf %147, %196 : vector<16x16xf32>
    %cst_68 = arith.constant dense<0.000000e+00> : vector<16xf32>
    %206 = vector.multi_reduction <add>, %205, %cst_68 [1] : vector<16x16xf32> to vector<16xf32>
    %207 = vector.shape_cast %206 : vector<16xf32> to vector<16x1xf32>
    %208 = vector.extract_strided_slice %152 {offsets = [2, 0], sizes = [1, 60], strides = [1, 1]} : vector<8x60xf32> to vector<1x60xf32>
    %209 = vector.broadcast %207 : vector<16x1xf32> to vector<16x60xf32>
    %210 = vector.broadcast %208 : vector<1x60xf32> to vector<16x60xf32>
    %211 = arith.mulf %209, %210 : vector<16x60xf32>
    %212 = arith.addf %204, %211 : vector<16x60xf32>
    %c3_69 = arith.constant 3 : index
    %c0_70 = arith.constant 0 : index
    %c0_71 = arith.constant 0 : index
    %213 = vector.load %arg2[%c3_69, %c0_70, %c0_71] : memref<8x16x16xf32, #tpu.memory_space<vmem>>, vector<1x16x16xf32>
    %214 = vector.shape_cast %213 : vector<1x16x16xf32> to vector<16x16xf32>
    %215 = arith.mulf %126, %214 : vector<16x16xf32>
    %cst_72 = arith.constant dense<0.000000e+00> : vector<16xf32>
    %216 = vector.multi_reduction <add>, %215, %cst_72 [1] : vector<16x16xf32> to vector<16xf32>
    %217 = vector.shape_cast %216 : vector<16xf32> to vector<16x1xf32>
    %218 = vector.extract_strided_slice %150 {offsets = [3, 0], sizes = [1, 60], strides = [1, 1]} : vector<8x60xf32> to vector<1x60xf32>
    %219 = vector.broadcast %217 : vector<16x1xf32> to vector<16x60xf32>
    %220 = vector.broadcast %218 : vector<1x60xf32> to vector<16x60xf32>
    %221 = arith.mulf %219, %220 : vector<16x60xf32>
    %222 = arith.addf %212, %221 : vector<16x60xf32>
    %223 = arith.mulf %147, %214 : vector<16x16xf32>
    %cst_73 = arith.constant dense<0.000000e+00> : vector<16xf32>
    %224 = vector.multi_reduction <add>, %223, %cst_73 [1] : vector<16x16xf32> to vector<16xf32>
    %225 = vector.shape_cast %224 : vector<16xf32> to vector<16x1xf32>
    %226 = vector.extract_strided_slice %152 {offsets = [3, 0], sizes = [1, 60], strides = [1, 1]} : vector<8x60xf32> to vector<1x60xf32>
    %227 = vector.broadcast %225 : vector<16x1xf32> to vector<16x60xf32>
    %228 = vector.broadcast %226 : vector<1x60xf32> to vector<16x60xf32>
    %229 = arith.mulf %227, %228 : vector<16x60xf32>
    %230 = arith.addf %222, %229 : vector<16x60xf32>
    %c4_74 = arith.constant 4 : index
    %c0_75 = arith.constant 0 : index
    %c0_76 = arith.constant 0 : index
    %231 = vector.load %arg2[%c4_74, %c0_75, %c0_76] : memref<8x16x16xf32, #tpu.memory_space<vmem>>, vector<1x16x16xf32>
    %232 = vector.shape_cast %231 : vector<1x16x16xf32> to vector<16x16xf32>
    %233 = arith.mulf %126, %232 : vector<16x16xf32>
    %cst_77 = arith.constant dense<0.000000e+00> : vector<16xf32>
    %234 = vector.multi_reduction <add>, %233, %cst_77 [1] : vector<16x16xf32> to vector<16xf32>
    %235 = vector.shape_cast %234 : vector<16xf32> to vector<16x1xf32>
    %236 = vector.extract_strided_slice %150 {offsets = [4, 0], sizes = [1, 60], strides = [1, 1]} : vector<8x60xf32> to vector<1x60xf32>
    %237 = vector.broadcast %235 : vector<16x1xf32> to vector<16x60xf32>
    %238 = vector.broadcast %236 : vector<1x60xf32> to vector<16x60xf32>
    %239 = arith.mulf %237, %238 : vector<16x60xf32>
    %240 = arith.addf %230, %239 : vector<16x60xf32>
    %241 = arith.mulf %147, %232 : vector<16x16xf32>
    %cst_78 = arith.constant dense<0.000000e+00> : vector<16xf32>
    %242 = vector.multi_reduction <add>, %241, %cst_78 [1] : vector<16x16xf32> to vector<16xf32>
    %243 = vector.shape_cast %242 : vector<16xf32> to vector<16x1xf32>
    %244 = vector.extract_strided_slice %152 {offsets = [4, 0], sizes = [1, 60], strides = [1, 1]} : vector<8x60xf32> to vector<1x60xf32>
    %245 = vector.broadcast %243 : vector<16x1xf32> to vector<16x60xf32>
    %246 = vector.broadcast %244 : vector<1x60xf32> to vector<16x60xf32>
    %247 = arith.mulf %245, %246 : vector<16x60xf32>
    %248 = arith.addf %240, %247 : vector<16x60xf32>
    %c5_79 = arith.constant 5 : index
    %c0_80 = arith.constant 0 : index
    %c0_81 = arith.constant 0 : index
    %249 = vector.load %arg2[%c5_79, %c0_80, %c0_81] : memref<8x16x16xf32, #tpu.memory_space<vmem>>, vector<1x16x16xf32>
    %250 = vector.shape_cast %249 : vector<1x16x16xf32> to vector<16x16xf32>
    %251 = arith.mulf %126, %250 : vector<16x16xf32>
    %cst_82 = arith.constant dense<0.000000e+00> : vector<16xf32>
    %252 = vector.multi_reduction <add>, %251, %cst_82 [1] : vector<16x16xf32> to vector<16xf32>
    %253 = vector.shape_cast %252 : vector<16xf32> to vector<16x1xf32>
    %254 = vector.extract_strided_slice %150 {offsets = [5, 0], sizes = [1, 60], strides = [1, 1]} : vector<8x60xf32> to vector<1x60xf32>
    %255 = vector.broadcast %253 : vector<16x1xf32> to vector<16x60xf32>
    %256 = vector.broadcast %254 : vector<1x60xf32> to vector<16x60xf32>
    %257 = arith.mulf %255, %256 : vector<16x60xf32>
    %258 = arith.addf %248, %257 : vector<16x60xf32>
    %259 = arith.mulf %147, %250 : vector<16x16xf32>
    %cst_83 = arith.constant dense<0.000000e+00> : vector<16xf32>
    %260 = vector.multi_reduction <add>, %259, %cst_83 [1] : vector<16x16xf32> to vector<16xf32>
    %261 = vector.shape_cast %260 : vector<16xf32> to vector<16x1xf32>
    %262 = vector.extract_strided_slice %152 {offsets = [5, 0], sizes = [1, 60], strides = [1, 1]} : vector<8x60xf32> to vector<1x60xf32>
    %263 = vector.broadcast %261 : vector<16x1xf32> to vector<16x60xf32>
    %264 = vector.broadcast %262 : vector<1x60xf32> to vector<16x60xf32>
    %265 = arith.mulf %263, %264 : vector<16x60xf32>
    %266 = arith.addf %258, %265 : vector<16x60xf32>
    %c6_84 = arith.constant 6 : index
    %c0_85 = arith.constant 0 : index
    %c0_86 = arith.constant 0 : index
    %267 = vector.load %arg2[%c6_84, %c0_85, %c0_86] : memref<8x16x16xf32, #tpu.memory_space<vmem>>, vector<1x16x16xf32>
    %268 = vector.shape_cast %267 : vector<1x16x16xf32> to vector<16x16xf32>
    %269 = arith.mulf %126, %268 : vector<16x16xf32>
    %cst_87 = arith.constant dense<0.000000e+00> : vector<16xf32>
    %270 = vector.multi_reduction <add>, %269, %cst_87 [1] : vector<16x16xf32> to vector<16xf32>
    %271 = vector.shape_cast %270 : vector<16xf32> to vector<16x1xf32>
    %272 = vector.extract_strided_slice %150 {offsets = [6, 0], sizes = [1, 60], strides = [1, 1]} : vector<8x60xf32> to vector<1x60xf32>
    %273 = vector.broadcast %271 : vector<16x1xf32> to vector<16x60xf32>
    %274 = vector.broadcast %272 : vector<1x60xf32> to vector<16x60xf32>
    %275 = arith.mulf %273, %274 : vector<16x60xf32>
    %276 = arith.addf %266, %275 : vector<16x60xf32>
    %277 = arith.mulf %147, %268 : vector<16x16xf32>
    %cst_88 = arith.constant dense<0.000000e+00> : vector<16xf32>
    %278 = vector.multi_reduction <add>, %277, %cst_88 [1] : vector<16x16xf32> to vector<16xf32>
    %279 = vector.shape_cast %278 : vector<16xf32> to vector<16x1xf32>
    %280 = vector.extract_strided_slice %152 {offsets = [6, 0], sizes = [1, 60], strides = [1, 1]} : vector<8x60xf32> to vector<1x60xf32>
    %281 = vector.broadcast %279 : vector<16x1xf32> to vector<16x60xf32>
    %282 = vector.broadcast %280 : vector<1x60xf32> to vector<16x60xf32>
    %283 = arith.mulf %281, %282 : vector<16x60xf32>
    %284 = arith.addf %276, %283 : vector<16x60xf32>
    %c7_89 = arith.constant 7 : index
    %c0_90 = arith.constant 0 : index
    %c0_91 = arith.constant 0 : index
    %285 = vector.load %arg2[%c7_89, %c0_90, %c0_91] : memref<8x16x16xf32, #tpu.memory_space<vmem>>, vector<1x16x16xf32>
    %286 = vector.shape_cast %285 : vector<1x16x16xf32> to vector<16x16xf32>
    %287 = arith.mulf %126, %286 : vector<16x16xf32>
    %cst_92 = arith.constant dense<0.000000e+00> : vector<16xf32>
    %288 = vector.multi_reduction <add>, %287, %cst_92 [1] : vector<16x16xf32> to vector<16xf32>
    %289 = vector.shape_cast %288 : vector<16xf32> to vector<16x1xf32>
    %290 = vector.extract_strided_slice %150 {offsets = [7, 0], sizes = [1, 60], strides = [1, 1]} : vector<8x60xf32> to vector<1x60xf32>
    %291 = vector.broadcast %289 : vector<16x1xf32> to vector<16x60xf32>
    %292 = vector.broadcast %290 : vector<1x60xf32> to vector<16x60xf32>
    %293 = arith.mulf %291, %292 : vector<16x60xf32>
    %294 = arith.addf %284, %293 : vector<16x60xf32>
    %295 = arith.mulf %147, %286 : vector<16x16xf32>
    %cst_93 = arith.constant dense<0.000000e+00> : vector<16xf32>
    %296 = vector.multi_reduction <add>, %295, %cst_93 [1] : vector<16x16xf32> to vector<16xf32>
    %297 = vector.shape_cast %296 : vector<16xf32> to vector<16x1xf32>
    %298 = vector.extract_strided_slice %152 {offsets = [7, 0], sizes = [1, 60], strides = [1, 1]} : vector<8x60xf32> to vector<1x60xf32>
    %299 = vector.broadcast %297 : vector<16x1xf32> to vector<16x60xf32>
    %300 = vector.broadcast %298 : vector<1x60xf32> to vector<16x60xf32>
    %301 = arith.mulf %299, %300 : vector<16x60xf32>
    %302 = arith.addf %294, %301 : vector<16x60xf32>
    %cst_94 = arith.constant 5.000000e-01 : f32
    %303 = vector.broadcast %cst_94 : f32 to vector<16x60xf32>
    %304 = arith.mulf %302, %303 : vector<16x60xf32>
    %305 = vector.extract_strided_slice %15 {offsets = [0, 768], sizes = [16, 60], strides = [1, 1]} : vector<16x896xf32> to vector<16x60xf32>
    %306 = arith.addf %304, %305 : vector<16x60xf32>
    %307 = vector.extract_strided_slice %306 {offsets = [0, 0], sizes = [16, 30], strides = [1, 1]} : vector<16x60xf32> to vector<16x30xf32>
    %308 = vector.extract_strided_slice %306 {offsets = [0, 30], sizes = [16, 30], strides = [1, 1]} : vector<16x60xf32> to vector<16x30xf32>
    %309 = arith.subf %307, %308 : vector<16x30xf32>
    %cst_95 = arith.constant 5.000000e-01 : f32
    %310 = vector.broadcast %cst_95 : f32 to vector<16x30xf32>
    %311 = arith.mulf %309, %310 : vector<16x30xf32>
    %312 = arith.mulf %311, %311 : vector<16x30xf32>
    %cst_96 = arith.constant 9.99999974E-6 : f32
    %313 = vector.broadcast %cst_96 : f32 to vector<16x30xf32>
    %314 = arith.addf %312, %313 : vector<16x30xf32>
    %315 = math.rsqrt %314 : vector<16x30xf32>
    %316 = arith.mulf %311, %315 : vector<16x30xf32>
    %317 = vector.broadcast %6 : vector<1x30xf32> to vector<16x30xf32>
    %318 = arith.mulf %316, %317 : vector<16x30xf32>
    %319 = vector.broadcast %7 : vector<1x30xf32> to vector<16x30xf32>
    %320 = arith.addf %318, %319 : vector<16x30xf32>
    %cst_97 = arith.constant 5.000000e-01 : f32
    %321 = vector.broadcast %cst_97 : f32 to vector<16x30xf32>
    %322 = arith.mulf %321, %320 : vector<16x30xf32>
    %cst_98 = arith.constant 0.707106769 : f32
    %323 = vector.broadcast %cst_98 : f32 to vector<16x30xf32>
    %324 = arith.mulf %320, %323 : vector<16x30xf32>
    %cst_99 = arith.constant 0.000000e+00 : f32
    %325 = vector.broadcast %cst_99 : f32 to vector<16x30xf32>
    %326 = arith.cmpf oge, %324, %325 : vector<16x30xf32>
    %cst_100 = arith.constant 1.000000e+00 : f32
    %cst_101 = arith.constant -1.000000e+00 : f32
    %327 = vector.broadcast %cst_100 : f32 to vector<16x30xf32>
    %328 = vector.broadcast %cst_101 : f32 to vector<16x30xf32>
    %329 = arith.select %326, %327, %328 : vector<16x30xi1>, vector<16x30xf32>
    %330 = math.absf %324 : vector<16x30xf32>
    %cst_102 = arith.constant 0.327591091 : f32
    %331 = vector.broadcast %cst_102 : f32 to vector<16x30xf32>
    %332 = arith.mulf %331, %330 : vector<16x30xf32>
    %cst_103 = arith.constant 1.000000e+00 : f32
    %333 = vector.broadcast %cst_103 : f32 to vector<16x30xf32>
    %334 = arith.addf %333, %332 : vector<16x30xf32>
    %335 = tpu.reciprocal %334 {approx = true} : vector<16x30xf32> -> vector<16x30xf32>
    %cst_104 = arith.constant 1.06140542 : f32
    %336 = vector.broadcast %cst_104 : f32 to vector<16x30xf32>
    %337 = arith.mulf %335, %336 : vector<16x30xf32>
    %cst_105 = arith.constant -1.45315206 : f32
    %338 = vector.broadcast %cst_105 : f32 to vector<16x30xf32>
    %339 = arith.addf %338, %337 : vector<16x30xf32>
    %340 = arith.mulf %335, %339 : vector<16x30xf32>
    %cst_106 = arith.constant 1.42141378 : f32
    %341 = vector.broadcast %cst_106 : f32 to vector<16x30xf32>
    %342 = arith.addf %341, %340 : vector<16x30xf32>
    %343 = arith.mulf %335, %342 : vector<16x30xf32>
    %cst_107 = arith.constant -0.284496725 : f32
    %344 = vector.broadcast %cst_107 : f32 to vector<16x30xf32>
    %345 = arith.addf %344, %343 : vector<16x30xf32>
    %346 = arith.mulf %335, %345 : vector<16x30xf32>
    %cst_108 = arith.constant 0.254829586 : f32
    %347 = vector.broadcast %cst_108 : f32 to vector<16x30xf32>
    %348 = arith.addf %347, %346 : vector<16x30xf32>
    %349 = arith.mulf %335, %348 : vector<16x30xf32>
    %cst_109 = arith.constant 0.000000e+00 : f32
    %350 = vector.broadcast %cst_109 : f32 to vector<16x30xf32>
    %351 = arith.subf %350, %330 : vector<16x30xf32>
    %352 = arith.mulf %351, %330 : vector<16x30xf32>
    %353 = math.exp %352 : vector<16x30xf32>
    %354 = arith.mulf %349, %353 : vector<16x30xf32>
    %cst_110 = arith.constant 1.000000e+00 : f32
    %355 = vector.broadcast %cst_110 : f32 to vector<16x30xf32>
    %356 = arith.subf %355, %354 : vector<16x30xf32>
    %357 = arith.mulf %329, %356 : vector<16x30xf32>
    %cst_111 = arith.constant 1.000000e+00 : f32
    %358 = vector.broadcast %cst_111 : f32 to vector<16x30xf32>
    %359 = arith.addf %358, %357 : vector<16x30xf32>
    %360 = arith.mulf %322, %359 : vector<16x30xf32>
    %c1_112 = arith.constant 1 : index
    %c0_113 = arith.constant 0 : index
    %c0_114 = arith.constant 0 : index
    %361 = vector.load %arg3[%c1_112, %c0_113, %c0_114] : memref<3x31x896xf32, #tpu.memory_space<vmem>>, vector<1x30x896xf32>
    %362 = vector.shape_cast %361 : vector<1x30x896xf32> to vector<30x896xf32>
    %cst_115 = arith.constant dense<0.000000e+00> : vector<16x896xf32>
    %363 = tpu.matmul %360, %362, %cst_115 {dimension_numbers = #tpu.dot_dimension_numbers<[1], [0], [0], [1], [0, 0, 1, 1], [], []>} : vector<16x30xf32>, vector<30x896xf32>, vector<16x896xf32> -> vector<16x896xf32>
    %c1_116 = arith.constant 1 : index
    %c30 = arith.constant 30 : index
    %c0_117 = arith.constant 0 : index
    %364 = vector.load %arg3[%c1_116, %c30, %c0_117] : memref<3x31x896xf32, #tpu.memory_space<vmem>>, vector<1x1x896xf32>
    %365 = vector.shape_cast %364 : vector<1x1x896xf32> to vector<1x896xf32>
    %366 = vector.broadcast %365 : vector<1x896xf32> to vector<16x896xf32>
    %367 = arith.addf %363, %366 : vector<16x896xf32>
    %368 = vector.extract_strided_slice %367 {offsets = [0, 0], sizes = [16, 31], strides = [1, 1]} : vector<16x896xf32> to vector<16x31xf32>
    %369 = vector.extract_strided_slice %367 {offsets = [0, 128], sizes = [16, 31], strides = [1, 1]} : vector<16x896xf32> to vector<16x31xf32>
    %370 = vector.extract_strided_slice %367 {offsets = [0, 256], sizes = [16, 8], strides = [1, 1]} : vector<16x896xf32> to vector<16x8xf32>
    %371 = vector.extract_strided_slice %367 {offsets = [0, 384], sizes = [16, 8], strides = [1, 1]} : vector<16x896xf32> to vector<16x8xf32>
    %372 = vector.extract_strided_slice %368 {offsets = [0, 0], sizes = [16, 30], strides = [1, 1]} : vector<16x31xf32> to vector<16x30xf32>
    %373 = vector.extract_strided_slice %369 {offsets = [0, 0], sizes = [16, 30], strides = [1, 1]} : vector<16x31xf32> to vector<16x30xf32>
    %374 = tpu.concatenate %372, %373 in 0 : vector<16x30xf32>, vector<16x30xf32> -> vector<32x30xf32>
    %cst_118 = arith.constant dense<0.000000e+00> : vector<32x16xf32>
    %375 = tpu.matmul %374, %360, %cst_118 {dimension_numbers = #tpu.dot_dimension_numbers<[1], [1], [0], [0], [0, 0, 1, 0], [], []>} : vector<32x30xf32>, vector<16x30xf32>, vector<32x16xf32> -> vector<32x16xf32>
    %cst_119 = arith.constant 0.000000e+00 : f32
    %376 = vector.broadcast %cst_119 : f32 to vector<16x16xf32>
    %cst_120 = arith.constant 0.000000e+00 : f32
    %377 = vector.broadcast %cst_120 : f32 to vector<16x16xf32>
    %c0_121 = arith.constant 0 : index
    %c0_122 = arith.constant 0 : index
    %c0_123 = arith.constant 0 : index
    %378 = vector.load %arg2[%c0_121, %c0_122, %c0_123] : memref<8x16x16xf32, #tpu.memory_space<vmem>>, vector<1x16x16xf32>
    %379 = vector.shape_cast %378 : vector<1x16x16xf32> to vector<16x16xf32>
    %380 = vector.extract_strided_slice %370 {offsets = [0, 0], sizes = [16, 1], strides = [1, 1]} : vector<16x8xf32> to vector<16x1xf32>
    %381 = vector.broadcast %380 : vector<16x1xf32> to vector<16x16xf32>
    %382 = arith.mulf %381, %379 : vector<16x16xf32>
    %383 = arith.addf %376, %382 : vector<16x16xf32>
    %384 = vector.extract_strided_slice %371 {offsets = [0, 0], sizes = [16, 1], strides = [1, 1]} : vector<16x8xf32> to vector<16x1xf32>
    %385 = vector.broadcast %384 : vector<16x1xf32> to vector<16x16xf32>
    %386 = arith.mulf %385, %379 : vector<16x16xf32>
    %387 = arith.addf %377, %386 : vector<16x16xf32>
    %c1_124 = arith.constant 1 : index
    %c0_125 = arith.constant 0 : index
    %c0_126 = arith.constant 0 : index
    %388 = vector.load %arg2[%c1_124, %c0_125, %c0_126] : memref<8x16x16xf32, #tpu.memory_space<vmem>>, vector<1x16x16xf32>
    %389 = vector.shape_cast %388 : vector<1x16x16xf32> to vector<16x16xf32>
    %390 = vector.extract_strided_slice %370 {offsets = [0, 1], sizes = [16, 1], strides = [1, 1]} : vector<16x8xf32> to vector<16x1xf32>
    %391 = vector.broadcast %390 : vector<16x1xf32> to vector<16x16xf32>
    %392 = arith.mulf %391, %389 : vector<16x16xf32>
    %393 = arith.addf %383, %392 : vector<16x16xf32>
    %394 = vector.extract_strided_slice %371 {offsets = [0, 1], sizes = [16, 1], strides = [1, 1]} : vector<16x8xf32> to vector<16x1xf32>
    %395 = vector.broadcast %394 : vector<16x1xf32> to vector<16x16xf32>
    %396 = arith.mulf %395, %389 : vector<16x16xf32>
    %397 = arith.addf %387, %396 : vector<16x16xf32>
    %c2_127 = arith.constant 2 : index
    %c0_128 = arith.constant 0 : index
    %c0_129 = arith.constant 0 : index
    %398 = vector.load %arg2[%c2_127, %c0_128, %c0_129] : memref<8x16x16xf32, #tpu.memory_space<vmem>>, vector<1x16x16xf32>
    %399 = vector.shape_cast %398 : vector<1x16x16xf32> to vector<16x16xf32>
    %400 = vector.extract_strided_slice %370 {offsets = [0, 2], sizes = [16, 1], strides = [1, 1]} : vector<16x8xf32> to vector<16x1xf32>
    %401 = vector.broadcast %400 : vector<16x1xf32> to vector<16x16xf32>
    %402 = arith.mulf %401, %399 : vector<16x16xf32>
    %403 = arith.addf %393, %402 : vector<16x16xf32>
    %404 = vector.extract_strided_slice %371 {offsets = [0, 2], sizes = [16, 1], strides = [1, 1]} : vector<16x8xf32> to vector<16x1xf32>
    %405 = vector.broadcast %404 : vector<16x1xf32> to vector<16x16xf32>
    %406 = arith.mulf %405, %399 : vector<16x16xf32>
    %407 = arith.addf %397, %406 : vector<16x16xf32>
    %c3_130 = arith.constant 3 : index
    %c0_131 = arith.constant 0 : index
    %c0_132 = arith.constant 0 : index
    %408 = vector.load %arg2[%c3_130, %c0_131, %c0_132] : memref<8x16x16xf32, #tpu.memory_space<vmem>>, vector<1x16x16xf32>
    %409 = vector.shape_cast %408 : vector<1x16x16xf32> to vector<16x16xf32>
    %410 = vector.extract_strided_slice %370 {offsets = [0, 3], sizes = [16, 1], strides = [1, 1]} : vector<16x8xf32> to vector<16x1xf32>
    %411 = vector.broadcast %410 : vector<16x1xf32> to vector<16x16xf32>
    %412 = arith.mulf %411, %409 : vector<16x16xf32>
    %413 = arith.addf %403, %412 : vector<16x16xf32>
    %414 = vector.extract_strided_slice %371 {offsets = [0, 3], sizes = [16, 1], strides = [1, 1]} : vector<16x8xf32> to vector<16x1xf32>
    %415 = vector.broadcast %414 : vector<16x1xf32> to vector<16x16xf32>
    %416 = arith.mulf %415, %409 : vector<16x16xf32>
    %417 = arith.addf %407, %416 : vector<16x16xf32>
    %c4_133 = arith.constant 4 : index
    %c0_134 = arith.constant 0 : index
    %c0_135 = arith.constant 0 : index
    %418 = vector.load %arg2[%c4_133, %c0_134, %c0_135] : memref<8x16x16xf32, #tpu.memory_space<vmem>>, vector<1x16x16xf32>
    %419 = vector.shape_cast %418 : vector<1x16x16xf32> to vector<16x16xf32>
    %420 = vector.extract_strided_slice %370 {offsets = [0, 4], sizes = [16, 1], strides = [1, 1]} : vector<16x8xf32> to vector<16x1xf32>
    %421 = vector.broadcast %420 : vector<16x1xf32> to vector<16x16xf32>
    %422 = arith.mulf %421, %419 : vector<16x16xf32>
    %423 = arith.addf %413, %422 : vector<16x16xf32>
    %424 = vector.extract_strided_slice %371 {offsets = [0, 4], sizes = [16, 1], strides = [1, 1]} : vector<16x8xf32> to vector<16x1xf32>
    %425 = vector.broadcast %424 : vector<16x1xf32> to vector<16x16xf32>
    %426 = arith.mulf %425, %419 : vector<16x16xf32>
    %427 = arith.addf %417, %426 : vector<16x16xf32>
    %c5_136 = arith.constant 5 : index
    %c0_137 = arith.constant 0 : index
    %c0_138 = arith.constant 0 : index
    %428 = vector.load %arg2[%c5_136, %c0_137, %c0_138] : memref<8x16x16xf32, #tpu.memory_space<vmem>>, vector<1x16x16xf32>
    %429 = vector.shape_cast %428 : vector<1x16x16xf32> to vector<16x16xf32>
    %430 = vector.extract_strided_slice %370 {offsets = [0, 5], sizes = [16, 1], strides = [1, 1]} : vector<16x8xf32> to vector<16x1xf32>
    %431 = vector.broadcast %430 : vector<16x1xf32> to vector<16x16xf32>
    %432 = arith.mulf %431, %429 : vector<16x16xf32>
    %433 = arith.addf %423, %432 : vector<16x16xf32>
    %434 = vector.extract_strided_slice %371 {offsets = [0, 5], sizes = [16, 1], strides = [1, 1]} : vector<16x8xf32> to vector<16x1xf32>
    %435 = vector.broadcast %434 : vector<16x1xf32> to vector<16x16xf32>
    %436 = arith.mulf %435, %429 : vector<16x16xf32>
    %437 = arith.addf %427, %436 : vector<16x16xf32>
    %c6_139 = arith.constant 6 : index
    %c0_140 = arith.constant 0 : index
    %c0_141 = arith.constant 0 : index
    %438 = vector.load %arg2[%c6_139, %c0_140, %c0_141] : memref<8x16x16xf32, #tpu.memory_space<vmem>>, vector<1x16x16xf32>
    %439 = vector.shape_cast %438 : vector<1x16x16xf32> to vector<16x16xf32>
    %440 = vector.extract_strided_slice %370 {offsets = [0, 6], sizes = [16, 1], strides = [1, 1]} : vector<16x8xf32> to vector<16x1xf32>
    %441 = vector.broadcast %440 : vector<16x1xf32> to vector<16x16xf32>
    %442 = arith.mulf %441, %439 : vector<16x16xf32>
    %443 = arith.addf %433, %442 : vector<16x16xf32>
    %444 = vector.extract_strided_slice %371 {offsets = [0, 6], sizes = [16, 1], strides = [1, 1]} : vector<16x8xf32> to vector<16x1xf32>
    %445 = vector.broadcast %444 : vector<16x1xf32> to vector<16x16xf32>
    %446 = arith.mulf %445, %439 : vector<16x16xf32>
    %447 = arith.addf %437, %446 : vector<16x16xf32>
    %c7_142 = arith.constant 7 : index
    %c0_143 = arith.constant 0 : index
    %c0_144 = arith.constant 0 : index
    %448 = vector.load %arg2[%c7_142, %c0_143, %c0_144] : memref<8x16x16xf32, #tpu.memory_space<vmem>>, vector<1x16x16xf32>
    %449 = vector.shape_cast %448 : vector<1x16x16xf32> to vector<16x16xf32>
    %450 = vector.extract_strided_slice %370 {offsets = [0, 7], sizes = [16, 1], strides = [1, 1]} : vector<16x8xf32> to vector<16x1xf32>
    %451 = vector.broadcast %450 : vector<16x1xf32> to vector<16x16xf32>
    %452 = arith.mulf %451, %449 : vector<16x16xf32>
    %453 = arith.addf %443, %452 : vector<16x16xf32>
    %454 = vector.extract_strided_slice %371 {offsets = [0, 7], sizes = [16, 1], strides = [1, 1]} : vector<16x8xf32> to vector<16x1xf32>
    %455 = vector.broadcast %454 : vector<16x1xf32> to vector<16x16xf32>
    %456 = arith.mulf %455, %449 : vector<16x16xf32>
    %457 = arith.addf %447, %456 : vector<16x16xf32>
    %458 = vector.extract_strided_slice %375 {offsets = [0, 0], sizes = [16, 16], strides = [1, 1]} : vector<32x16xf32> to vector<16x16xf32>
    %459 = vector.extract_strided_slice %368 {offsets = [0, 30], sizes = [16, 1], strides = [1, 1]} : vector<16x31xf32> to vector<16x1xf32>
    %460 = vector.broadcast %459 : vector<16x1xf32> to vector<16x16xf32>
    %461 = arith.addf %458, %460 : vector<16x16xf32>
    %462 = arith.addf %461, %453 : vector<16x16xf32>
    %cst_145 = arith.constant 0.182574183 : f32
    %463 = vector.broadcast %cst_145 : f32 to vector<16x16xf32>
    %464 = arith.mulf %462, %463 : vector<16x16xf32>
    %465 = arith.addf %464, %5 : vector<16x16xf32>
    %cst_146 = arith.constant dense<0xFF800000> : vector<16xf32>
    %466 = vector.multi_reduction <maximumf>, %465, %cst_146 [1] : vector<16x16xf32> to vector<16xf32>
    %467 = vector.shape_cast %466 : vector<16xf32> to vector<16x1xf32>
    %468 = vector.broadcast %467 : vector<16x1xf32> to vector<16x16xf32>
    %469 = arith.subf %465, %468 : vector<16x16xf32>
    %470 = math.exp %469 : vector<16x16xf32>
    %471 = arith.mulf %470, %0 : vector<16x16xf32>
    %cst_147 = arith.constant dense<0.000000e+00> : vector<16xf32>
    %472 = vector.multi_reduction <add>, %471, %cst_147 [1] : vector<16x16xf32> to vector<16xf32>
    %473 = vector.shape_cast %472 : vector<16xf32> to vector<16x1xf32>
    %cst_148 = arith.constant 1.000000e-30 : f32
    %474 = vector.broadcast %cst_148 : f32 to vector<16x1xf32>
    %475 = arith.maximumf %473, %474 : vector<16x1xf32>
    %476 = tpu.reciprocal %475 {approx = true} : vector<16x1xf32> -> vector<16x1xf32>
    %477 = vector.broadcast %476 : vector<16x1xf32> to vector<16x16xf32>
    %478 = arith.mulf %471, %477 : vector<16x16xf32>
    %479 = vector.extract_strided_slice %375 {offsets = [16, 0], sizes = [16, 16], strides = [1, 1]} : vector<32x16xf32> to vector<16x16xf32>
    %480 = vector.extract_strided_slice %369 {offsets = [0, 30], sizes = [16, 1], strides = [1, 1]} : vector<16x31xf32> to vector<16x1xf32>
    %481 = vector.broadcast %480 : vector<16x1xf32> to vector<16x16xf32>
    %482 = arith.addf %479, %481 : vector<16x16xf32>
    %483 = arith.addf %482, %457 : vector<16x16xf32>
    %cst_149 = arith.constant 0.182574183 : f32
    %484 = vector.broadcast %cst_149 : f32 to vector<16x16xf32>
    %485 = arith.mulf %483, %484 : vector<16x16xf32>
    %486 = arith.addf %485, %5 : vector<16x16xf32>
    %cst_150 = arith.constant dense<0xFF800000> : vector<16xf32>
    %487 = vector.multi_reduction <maximumf>, %486, %cst_150 [1] : vector<16x16xf32> to vector<16xf32>
    %488 = vector.shape_cast %487 : vector<16xf32> to vector<16x1xf32>
    %489 = vector.broadcast %488 : vector<16x1xf32> to vector<16x16xf32>
    %490 = arith.subf %486, %489 : vector<16x16xf32>
    %491 = math.exp %490 : vector<16x16xf32>
    %492 = arith.mulf %491, %0 : vector<16x16xf32>
    %cst_151 = arith.constant dense<0.000000e+00> : vector<16xf32>
    %493 = vector.multi_reduction <add>, %492, %cst_151 [1] : vector<16x16xf32> to vector<16xf32>
    %494 = vector.shape_cast %493 : vector<16xf32> to vector<16x1xf32>
    %cst_152 = arith.constant 1.000000e-30 : f32
    %495 = vector.broadcast %cst_152 : f32 to vector<16x1xf32>
    %496 = arith.maximumf %494, %495 : vector<16x1xf32>
    %497 = tpu.reciprocal %496 {approx = true} : vector<16x1xf32> -> vector<16x1xf32>
    %498 = vector.broadcast %497 : vector<16x1xf32> to vector<16x16xf32>
    %499 = arith.mulf %492, %498 : vector<16x16xf32>
    %cst_153 = arith.constant 0.000000e+00 : f32
    %500 = vector.broadcast %cst_153 : f32 to vector<16x60xf32>
    %c1_154 = arith.constant 1 : index
    %c0_155 = arith.constant 0 : index
    %c0_156 = arith.constant 0 : index
    %c0_157 = arith.constant 0 : index
    %501 = vector.load %arg4[%c1_154, %c0_155, %c0_156, %c0_157] : memref<3x2x8x60xf32, #tpu.memory_space<vmem>>, vector<1x1x8x60xf32>
    %502 = vector.shape_cast %501 : vector<1x1x8x60xf32> to vector<8x60xf32>
    %c1_158 = arith.constant 1 : index
    %c1_159 = arith.constant 1 : index
    %c0_160 = arith.constant 0 : index
    %c0_161 = arith.constant 0 : index
    %503 = vector.load %arg4[%c1_158, %c1_159, %c0_160, %c0_161] : memref<3x2x8x60xf32, #tpu.memory_space<vmem>>, vector<1x1x8x60xf32>
    %504 = vector.shape_cast %503 : vector<1x1x8x60xf32> to vector<8x60xf32>
    %505 = vector.extract_strided_slice %367 {offsets = [0, 512], sizes = [16, 60], strides = [1, 1]} : vector<16x896xf32> to vector<16x60xf32>
    %cst_162 = arith.constant dense<0.000000e+00> : vector<16x60xf32>
    %506 = tpu.matmul %478, %505, %cst_162 {dimension_numbers = #tpu.dot_dimension_numbers<[1], [0], [0], [1], [0, 0, 1, 1], [], []>} : vector<16x16xf32>, vector<16x60xf32>, vector<16x60xf32> -> vector<16x60xf32>
    %507 = arith.addf %500, %506 : vector<16x60xf32>
    %508 = vector.extract_strided_slice %367 {offsets = [0, 640], sizes = [16, 60], strides = [1, 1]} : vector<16x896xf32> to vector<16x60xf32>
    %cst_163 = arith.constant dense<0.000000e+00> : vector<16x60xf32>
    %509 = tpu.matmul %499, %508, %cst_163 {dimension_numbers = #tpu.dot_dimension_numbers<[1], [0], [0], [1], [0, 0, 1, 1], [], []>} : vector<16x16xf32>, vector<16x60xf32>, vector<16x60xf32> -> vector<16x60xf32>
    %510 = arith.addf %507, %509 : vector<16x60xf32>
    %c0_164 = arith.constant 0 : index
    %c0_165 = arith.constant 0 : index
    %c0_166 = arith.constant 0 : index
    %511 = vector.load %arg2[%c0_164, %c0_165, %c0_166] : memref<8x16x16xf32, #tpu.memory_space<vmem>>, vector<1x16x16xf32>
    %512 = vector.shape_cast %511 : vector<1x16x16xf32> to vector<16x16xf32>
    %513 = arith.mulf %478, %512 : vector<16x16xf32>
    %cst_167 = arith.constant dense<0.000000e+00> : vector<16xf32>
    %514 = vector.multi_reduction <add>, %513, %cst_167 [1] : vector<16x16xf32> to vector<16xf32>
    %515 = vector.shape_cast %514 : vector<16xf32> to vector<16x1xf32>
    %516 = vector.extract_strided_slice %502 {offsets = [0, 0], sizes = [1, 60], strides = [1, 1]} : vector<8x60xf32> to vector<1x60xf32>
    %517 = vector.broadcast %515 : vector<16x1xf32> to vector<16x60xf32>
    %518 = vector.broadcast %516 : vector<1x60xf32> to vector<16x60xf32>
    %519 = arith.mulf %517, %518 : vector<16x60xf32>
    %520 = arith.addf %510, %519 : vector<16x60xf32>
    %521 = arith.mulf %499, %512 : vector<16x16xf32>
    %cst_168 = arith.constant dense<0.000000e+00> : vector<16xf32>
    %522 = vector.multi_reduction <add>, %521, %cst_168 [1] : vector<16x16xf32> to vector<16xf32>
    %523 = vector.shape_cast %522 : vector<16xf32> to vector<16x1xf32>
    %524 = vector.extract_strided_slice %504 {offsets = [0, 0], sizes = [1, 60], strides = [1, 1]} : vector<8x60xf32> to vector<1x60xf32>
    %525 = vector.broadcast %523 : vector<16x1xf32> to vector<16x60xf32>
    %526 = vector.broadcast %524 : vector<1x60xf32> to vector<16x60xf32>
    %527 = arith.mulf %525, %526 : vector<16x60xf32>
    %528 = arith.addf %520, %527 : vector<16x60xf32>
    %c1_169 = arith.constant 1 : index
    %c0_170 = arith.constant 0 : index
    %c0_171 = arith.constant 0 : index
    %529 = vector.load %arg2[%c1_169, %c0_170, %c0_171] : memref<8x16x16xf32, #tpu.memory_space<vmem>>, vector<1x16x16xf32>
    %530 = vector.shape_cast %529 : vector<1x16x16xf32> to vector<16x16xf32>
    %531 = arith.mulf %478, %530 : vector<16x16xf32>
    %cst_172 = arith.constant dense<0.000000e+00> : vector<16xf32>
    %532 = vector.multi_reduction <add>, %531, %cst_172 [1] : vector<16x16xf32> to vector<16xf32>
    %533 = vector.shape_cast %532 : vector<16xf32> to vector<16x1xf32>
    %534 = vector.extract_strided_slice %502 {offsets = [1, 0], sizes = [1, 60], strides = [1, 1]} : vector<8x60xf32> to vector<1x60xf32>
    %535 = vector.broadcast %533 : vector<16x1xf32> to vector<16x60xf32>
    %536 = vector.broadcast %534 : vector<1x60xf32> to vector<16x60xf32>
    %537 = arith.mulf %535, %536 : vector<16x60xf32>
    %538 = arith.addf %528, %537 : vector<16x60xf32>
    %539 = arith.mulf %499, %530 : vector<16x16xf32>
    %cst_173 = arith.constant dense<0.000000e+00> : vector<16xf32>
    %540 = vector.multi_reduction <add>, %539, %cst_173 [1] : vector<16x16xf32> to vector<16xf32>
    %541 = vector.shape_cast %540 : vector<16xf32> to vector<16x1xf32>
    %542 = vector.extract_strided_slice %504 {offsets = [1, 0], sizes = [1, 60], strides = [1, 1]} : vector<8x60xf32> to vector<1x60xf32>
    %543 = vector.broadcast %541 : vector<16x1xf32> to vector<16x60xf32>
    %544 = vector.broadcast %542 : vector<1x60xf32> to vector<16x60xf32>
    %545 = arith.mulf %543, %544 : vector<16x60xf32>
    %546 = arith.addf %538, %545 : vector<16x60xf32>
    %c2_174 = arith.constant 2 : index
    %c0_175 = arith.constant 0 : index
    %c0_176 = arith.constant 0 : index
    %547 = vector.load %arg2[%c2_174, %c0_175, %c0_176] : memref<8x16x16xf32, #tpu.memory_space<vmem>>, vector<1x16x16xf32>
    %548 = vector.shape_cast %547 : vector<1x16x16xf32> to vector<16x16xf32>
    %549 = arith.mulf %478, %548 : vector<16x16xf32>
    %cst_177 = arith.constant dense<0.000000e+00> : vector<16xf32>
    %550 = vector.multi_reduction <add>, %549, %cst_177 [1] : vector<16x16xf32> to vector<16xf32>
    %551 = vector.shape_cast %550 : vector<16xf32> to vector<16x1xf32>
    %552 = vector.extract_strided_slice %502 {offsets = [2, 0], sizes = [1, 60], strides = [1, 1]} : vector<8x60xf32> to vector<1x60xf32>
    %553 = vector.broadcast %551 : vector<16x1xf32> to vector<16x60xf32>
    %554 = vector.broadcast %552 : vector<1x60xf32> to vector<16x60xf32>
    %555 = arith.mulf %553, %554 : vector<16x60xf32>
    %556 = arith.addf %546, %555 : vector<16x60xf32>
    %557 = arith.mulf %499, %548 : vector<16x16xf32>
    %cst_178 = arith.constant dense<0.000000e+00> : vector<16xf32>
    %558 = vector.multi_reduction <add>, %557, %cst_178 [1] : vector<16x16xf32> to vector<16xf32>
    %559 = vector.shape_cast %558 : vector<16xf32> to vector<16x1xf32>
    %560 = vector.extract_strided_slice %504 {offsets = [2, 0], sizes = [1, 60], strides = [1, 1]} : vector<8x60xf32> to vector<1x60xf32>
    %561 = vector.broadcast %559 : vector<16x1xf32> to vector<16x60xf32>
    %562 = vector.broadcast %560 : vector<1x60xf32> to vector<16x60xf32>
    %563 = arith.mulf %561, %562 : vector<16x60xf32>
    %564 = arith.addf %556, %563 : vector<16x60xf32>
    %c3_179 = arith.constant 3 : index
    %c0_180 = arith.constant 0 : index
    %c0_181 = arith.constant 0 : index
    %565 = vector.load %arg2[%c3_179, %c0_180, %c0_181] : memref<8x16x16xf32, #tpu.memory_space<vmem>>, vector<1x16x16xf32>
    %566 = vector.shape_cast %565 : vector<1x16x16xf32> to vector<16x16xf32>
    %567 = arith.mulf %478, %566 : vector<16x16xf32>
    %cst_182 = arith.constant dense<0.000000e+00> : vector<16xf32>
    %568 = vector.multi_reduction <add>, %567, %cst_182 [1] : vector<16x16xf32> to vector<16xf32>
    %569 = vector.shape_cast %568 : vector<16xf32> to vector<16x1xf32>
    %570 = vector.extract_strided_slice %502 {offsets = [3, 0], sizes = [1, 60], strides = [1, 1]} : vector<8x60xf32> to vector<1x60xf32>
    %571 = vector.broadcast %569 : vector<16x1xf32> to vector<16x60xf32>
    %572 = vector.broadcast %570 : vector<1x60xf32> to vector<16x60xf32>
    %573 = arith.mulf %571, %572 : vector<16x60xf32>
    %574 = arith.addf %564, %573 : vector<16x60xf32>
    %575 = arith.mulf %499, %566 : vector<16x16xf32>
    %cst_183 = arith.constant dense<0.000000e+00> : vector<16xf32>
    %576 = vector.multi_reduction <add>, %575, %cst_183 [1] : vector<16x16xf32> to vector<16xf32>
    %577 = vector.shape_cast %576 : vector<16xf32> to vector<16x1xf32>
    %578 = vector.extract_strided_slice %504 {offsets = [3, 0], sizes = [1, 60], strides = [1, 1]} : vector<8x60xf32> to vector<1x60xf32>
    %579 = vector.broadcast %577 : vector<16x1xf32> to vector<16x60xf32>
    %580 = vector.broadcast %578 : vector<1x60xf32> to vector<16x60xf32>
    %581 = arith.mulf %579, %580 : vector<16x60xf32>
    %582 = arith.addf %574, %581 : vector<16x60xf32>
    %c4_184 = arith.constant 4 : index
    %c0_185 = arith.constant 0 : index
    %c0_186 = arith.constant 0 : index
    %583 = vector.load %arg2[%c4_184, %c0_185, %c0_186] : memref<8x16x16xf32, #tpu.memory_space<vmem>>, vector<1x16x16xf32>
    %584 = vector.shape_cast %583 : vector<1x16x16xf32> to vector<16x16xf32>
    %585 = arith.mulf %478, %584 : vector<16x16xf32>
    %cst_187 = arith.constant dense<0.000000e+00> : vector<16xf32>
    %586 = vector.multi_reduction <add>, %585, %cst_187 [1] : vector<16x16xf32> to vector<16xf32>
    %587 = vector.shape_cast %586 : vector<16xf32> to vector<16x1xf32>
    %588 = vector.extract_strided_slice %502 {offsets = [4, 0], sizes = [1, 60], strides = [1, 1]} : vector<8x60xf32> to vector<1x60xf32>
    %589 = vector.broadcast %587 : vector<16x1xf32> to vector<16x60xf32>
    %590 = vector.broadcast %588 : vector<1x60xf32> to vector<16x60xf32>
    %591 = arith.mulf %589, %590 : vector<16x60xf32>
    %592 = arith.addf %582, %591 : vector<16x60xf32>
    %593 = arith.mulf %499, %584 : vector<16x16xf32>
    %cst_188 = arith.constant dense<0.000000e+00> : vector<16xf32>
    %594 = vector.multi_reduction <add>, %593, %cst_188 [1] : vector<16x16xf32> to vector<16xf32>
    %595 = vector.shape_cast %594 : vector<16xf32> to vector<16x1xf32>
    %596 = vector.extract_strided_slice %504 {offsets = [4, 0], sizes = [1, 60], strides = [1, 1]} : vector<8x60xf32> to vector<1x60xf32>
    %597 = vector.broadcast %595 : vector<16x1xf32> to vector<16x60xf32>
    %598 = vector.broadcast %596 : vector<1x60xf32> to vector<16x60xf32>
    %599 = arith.mulf %597, %598 : vector<16x60xf32>
    %600 = arith.addf %592, %599 : vector<16x60xf32>
    %c5_189 = arith.constant 5 : index
    %c0_190 = arith.constant 0 : index
    %c0_191 = arith.constant 0 : index
    %601 = vector.load %arg2[%c5_189, %c0_190, %c0_191] : memref<8x16x16xf32, #tpu.memory_space<vmem>>, vector<1x16x16xf32>
    %602 = vector.shape_cast %601 : vector<1x16x16xf32> to vector<16x16xf32>
    %603 = arith.mulf %478, %602 : vector<16x16xf32>
    %cst_192 = arith.constant dense<0.000000e+00> : vector<16xf32>
    %604 = vector.multi_reduction <add>, %603, %cst_192 [1] : vector<16x16xf32> to vector<16xf32>
    %605 = vector.shape_cast %604 : vector<16xf32> to vector<16x1xf32>
    %606 = vector.extract_strided_slice %502 {offsets = [5, 0], sizes = [1, 60], strides = [1, 1]} : vector<8x60xf32> to vector<1x60xf32>
    %607 = vector.broadcast %605 : vector<16x1xf32> to vector<16x60xf32>
    %608 = vector.broadcast %606 : vector<1x60xf32> to vector<16x60xf32>
    %609 = arith.mulf %607, %608 : vector<16x60xf32>
    %610 = arith.addf %600, %609 : vector<16x60xf32>
    %611 = arith.mulf %499, %602 : vector<16x16xf32>
    %cst_193 = arith.constant dense<0.000000e+00> : vector<16xf32>
    %612 = vector.multi_reduction <add>, %611, %cst_193 [1] : vector<16x16xf32> to vector<16xf32>
    %613 = vector.shape_cast %612 : vector<16xf32> to vector<16x1xf32>
    %614 = vector.extract_strided_slice %504 {offsets = [5, 0], sizes = [1, 60], strides = [1, 1]} : vector<8x60xf32> to vector<1x60xf32>
    %615 = vector.broadcast %613 : vector<16x1xf32> to vector<16x60xf32>
    %616 = vector.broadcast %614 : vector<1x60xf32> to vector<16x60xf32>
    %617 = arith.mulf %615, %616 : vector<16x60xf32>
    %618 = arith.addf %610, %617 : vector<16x60xf32>
    %c6_194 = arith.constant 6 : index
    %c0_195 = arith.constant 0 : index
    %c0_196 = arith.constant 0 : index
    %619 = vector.load %arg2[%c6_194, %c0_195, %c0_196] : memref<8x16x16xf32, #tpu.memory_space<vmem>>, vector<1x16x16xf32>
    %620 = vector.shape_cast %619 : vector<1x16x16xf32> to vector<16x16xf32>
    %621 = arith.mulf %478, %620 : vector<16x16xf32>
    %cst_197 = arith.constant dense<0.000000e+00> : vector<16xf32>
    %622 = vector.multi_reduction <add>, %621, %cst_197 [1] : vector<16x16xf32> to vector<16xf32>
    %623 = vector.shape_cast %622 : vector<16xf32> to vector<16x1xf32>
    %624 = vector.extract_strided_slice %502 {offsets = [6, 0], sizes = [1, 60], strides = [1, 1]} : vector<8x60xf32> to vector<1x60xf32>
    %625 = vector.broadcast %623 : vector<16x1xf32> to vector<16x60xf32>
    %626 = vector.broadcast %624 : vector<1x60xf32> to vector<16x60xf32>
    %627 = arith.mulf %625, %626 : vector<16x60xf32>
    %628 = arith.addf %618, %627 : vector<16x60xf32>
    %629 = arith.mulf %499, %620 : vector<16x16xf32>
    %cst_198 = arith.constant dense<0.000000e+00> : vector<16xf32>
    %630 = vector.multi_reduction <add>, %629, %cst_198 [1] : vector<16x16xf32> to vector<16xf32>
    %631 = vector.shape_cast %630 : vector<16xf32> to vector<16x1xf32>
    %632 = vector.extract_strided_slice %504 {offsets = [6, 0], sizes = [1, 60], strides = [1, 1]} : vector<8x60xf32> to vector<1x60xf32>
    %633 = vector.broadcast %631 : vector<16x1xf32> to vector<16x60xf32>
    %634 = vector.broadcast %632 : vector<1x60xf32> to vector<16x60xf32>
    %635 = arith.mulf %633, %634 : vector<16x60xf32>
    %636 = arith.addf %628, %635 : vector<16x60xf32>
    %c7_199 = arith.constant 7 : index
    %c0_200 = arith.constant 0 : index
    %c0_201 = arith.constant 0 : index
    %637 = vector.load %arg2[%c7_199, %c0_200, %c0_201] : memref<8x16x16xf32, #tpu.memory_space<vmem>>, vector<1x16x16xf32>
    %638 = vector.shape_cast %637 : vector<1x16x16xf32> to vector<16x16xf32>
    %639 = arith.mulf %478, %638 : vector<16x16xf32>
    %cst_202 = arith.constant dense<0.000000e+00> : vector<16xf32>
    %640 = vector.multi_reduction <add>, %639, %cst_202 [1] : vector<16x16xf32> to vector<16xf32>
    %641 = vector.shape_cast %640 : vector<16xf32> to vector<16x1xf32>
    %642 = vector.extract_strided_slice %502 {offsets = [7, 0], sizes = [1, 60], strides = [1, 1]} : vector<8x60xf32> to vector<1x60xf32>
    %643 = vector.broadcast %641 : vector<16x1xf32> to vector<16x60xf32>
    %644 = vector.broadcast %642 : vector<1x60xf32> to vector<16x60xf32>
    %645 = arith.mulf %643, %644 : vector<16x60xf32>
    %646 = arith.addf %636, %645 : vector<16x60xf32>
    %647 = arith.mulf %499, %638 : vector<16x16xf32>
    %cst_203 = arith.constant dense<0.000000e+00> : vector<16xf32>
    %648 = vector.multi_reduction <add>, %647, %cst_203 [1] : vector<16x16xf32> to vector<16xf32>
    %649 = vector.shape_cast %648 : vector<16xf32> to vector<16x1xf32>
    %650 = vector.extract_strided_slice %504 {offsets = [7, 0], sizes = [1, 60], strides = [1, 1]} : vector<8x60xf32> to vector<1x60xf32>
    %651 = vector.broadcast %649 : vector<16x1xf32> to vector<16x60xf32>
    %652 = vector.broadcast %650 : vector<1x60xf32> to vector<16x60xf32>
    %653 = arith.mulf %651, %652 : vector<16x60xf32>
    %654 = arith.addf %646, %653 : vector<16x60xf32>
    %cst_204 = arith.constant 5.000000e-01 : f32
    %655 = vector.broadcast %cst_204 : f32 to vector<16x60xf32>
    %656 = arith.mulf %654, %655 : vector<16x60xf32>
    %657 = vector.extract_strided_slice %367 {offsets = [0, 768], sizes = [16, 60], strides = [1, 1]} : vector<16x896xf32> to vector<16x60xf32>
    %658 = arith.addf %656, %657 : vector<16x60xf32>
    %659 = vector.extract_strided_slice %658 {offsets = [0, 0], sizes = [16, 30], strides = [1, 1]} : vector<16x60xf32> to vector<16x30xf32>
    %660 = vector.extract_strided_slice %658 {offsets = [0, 30], sizes = [16, 30], strides = [1, 1]} : vector<16x60xf32> to vector<16x30xf32>
    %661 = arith.subf %659, %660 : vector<16x30xf32>
    %cst_205 = arith.constant 5.000000e-01 : f32
    %662 = vector.broadcast %cst_205 : f32 to vector<16x30xf32>
    %663 = arith.mulf %661, %662 : vector<16x30xf32>
    %664 = arith.mulf %663, %663 : vector<16x30xf32>
    %cst_206 = arith.constant 9.99999974E-6 : f32
    %665 = vector.broadcast %cst_206 : f32 to vector<16x30xf32>
    %666 = arith.addf %664, %665 : vector<16x30xf32>
    %667 = math.rsqrt %666 : vector<16x30xf32>
    %668 = arith.mulf %663, %667 : vector<16x30xf32>
    %669 = vector.broadcast %6 : vector<1x30xf32> to vector<16x30xf32>
    %670 = arith.mulf %668, %669 : vector<16x30xf32>
    %671 = vector.broadcast %7 : vector<1x30xf32> to vector<16x30xf32>
    %672 = arith.addf %670, %671 : vector<16x30xf32>
    %cst_207 = arith.constant 5.000000e-01 : f32
    %673 = vector.broadcast %cst_207 : f32 to vector<16x30xf32>
    %674 = arith.mulf %673, %672 : vector<16x30xf32>
    %cst_208 = arith.constant 0.707106769 : f32
    %675 = vector.broadcast %cst_208 : f32 to vector<16x30xf32>
    %676 = arith.mulf %672, %675 : vector<16x30xf32>
    %cst_209 = arith.constant 0.000000e+00 : f32
    %677 = vector.broadcast %cst_209 : f32 to vector<16x30xf32>
    %678 = arith.cmpf oge, %676, %677 : vector<16x30xf32>
    %cst_210 = arith.constant 1.000000e+00 : f32
    %cst_211 = arith.constant -1.000000e+00 : f32
    %679 = vector.broadcast %cst_210 : f32 to vector<16x30xf32>
    %680 = vector.broadcast %cst_211 : f32 to vector<16x30xf32>
    %681 = arith.select %678, %679, %680 : vector<16x30xi1>, vector<16x30xf32>
    %682 = math.absf %676 : vector<16x30xf32>
    %cst_212 = arith.constant 0.327591091 : f32
    %683 = vector.broadcast %cst_212 : f32 to vector<16x30xf32>
    %684 = arith.mulf %683, %682 : vector<16x30xf32>
    %cst_213 = arith.constant 1.000000e+00 : f32
    %685 = vector.broadcast %cst_213 : f32 to vector<16x30xf32>
    %686 = arith.addf %685, %684 : vector<16x30xf32>
    %687 = tpu.reciprocal %686 {approx = true} : vector<16x30xf32> -> vector<16x30xf32>
    %cst_214 = arith.constant 1.06140542 : f32
    %688 = vector.broadcast %cst_214 : f32 to vector<16x30xf32>
    %689 = arith.mulf %687, %688 : vector<16x30xf32>
    %cst_215 = arith.constant -1.45315206 : f32
    %690 = vector.broadcast %cst_215 : f32 to vector<16x30xf32>
    %691 = arith.addf %690, %689 : vector<16x30xf32>
    %692 = arith.mulf %687, %691 : vector<16x30xf32>
    %cst_216 = arith.constant 1.42141378 : f32
    %693 = vector.broadcast %cst_216 : f32 to vector<16x30xf32>
    %694 = arith.addf %693, %692 : vector<16x30xf32>
    %695 = arith.mulf %687, %694 : vector<16x30xf32>
    %cst_217 = arith.constant -0.284496725 : f32
    %696 = vector.broadcast %cst_217 : f32 to vector<16x30xf32>
    %697 = arith.addf %696, %695 : vector<16x30xf32>
    %698 = arith.mulf %687, %697 : vector<16x30xf32>
    %cst_218 = arith.constant 0.254829586 : f32
    %699 = vector.broadcast %cst_218 : f32 to vector<16x30xf32>
    %700 = arith.addf %699, %698 : vector<16x30xf32>
    %701 = arith.mulf %687, %700 : vector<16x30xf32>
    %cst_219 = arith.constant 0.000000e+00 : f32
    %702 = vector.broadcast %cst_219 : f32 to vector<16x30xf32>
    %703 = arith.subf %702, %682 : vector<16x30xf32>
    %704 = arith.mulf %703, %682 : vector<16x30xf32>
    %705 = math.exp %704 : vector<16x30xf32>
    %706 = arith.mulf %701, %705 : vector<16x30xf32>
    %cst_220 = arith.constant 1.000000e+00 : f32
    %707 = vector.broadcast %cst_220 : f32 to vector<16x30xf32>
    %708 = arith.subf %707, %706 : vector<16x30xf32>
    %709 = arith.mulf %681, %708 : vector<16x30xf32>
    %cst_221 = arith.constant 1.000000e+00 : f32
    %710 = vector.broadcast %cst_221 : f32 to vector<16x30xf32>
    %711 = arith.addf %710, %709 : vector<16x30xf32>
    %712 = arith.mulf %674, %711 : vector<16x30xf32>
    %c2_222 = arith.constant 2 : index
    %c0_223 = arith.constant 0 : index
    %c0_224 = arith.constant 0 : index
    %713 = vector.load %arg3[%c2_222, %c0_223, %c0_224] : memref<3x31x896xf32, #tpu.memory_space<vmem>>, vector<1x30x896xf32>
    %714 = vector.shape_cast %713 : vector<1x30x896xf32> to vector<30x896xf32>
    %cst_225 = arith.constant dense<0.000000e+00> : vector<16x896xf32>
    %715 = tpu.matmul %712, %714, %cst_225 {dimension_numbers = #tpu.dot_dimension_numbers<[1], [0], [0], [1], [0, 0, 1, 1], [], []>} : vector<16x30xf32>, vector<30x896xf32>, vector<16x896xf32> -> vector<16x896xf32>
    %c2_226 = arith.constant 2 : index
    %c30_227 = arith.constant 30 : index
    %c0_228 = arith.constant 0 : index
    %716 = vector.load %arg3[%c2_226, %c30_227, %c0_228] : memref<3x31x896xf32, #tpu.memory_space<vmem>>, vector<1x1x896xf32>
    %717 = vector.shape_cast %716 : vector<1x1x896xf32> to vector<1x896xf32>
    %718 = vector.broadcast %717 : vector<1x896xf32> to vector<16x896xf32>
    %719 = arith.addf %715, %718 : vector<16x896xf32>
    %720 = vector.extract_strided_slice %719 {offsets = [0, 0], sizes = [16, 31], strides = [1, 1]} : vector<16x896xf32> to vector<16x31xf32>
    %721 = vector.extract_strided_slice %719 {offsets = [0, 128], sizes = [16, 31], strides = [1, 1]} : vector<16x896xf32> to vector<16x31xf32>
    %722 = vector.extract_strided_slice %719 {offsets = [0, 256], sizes = [16, 8], strides = [1, 1]} : vector<16x896xf32> to vector<16x8xf32>
    %723 = vector.extract_strided_slice %719 {offsets = [0, 384], sizes = [16, 8], strides = [1, 1]} : vector<16x896xf32> to vector<16x8xf32>
    %724 = vector.extract_strided_slice %720 {offsets = [0, 0], sizes = [16, 30], strides = [1, 1]} : vector<16x31xf32> to vector<16x30xf32>
    %725 = vector.extract_strided_slice %721 {offsets = [0, 0], sizes = [16, 30], strides = [1, 1]} : vector<16x31xf32> to vector<16x30xf32>
    %726 = tpu.concatenate %724, %725 in 0 : vector<16x30xf32>, vector<16x30xf32> -> vector<32x30xf32>
    %cst_229 = arith.constant dense<0.000000e+00> : vector<32x16xf32>
    %727 = tpu.matmul %726, %712, %cst_229 {dimension_numbers = #tpu.dot_dimension_numbers<[1], [1], [0], [0], [0, 0, 1, 0], [], []>} : vector<32x30xf32>, vector<16x30xf32>, vector<32x16xf32> -> vector<32x16xf32>
    %cst_230 = arith.constant 0.000000e+00 : f32
    %728 = vector.broadcast %cst_230 : f32 to vector<16x16xf32>
    %cst_231 = arith.constant 0.000000e+00 : f32
    %729 = vector.broadcast %cst_231 : f32 to vector<16x16xf32>
    %c0_232 = arith.constant 0 : index
    %c0_233 = arith.constant 0 : index
    %c0_234 = arith.constant 0 : index
    %730 = vector.load %arg2[%c0_232, %c0_233, %c0_234] : memref<8x16x16xf32, #tpu.memory_space<vmem>>, vector<1x16x16xf32>
    %731 = vector.shape_cast %730 : vector<1x16x16xf32> to vector<16x16xf32>
    %732 = vector.extract_strided_slice %722 {offsets = [0, 0], sizes = [16, 1], strides = [1, 1]} : vector<16x8xf32> to vector<16x1xf32>
    %733 = vector.broadcast %732 : vector<16x1xf32> to vector<16x16xf32>
    %734 = arith.mulf %733, %731 : vector<16x16xf32>
    %735 = arith.addf %728, %734 : vector<16x16xf32>
    %736 = vector.extract_strided_slice %723 {offsets = [0, 0], sizes = [16, 1], strides = [1, 1]} : vector<16x8xf32> to vector<16x1xf32>
    %737 = vector.broadcast %736 : vector<16x1xf32> to vector<16x16xf32>
    %738 = arith.mulf %737, %731 : vector<16x16xf32>
    %739 = arith.addf %729, %738 : vector<16x16xf32>
    %c1_235 = arith.constant 1 : index
    %c0_236 = arith.constant 0 : index
    %c0_237 = arith.constant 0 : index
    %740 = vector.load %arg2[%c1_235, %c0_236, %c0_237] : memref<8x16x16xf32, #tpu.memory_space<vmem>>, vector<1x16x16xf32>
    %741 = vector.shape_cast %740 : vector<1x16x16xf32> to vector<16x16xf32>
    %742 = vector.extract_strided_slice %722 {offsets = [0, 1], sizes = [16, 1], strides = [1, 1]} : vector<16x8xf32> to vector<16x1xf32>
    %743 = vector.broadcast %742 : vector<16x1xf32> to vector<16x16xf32>
    %744 = arith.mulf %743, %741 : vector<16x16xf32>
    %745 = arith.addf %735, %744 : vector<16x16xf32>
    %746 = vector.extract_strided_slice %723 {offsets = [0, 1], sizes = [16, 1], strides = [1, 1]} : vector<16x8xf32> to vector<16x1xf32>
    %747 = vector.broadcast %746 : vector<16x1xf32> to vector<16x16xf32>
    %748 = arith.mulf %747, %741 : vector<16x16xf32>
    %749 = arith.addf %739, %748 : vector<16x16xf32>
    %c2_238 = arith.constant 2 : index
    %c0_239 = arith.constant 0 : index
    %c0_240 = arith.constant 0 : index
    %750 = vector.load %arg2[%c2_238, %c0_239, %c0_240] : memref<8x16x16xf32, #tpu.memory_space<vmem>>, vector<1x16x16xf32>
    %751 = vector.shape_cast %750 : vector<1x16x16xf32> to vector<16x16xf32>
    %752 = vector.extract_strided_slice %722 {offsets = [0, 2], sizes = [16, 1], strides = [1, 1]} : vector<16x8xf32> to vector<16x1xf32>
    %753 = vector.broadcast %752 : vector<16x1xf32> to vector<16x16xf32>
    %754 = arith.mulf %753, %751 : vector<16x16xf32>
    %755 = arith.addf %745, %754 : vector<16x16xf32>
    %756 = vector.extract_strided_slice %723 {offsets = [0, 2], sizes = [16, 1], strides = [1, 1]} : vector<16x8xf32> to vector<16x1xf32>
    %757 = vector.broadcast %756 : vector<16x1xf32> to vector<16x16xf32>
    %758 = arith.mulf %757, %751 : vector<16x16xf32>
    %759 = arith.addf %749, %758 : vector<16x16xf32>
    %c3_241 = arith.constant 3 : index
    %c0_242 = arith.constant 0 : index
    %c0_243 = arith.constant 0 : index
    %760 = vector.load %arg2[%c3_241, %c0_242, %c0_243] : memref<8x16x16xf32, #tpu.memory_space<vmem>>, vector<1x16x16xf32>
    %761 = vector.shape_cast %760 : vector<1x16x16xf32> to vector<16x16xf32>
    %762 = vector.extract_strided_slice %722 {offsets = [0, 3], sizes = [16, 1], strides = [1, 1]} : vector<16x8xf32> to vector<16x1xf32>
    %763 = vector.broadcast %762 : vector<16x1xf32> to vector<16x16xf32>
    %764 = arith.mulf %763, %761 : vector<16x16xf32>
    %765 = arith.addf %755, %764 : vector<16x16xf32>
    %766 = vector.extract_strided_slice %723 {offsets = [0, 3], sizes = [16, 1], strides = [1, 1]} : vector<16x8xf32> to vector<16x1xf32>
    %767 = vector.broadcast %766 : vector<16x1xf32> to vector<16x16xf32>
    %768 = arith.mulf %767, %761 : vector<16x16xf32>
    %769 = arith.addf %759, %768 : vector<16x16xf32>
    %c4_244 = arith.constant 4 : index
    %c0_245 = arith.constant 0 : index
    %c0_246 = arith.constant 0 : index
    %770 = vector.load %arg2[%c4_244, %c0_245, %c0_246] : memref<8x16x16xf32, #tpu.memory_space<vmem>>, vector<1x16x16xf32>
    %771 = vector.shape_cast %770 : vector<1x16x16xf32> to vector<16x16xf32>
    %772 = vector.extract_strided_slice %722 {offsets = [0, 4], sizes = [16, 1], strides = [1, 1]} : vector<16x8xf32> to vector<16x1xf32>
    %773 = vector.broadcast %772 : vector<16x1xf32> to vector<16x16xf32>
    %774 = arith.mulf %773, %771 : vector<16x16xf32>
    %775 = arith.addf %765, %774 : vector<16x16xf32>
    %776 = vector.extract_strided_slice %723 {offsets = [0, 4], sizes = [16, 1], strides = [1, 1]} : vector<16x8xf32> to vector<16x1xf32>
    %777 = vector.broadcast %776 : vector<16x1xf32> to vector<16x16xf32>
    %778 = arith.mulf %777, %771 : vector<16x16xf32>
    %779 = arith.addf %769, %778 : vector<16x16xf32>
    %c5_247 = arith.constant 5 : index
    %c0_248 = arith.constant 0 : index
    %c0_249 = arith.constant 0 : index
    %780 = vector.load %arg2[%c5_247, %c0_248, %c0_249] : memref<8x16x16xf32, #tpu.memory_space<vmem>>, vector<1x16x16xf32>
    %781 = vector.shape_cast %780 : vector<1x16x16xf32> to vector<16x16xf32>
    %782 = vector.extract_strided_slice %722 {offsets = [0, 5], sizes = [16, 1], strides = [1, 1]} : vector<16x8xf32> to vector<16x1xf32>
    %783 = vector.broadcast %782 : vector<16x1xf32> to vector<16x16xf32>
    %784 = arith.mulf %783, %781 : vector<16x16xf32>
    %785 = arith.addf %775, %784 : vector<16x16xf32>
    %786 = vector.extract_strided_slice %723 {offsets = [0, 5], sizes = [16, 1], strides = [1, 1]} : vector<16x8xf32> to vector<16x1xf32>
    %787 = vector.broadcast %786 : vector<16x1xf32> to vector<16x16xf32>
    %788 = arith.mulf %787, %781 : vector<16x16xf32>
    %789 = arith.addf %779, %788 : vector<16x16xf32>
    %c6_250 = arith.constant 6 : index
    %c0_251 = arith.constant 0 : index
    %c0_252 = arith.constant 0 : index
    %790 = vector.load %arg2[%c6_250, %c0_251, %c0_252] : memref<8x16x16xf32, #tpu.memory_space<vmem>>, vector<1x16x16xf32>
    %791 = vector.shape_cast %790 : vector<1x16x16xf32> to vector<16x16xf32>
    %792 = vector.extract_strided_slice %722 {offsets = [0, 6], sizes = [16, 1], strides = [1, 1]} : vector<16x8xf32> to vector<16x1xf32>
    %793 = vector.broadcast %792 : vector<16x1xf32> to vector<16x16xf32>
    %794 = arith.mulf %793, %791 : vector<16x16xf32>
    %795 = arith.addf %785, %794 : vector<16x16xf32>
    %796 = vector.extract_strided_slice %723 {offsets = [0, 6], sizes = [16, 1], strides = [1, 1]} : vector<16x8xf32> to vector<16x1xf32>
    %797 = vector.broadcast %796 : vector<16x1xf32> to vector<16x16xf32>
    %798 = arith.mulf %797, %791 : vector<16x16xf32>
    %799 = arith.addf %789, %798 : vector<16x16xf32>
    %c7_253 = arith.constant 7 : index
    %c0_254 = arith.constant 0 : index
    %c0_255 = arith.constant 0 : index
    %800 = vector.load %arg2[%c7_253, %c0_254, %c0_255] : memref<8x16x16xf32, #tpu.memory_space<vmem>>, vector<1x16x16xf32>
    %801 = vector.shape_cast %800 : vector<1x16x16xf32> to vector<16x16xf32>
    %802 = vector.extract_strided_slice %722 {offsets = [0, 7], sizes = [16, 1], strides = [1, 1]} : vector<16x8xf32> to vector<16x1xf32>
    %803 = vector.broadcast %802 : vector<16x1xf32> to vector<16x16xf32>
    %804 = arith.mulf %803, %801 : vector<16x16xf32>
    %805 = arith.addf %795, %804 : vector<16x16xf32>
    %806 = vector.extract_strided_slice %723 {offsets = [0, 7], sizes = [16, 1], strides = [1, 1]} : vector<16x8xf32> to vector<16x1xf32>
    %807 = vector.broadcast %806 : vector<16x1xf32> to vector<16x16xf32>
    %808 = arith.mulf %807, %801 : vector<16x16xf32>
    %809 = arith.addf %799, %808 : vector<16x16xf32>
    %810 = vector.extract_strided_slice %727 {offsets = [0, 0], sizes = [16, 16], strides = [1, 1]} : vector<32x16xf32> to vector<16x16xf32>
    %811 = vector.extract_strided_slice %720 {offsets = [0, 30], sizes = [16, 1], strides = [1, 1]} : vector<16x31xf32> to vector<16x1xf32>
    %812 = vector.broadcast %811 : vector<16x1xf32> to vector<16x16xf32>
    %813 = arith.addf %810, %812 : vector<16x16xf32>
    %814 = arith.addf %813, %805 : vector<16x16xf32>
    %cst_256 = arith.constant 0.182574183 : f32
    %815 = vector.broadcast %cst_256 : f32 to vector<16x16xf32>
    %816 = arith.mulf %814, %815 : vector<16x16xf32>
    %817 = arith.addf %816, %5 : vector<16x16xf32>
    %cst_257 = arith.constant dense<0xFF800000> : vector<16xf32>
    %818 = vector.multi_reduction <maximumf>, %817, %cst_257 [1] : vector<16x16xf32> to vector<16xf32>
    %819 = vector.shape_cast %818 : vector<16xf32> to vector<16x1xf32>
    %820 = vector.broadcast %819 : vector<16x1xf32> to vector<16x16xf32>
    %821 = arith.subf %817, %820 : vector<16x16xf32>
    %822 = math.exp %821 : vector<16x16xf32>
    %823 = arith.mulf %822, %0 : vector<16x16xf32>
    %cst_258 = arith.constant dense<0.000000e+00> : vector<16xf32>
    %824 = vector.multi_reduction <add>, %823, %cst_258 [1] : vector<16x16xf32> to vector<16xf32>
    %825 = vector.shape_cast %824 : vector<16xf32> to vector<16x1xf32>
    %cst_259 = arith.constant 1.000000e-30 : f32
    %826 = vector.broadcast %cst_259 : f32 to vector<16x1xf32>
    %827 = arith.maximumf %825, %826 : vector<16x1xf32>
    %828 = tpu.reciprocal %827 {approx = true} : vector<16x1xf32> -> vector<16x1xf32>
    %829 = vector.broadcast %828 : vector<16x1xf32> to vector<16x16xf32>
    %830 = arith.mulf %823, %829 : vector<16x16xf32>
    %831 = vector.extract_strided_slice %727 {offsets = [16, 0], sizes = [16, 16], strides = [1, 1]} : vector<32x16xf32> to vector<16x16xf32>
    %832 = vector.extract_strided_slice %721 {offsets = [0, 30], sizes = [16, 1], strides = [1, 1]} : vector<16x31xf32> to vector<16x1xf32>
    %833 = vector.broadcast %832 : vector<16x1xf32> to vector<16x16xf32>
    %834 = arith.addf %831, %833 : vector<16x16xf32>
    %835 = arith.addf %834, %809 : vector<16x16xf32>
    %cst_260 = arith.constant 0.182574183 : f32
    %836 = vector.broadcast %cst_260 : f32 to vector<16x16xf32>
    %837 = arith.mulf %835, %836 : vector<16x16xf32>
    %838 = arith.addf %837, %5 : vector<16x16xf32>
    %cst_261 = arith.constant dense<0xFF800000> : vector<16xf32>
    %839 = vector.multi_reduction <maximumf>, %838, %cst_261 [1] : vector<16x16xf32> to vector<16xf32>
    %840 = vector.shape_cast %839 : vector<16xf32> to vector<16x1xf32>
    %841 = vector.broadcast %840 : vector<16x1xf32> to vector<16x16xf32>
    %842 = arith.subf %838, %841 : vector<16x16xf32>
    %843 = math.exp %842 : vector<16x16xf32>
    %844 = arith.mulf %843, %0 : vector<16x16xf32>
    %cst_262 = arith.constant dense<0.000000e+00> : vector<16xf32>
    %845 = vector.multi_reduction <add>, %844, %cst_262 [1] : vector<16x16xf32> to vector<16xf32>
    %846 = vector.shape_cast %845 : vector<16xf32> to vector<16x1xf32>
    %cst_263 = arith.constant 1.000000e-30 : f32
    %847 = vector.broadcast %cst_263 : f32 to vector<16x1xf32>
    %848 = arith.maximumf %846, %847 : vector<16x1xf32>
    %849 = tpu.reciprocal %848 {approx = true} : vector<16x1xf32> -> vector<16x1xf32>
    %850 = vector.broadcast %849 : vector<16x1xf32> to vector<16x16xf32>
    %851 = arith.mulf %844, %850 : vector<16x16xf32>
    %cst_264 = arith.constant 0.000000e+00 : f32
    %852 = vector.broadcast %cst_264 : f32 to vector<16x60xf32>
    %c2_265 = arith.constant 2 : index
    %c0_266 = arith.constant 0 : index
    %c0_267 = arith.constant 0 : index
    %c0_268 = arith.constant 0 : index
    %853 = vector.load %arg4[%c2_265, %c0_266, %c0_267, %c0_268] : memref<3x2x8x60xf32, #tpu.memory_space<vmem>>, vector<1x1x8x60xf32>
    %854 = vector.shape_cast %853 : vector<1x1x8x60xf32> to vector<8x60xf32>
    %c2_269 = arith.constant 2 : index
    %c1_270 = arith.constant 1 : index
    %c0_271 = arith.constant 0 : index
    %c0_272 = arith.constant 0 : index
    %855 = vector.load %arg4[%c2_269, %c1_270, %c0_271, %c0_272] : memref<3x2x8x60xf32, #tpu.memory_space<vmem>>, vector<1x1x8x60xf32>
    %856 = vector.shape_cast %855 : vector<1x1x8x60xf32> to vector<8x60xf32>
    %857 = vector.extract_strided_slice %719 {offsets = [0, 512], sizes = [16, 60], strides = [1, 1]} : vector<16x896xf32> to vector<16x60xf32>
    %cst_273 = arith.constant dense<0.000000e+00> : vector<16x60xf32>
    %858 = tpu.matmul %830, %857, %cst_273 {dimension_numbers = #tpu.dot_dimension_numbers<[1], [0], [0], [1], [0, 0, 1, 1], [], []>} : vector<16x16xf32>, vector<16x60xf32>, vector<16x60xf32> -> vector<16x60xf32>
    %859 = arith.addf %852, %858 : vector<16x60xf32>
    %860 = vector.extract_strided_slice %719 {offsets = [0, 640], sizes = [16, 60], strides = [1, 1]} : vector<16x896xf32> to vector<16x60xf32>
    %cst_274 = arith.constant dense<0.000000e+00> : vector<16x60xf32>
    %861 = tpu.matmul %851, %860, %cst_274 {dimension_numbers = #tpu.dot_dimension_numbers<[1], [0], [0], [1], [0, 0, 1, 1], [], []>} : vector<16x16xf32>, vector<16x60xf32>, vector<16x60xf32> -> vector<16x60xf32>
    %862 = arith.addf %859, %861 : vector<16x60xf32>
    %c0_275 = arith.constant 0 : index
    %c0_276 = arith.constant 0 : index
    %c0_277 = arith.constant 0 : index
    %863 = vector.load %arg2[%c0_275, %c0_276, %c0_277] : memref<8x16x16xf32, #tpu.memory_space<vmem>>, vector<1x16x16xf32>
    %864 = vector.shape_cast %863 : vector<1x16x16xf32> to vector<16x16xf32>
    %865 = arith.mulf %830, %864 : vector<16x16xf32>
    %cst_278 = arith.constant dense<0.000000e+00> : vector<16xf32>
    %866 = vector.multi_reduction <add>, %865, %cst_278 [1] : vector<16x16xf32> to vector<16xf32>
    %867 = vector.shape_cast %866 : vector<16xf32> to vector<16x1xf32>
    %868 = vector.extract_strided_slice %854 {offsets = [0, 0], sizes = [1, 60], strides = [1, 1]} : vector<8x60xf32> to vector<1x60xf32>
    %869 = vector.broadcast %867 : vector<16x1xf32> to vector<16x60xf32>
    %870 = vector.broadcast %868 : vector<1x60xf32> to vector<16x60xf32>
    %871 = arith.mulf %869, %870 : vector<16x60xf32>
    %872 = arith.addf %862, %871 : vector<16x60xf32>
    %873 = arith.mulf %851, %864 : vector<16x16xf32>
    %cst_279 = arith.constant dense<0.000000e+00> : vector<16xf32>
    %874 = vector.multi_reduction <add>, %873, %cst_279 [1] : vector<16x16xf32> to vector<16xf32>
    %875 = vector.shape_cast %874 : vector<16xf32> to vector<16x1xf32>
    %876 = vector.extract_strided_slice %856 {offsets = [0, 0], sizes = [1, 60], strides = [1, 1]} : vector<8x60xf32> to vector<1x60xf32>
    %877 = vector.broadcast %875 : vector<16x1xf32> to vector<16x60xf32>
    %878 = vector.broadcast %876 : vector<1x60xf32> to vector<16x60xf32>
    %879 = arith.mulf %877, %878 : vector<16x60xf32>
    %880 = arith.addf %872, %879 : vector<16x60xf32>
    %c1_280 = arith.constant 1 : index
    %c0_281 = arith.constant 0 : index
    %c0_282 = arith.constant 0 : index
    %881 = vector.load %arg2[%c1_280, %c0_281, %c0_282] : memref<8x16x16xf32, #tpu.memory_space<vmem>>, vector<1x16x16xf32>
    %882 = vector.shape_cast %881 : vector<1x16x16xf32> to vector<16x16xf32>
    %883 = arith.mulf %830, %882 : vector<16x16xf32>
    %cst_283 = arith.constant dense<0.000000e+00> : vector<16xf32>
    %884 = vector.multi_reduction <add>, %883, %cst_283 [1] : vector<16x16xf32> to vector<16xf32>
    %885 = vector.shape_cast %884 : vector<16xf32> to vector<16x1xf32>
    %886 = vector.extract_strided_slice %854 {offsets = [1, 0], sizes = [1, 60], strides = [1, 1]} : vector<8x60xf32> to vector<1x60xf32>
    %887 = vector.broadcast %885 : vector<16x1xf32> to vector<16x60xf32>
    %888 = vector.broadcast %886 : vector<1x60xf32> to vector<16x60xf32>
    %889 = arith.mulf %887, %888 : vector<16x60xf32>
    %890 = arith.addf %880, %889 : vector<16x60xf32>
    %891 = arith.mulf %851, %882 : vector<16x16xf32>
    %cst_284 = arith.constant dense<0.000000e+00> : vector<16xf32>
    %892 = vector.multi_reduction <add>, %891, %cst_284 [1] : vector<16x16xf32> to vector<16xf32>
    %893 = vector.shape_cast %892 : vector<16xf32> to vector<16x1xf32>
    %894 = vector.extract_strided_slice %856 {offsets = [1, 0], sizes = [1, 60], strides = [1, 1]} : vector<8x60xf32> to vector<1x60xf32>
    %895 = vector.broadcast %893 : vector<16x1xf32> to vector<16x60xf32>
    %896 = vector.broadcast %894 : vector<1x60xf32> to vector<16x60xf32>
    %897 = arith.mulf %895, %896 : vector<16x60xf32>
    %898 = arith.addf %890, %897 : vector<16x60xf32>
    %c2_285 = arith.constant 2 : index
    %c0_286 = arith.constant 0 : index
    %c0_287 = arith.constant 0 : index
    %899 = vector.load %arg2[%c2_285, %c0_286, %c0_287] : memref<8x16x16xf32, #tpu.memory_space<vmem>>, vector<1x16x16xf32>
    %900 = vector.shape_cast %899 : vector<1x16x16xf32> to vector<16x16xf32>
    %901 = arith.mulf %830, %900 : vector<16x16xf32>
    %cst_288 = arith.constant dense<0.000000e+00> : vector<16xf32>
    %902 = vector.multi_reduction <add>, %901, %cst_288 [1] : vector<16x16xf32> to vector<16xf32>
    %903 = vector.shape_cast %902 : vector<16xf32> to vector<16x1xf32>
    %904 = vector.extract_strided_slice %854 {offsets = [2, 0], sizes = [1, 60], strides = [1, 1]} : vector<8x60xf32> to vector<1x60xf32>
    %905 = vector.broadcast %903 : vector<16x1xf32> to vector<16x60xf32>
    %906 = vector.broadcast %904 : vector<1x60xf32> to vector<16x60xf32>
    %907 = arith.mulf %905, %906 : vector<16x60xf32>
    %908 = arith.addf %898, %907 : vector<16x60xf32>
    %909 = arith.mulf %851, %900 : vector<16x16xf32>
    %cst_289 = arith.constant dense<0.000000e+00> : vector<16xf32>
    %910 = vector.multi_reduction <add>, %909, %cst_289 [1] : vector<16x16xf32> to vector<16xf32>
    %911 = vector.shape_cast %910 : vector<16xf32> to vector<16x1xf32>
    %912 = vector.extract_strided_slice %856 {offsets = [2, 0], sizes = [1, 60], strides = [1, 1]} : vector<8x60xf32> to vector<1x60xf32>
    %913 = vector.broadcast %911 : vector<16x1xf32> to vector<16x60xf32>
    %914 = vector.broadcast %912 : vector<1x60xf32> to vector<16x60xf32>
    %915 = arith.mulf %913, %914 : vector<16x60xf32>
    %916 = arith.addf %908, %915 : vector<16x60xf32>
    %c3_290 = arith.constant 3 : index
    %c0_291 = arith.constant 0 : index
    %c0_292 = arith.constant 0 : index
    %917 = vector.load %arg2[%c3_290, %c0_291, %c0_292] : memref<8x16x16xf32, #tpu.memory_space<vmem>>, vector<1x16x16xf32>
    %918 = vector.shape_cast %917 : vector<1x16x16xf32> to vector<16x16xf32>
    %919 = arith.mulf %830, %918 : vector<16x16xf32>
    %cst_293 = arith.constant dense<0.000000e+00> : vector<16xf32>
    %920 = vector.multi_reduction <add>, %919, %cst_293 [1] : vector<16x16xf32> to vector<16xf32>
    %921 = vector.shape_cast %920 : vector<16xf32> to vector<16x1xf32>
    %922 = vector.extract_strided_slice %854 {offsets = [3, 0], sizes = [1, 60], strides = [1, 1]} : vector<8x60xf32> to vector<1x60xf32>
    %923 = vector.broadcast %921 : vector<16x1xf32> to vector<16x60xf32>
    %924 = vector.broadcast %922 : vector<1x60xf32> to vector<16x60xf32>
    %925 = arith.mulf %923, %924 : vector<16x60xf32>
    %926 = arith.addf %916, %925 : vector<16x60xf32>
    %927 = arith.mulf %851, %918 : vector<16x16xf32>
    %cst_294 = arith.constant dense<0.000000e+00> : vector<16xf32>
    %928 = vector.multi_reduction <add>, %927, %cst_294 [1] : vector<16x16xf32> to vector<16xf32>
    %929 = vector.shape_cast %928 : vector<16xf32> to vector<16x1xf32>
    %930 = vector.extract_strided_slice %856 {offsets = [3, 0], sizes = [1, 60], strides = [1, 1]} : vector<8x60xf32> to vector<1x60xf32>
    %931 = vector.broadcast %929 : vector<16x1xf32> to vector<16x60xf32>
    %932 = vector.broadcast %930 : vector<1x60xf32> to vector<16x60xf32>
    %933 = arith.mulf %931, %932 : vector<16x60xf32>
    %934 = arith.addf %926, %933 : vector<16x60xf32>
    %c4_295 = arith.constant 4 : index
    %c0_296 = arith.constant 0 : index
    %c0_297 = arith.constant 0 : index
    %935 = vector.load %arg2[%c4_295, %c0_296, %c0_297] : memref<8x16x16xf32, #tpu.memory_space<vmem>>, vector<1x16x16xf32>
    %936 = vector.shape_cast %935 : vector<1x16x16xf32> to vector<16x16xf32>
    %937 = arith.mulf %830, %936 : vector<16x16xf32>
    %cst_298 = arith.constant dense<0.000000e+00> : vector<16xf32>
    %938 = vector.multi_reduction <add>, %937, %cst_298 [1] : vector<16x16xf32> to vector<16xf32>
    %939 = vector.shape_cast %938 : vector<16xf32> to vector<16x1xf32>
    %940 = vector.extract_strided_slice %854 {offsets = [4, 0], sizes = [1, 60], strides = [1, 1]} : vector<8x60xf32> to vector<1x60xf32>
    %941 = vector.broadcast %939 : vector<16x1xf32> to vector<16x60xf32>
    %942 = vector.broadcast %940 : vector<1x60xf32> to vector<16x60xf32>
    %943 = arith.mulf %941, %942 : vector<16x60xf32>
    %944 = arith.addf %934, %943 : vector<16x60xf32>
    %945 = arith.mulf %851, %936 : vector<16x16xf32>
    %cst_299 = arith.constant dense<0.000000e+00> : vector<16xf32>
    %946 = vector.multi_reduction <add>, %945, %cst_299 [1] : vector<16x16xf32> to vector<16xf32>
    %947 = vector.shape_cast %946 : vector<16xf32> to vector<16x1xf32>
    %948 = vector.extract_strided_slice %856 {offsets = [4, 0], sizes = [1, 60], strides = [1, 1]} : vector<8x60xf32> to vector<1x60xf32>
    %949 = vector.broadcast %947 : vector<16x1xf32> to vector<16x60xf32>
    %950 = vector.broadcast %948 : vector<1x60xf32> to vector<16x60xf32>
    %951 = arith.mulf %949, %950 : vector<16x60xf32>
    %952 = arith.addf %944, %951 : vector<16x60xf32>
    %c5_300 = arith.constant 5 : index
    %c0_301 = arith.constant 0 : index
    %c0_302 = arith.constant 0 : index
    %953 = vector.load %arg2[%c5_300, %c0_301, %c0_302] : memref<8x16x16xf32, #tpu.memory_space<vmem>>, vector<1x16x16xf32>
    %954 = vector.shape_cast %953 : vector<1x16x16xf32> to vector<16x16xf32>
    %955 = arith.mulf %830, %954 : vector<16x16xf32>
    %cst_303 = arith.constant dense<0.000000e+00> : vector<16xf32>
    %956 = vector.multi_reduction <add>, %955, %cst_303 [1] : vector<16x16xf32> to vector<16xf32>
    %957 = vector.shape_cast %956 : vector<16xf32> to vector<16x1xf32>
    %958 = vector.extract_strided_slice %854 {offsets = [5, 0], sizes = [1, 60], strides = [1, 1]} : vector<8x60xf32> to vector<1x60xf32>
    %959 = vector.broadcast %957 : vector<16x1xf32> to vector<16x60xf32>
    %960 = vector.broadcast %958 : vector<1x60xf32> to vector<16x60xf32>
    %961 = arith.mulf %959, %960 : vector<16x60xf32>
    %962 = arith.addf %952, %961 : vector<16x60xf32>
    %963 = arith.mulf %851, %954 : vector<16x16xf32>
    %cst_304 = arith.constant dense<0.000000e+00> : vector<16xf32>
    %964 = vector.multi_reduction <add>, %963, %cst_304 [1] : vector<16x16xf32> to vector<16xf32>
    %965 = vector.shape_cast %964 : vector<16xf32> to vector<16x1xf32>
    %966 = vector.extract_strided_slice %856 {offsets = [5, 0], sizes = [1, 60], strides = [1, 1]} : vector<8x60xf32> to vector<1x60xf32>
    %967 = vector.broadcast %965 : vector<16x1xf32> to vector<16x60xf32>
    %968 = vector.broadcast %966 : vector<1x60xf32> to vector<16x60xf32>
    %969 = arith.mulf %967, %968 : vector<16x60xf32>
    %970 = arith.addf %962, %969 : vector<16x60xf32>
    %c6_305 = arith.constant 6 : index
    %c0_306 = arith.constant 0 : index
    %c0_307 = arith.constant 0 : index
    %971 = vector.load %arg2[%c6_305, %c0_306, %c0_307] : memref<8x16x16xf32, #tpu.memory_space<vmem>>, vector<1x16x16xf32>
    %972 = vector.shape_cast %971 : vector<1x16x16xf32> to vector<16x16xf32>
    %973 = arith.mulf %830, %972 : vector<16x16xf32>
    %cst_308 = arith.constant dense<0.000000e+00> : vector<16xf32>
    %974 = vector.multi_reduction <add>, %973, %cst_308 [1] : vector<16x16xf32> to vector<16xf32>
    %975 = vector.shape_cast %974 : vector<16xf32> to vector<16x1xf32>
    %976 = vector.extract_strided_slice %854 {offsets = [6, 0], sizes = [1, 60], strides = [1, 1]} : vector<8x60xf32> to vector<1x60xf32>
    %977 = vector.broadcast %975 : vector<16x1xf32> to vector<16x60xf32>
    %978 = vector.broadcast %976 : vector<1x60xf32> to vector<16x60xf32>
    %979 = arith.mulf %977, %978 : vector<16x60xf32>
    %980 = arith.addf %970, %979 : vector<16x60xf32>
    %981 = arith.mulf %851, %972 : vector<16x16xf32>
    %cst_309 = arith.constant dense<0.000000e+00> : vector<16xf32>
    %982 = vector.multi_reduction <add>, %981, %cst_309 [1] : vector<16x16xf32> to vector<16xf32>
    %983 = vector.shape_cast %982 : vector<16xf32> to vector<16x1xf32>
    %984 = vector.extract_strided_slice %856 {offsets = [6, 0], sizes = [1, 60], strides = [1, 1]} : vector<8x60xf32> to vector<1x60xf32>
    %985 = vector.broadcast %983 : vector<16x1xf32> to vector<16x60xf32>
    %986 = vector.broadcast %984 : vector<1x60xf32> to vector<16x60xf32>
    %987 = arith.mulf %985, %986 : vector<16x60xf32>
    %988 = arith.addf %980, %987 : vector<16x60xf32>
    %c7_310 = arith.constant 7 : index
    %c0_311 = arith.constant 0 : index
    %c0_312 = arith.constant 0 : index
    %989 = vector.load %arg2[%c7_310, %c0_311, %c0_312] : memref<8x16x16xf32, #tpu.memory_space<vmem>>, vector<1x16x16xf32>
    %990 = vector.shape_cast %989 : vector<1x16x16xf32> to vector<16x16xf32>
    %991 = arith.mulf %830, %990 : vector<16x16xf32>
    %cst_313 = arith.constant dense<0.000000e+00> : vector<16xf32>
    %992 = vector.multi_reduction <add>, %991, %cst_313 [1] : vector<16x16xf32> to vector<16xf32>
    %993 = vector.shape_cast %992 : vector<16xf32> to vector<16x1xf32>
    %994 = vector.extract_strided_slice %854 {offsets = [7, 0], sizes = [1, 60], strides = [1, 1]} : vector<8x60xf32> to vector<1x60xf32>
    %995 = vector.broadcast %993 : vector<16x1xf32> to vector<16x60xf32>
    %996 = vector.broadcast %994 : vector<1x60xf32> to vector<16x60xf32>
    %997 = arith.mulf %995, %996 : vector<16x60xf32>
    %998 = arith.addf %988, %997 : vector<16x60xf32>
    %999 = arith.mulf %851, %990 : vector<16x16xf32>
    %cst_314 = arith.constant dense<0.000000e+00> : vector<16xf32>
    %1000 = vector.multi_reduction <add>, %999, %cst_314 [1] : vector<16x16xf32> to vector<16xf32>
    %1001 = vector.shape_cast %1000 : vector<16xf32> to vector<16x1xf32>
    %1002 = vector.extract_strided_slice %856 {offsets = [7, 0], sizes = [1, 60], strides = [1, 1]} : vector<8x60xf32> to vector<1x60xf32>
    %1003 = vector.broadcast %1001 : vector<16x1xf32> to vector<16x60xf32>
    %1004 = vector.broadcast %1002 : vector<1x60xf32> to vector<16x60xf32>
    %1005 = arith.mulf %1003, %1004 : vector<16x60xf32>
    %1006 = arith.addf %998, %1005 : vector<16x60xf32>
    %cst_315 = arith.constant 5.000000e-01 : f32
    %1007 = vector.broadcast %cst_315 : f32 to vector<16x60xf32>
    %1008 = arith.mulf %1006, %1007 : vector<16x60xf32>
    %1009 = vector.extract_strided_slice %719 {offsets = [0, 768], sizes = [16, 60], strides = [1, 1]} : vector<16x896xf32> to vector<16x60xf32>
    %1010 = arith.addf %1008, %1009 : vector<16x60xf32>
    %1011 = vector.extract_strided_slice %1010 {offsets = [0, 0], sizes = [16, 30], strides = [1, 1]} : vector<16x60xf32> to vector<16x30xf32>
    %1012 = vector.extract_strided_slice %1010 {offsets = [0, 30], sizes = [16, 30], strides = [1, 1]} : vector<16x60xf32> to vector<16x30xf32>
    %1013 = arith.subf %1011, %1012 : vector<16x30xf32>
    %cst_316 = arith.constant 5.000000e-01 : f32
    %1014 = vector.broadcast %cst_316 : f32 to vector<16x30xf32>
    %1015 = arith.mulf %1013, %1014 : vector<16x30xf32>
    %1016 = arith.mulf %1015, %1015 : vector<16x30xf32>
    %cst_317 = arith.constant 9.99999974E-6 : f32
    %1017 = vector.broadcast %cst_317 : f32 to vector<16x30xf32>
    %1018 = arith.addf %1016, %1017 : vector<16x30xf32>
    %1019 = math.rsqrt %1018 : vector<16x30xf32>
    %1020 = arith.mulf %1015, %1019 : vector<16x30xf32>
    %1021 = vector.broadcast %6 : vector<1x30xf32> to vector<16x30xf32>
    %1022 = arith.mulf %1020, %1021 : vector<16x30xf32>
    %1023 = vector.broadcast %7 : vector<1x30xf32> to vector<16x30xf32>
    %1024 = arith.addf %1022, %1023 : vector<16x30xf32>
    %cst_318 = arith.constant 5.000000e-01 : f32
    %1025 = vector.broadcast %cst_318 : f32 to vector<16x30xf32>
    %1026 = arith.mulf %1025, %1024 : vector<16x30xf32>
    %cst_319 = arith.constant 0.707106769 : f32
    %1027 = vector.broadcast %cst_319 : f32 to vector<16x30xf32>
    %1028 = arith.mulf %1024, %1027 : vector<16x30xf32>
    %cst_320 = arith.constant 0.000000e+00 : f32
    %1029 = vector.broadcast %cst_320 : f32 to vector<16x30xf32>
    %1030 = arith.cmpf oge, %1028, %1029 : vector<16x30xf32>
    %cst_321 = arith.constant 1.000000e+00 : f32
    %cst_322 = arith.constant -1.000000e+00 : f32
    %1031 = vector.broadcast %cst_321 : f32 to vector<16x30xf32>
    %1032 = vector.broadcast %cst_322 : f32 to vector<16x30xf32>
    %1033 = arith.select %1030, %1031, %1032 : vector<16x30xi1>, vector<16x30xf32>
    %1034 = math.absf %1028 : vector<16x30xf32>
    %cst_323 = arith.constant 0.327591091 : f32
    %1035 = vector.broadcast %cst_323 : f32 to vector<16x30xf32>
    %1036 = arith.mulf %1035, %1034 : vector<16x30xf32>
    %cst_324 = arith.constant 1.000000e+00 : f32
    %1037 = vector.broadcast %cst_324 : f32 to vector<16x30xf32>
    %1038 = arith.addf %1037, %1036 : vector<16x30xf32>
    %1039 = tpu.reciprocal %1038 {approx = true} : vector<16x30xf32> -> vector<16x30xf32>
    %cst_325 = arith.constant 1.06140542 : f32
    %1040 = vector.broadcast %cst_325 : f32 to vector<16x30xf32>
    %1041 = arith.mulf %1039, %1040 : vector<16x30xf32>
    %cst_326 = arith.constant -1.45315206 : f32
    %1042 = vector.broadcast %cst_326 : f32 to vector<16x30xf32>
    %1043 = arith.addf %1042, %1041 : vector<16x30xf32>
    %1044 = arith.mulf %1039, %1043 : vector<16x30xf32>
    %cst_327 = arith.constant 1.42141378 : f32
    %1045 = vector.broadcast %cst_327 : f32 to vector<16x30xf32>
    %1046 = arith.addf %1045, %1044 : vector<16x30xf32>
    %1047 = arith.mulf %1039, %1046 : vector<16x30xf32>
    %cst_328 = arith.constant -0.284496725 : f32
    %1048 = vector.broadcast %cst_328 : f32 to vector<16x30xf32>
    %1049 = arith.addf %1048, %1047 : vector<16x30xf32>
    %1050 = arith.mulf %1039, %1049 : vector<16x30xf32>
    %cst_329 = arith.constant 0.254829586 : f32
    %1051 = vector.broadcast %cst_329 : f32 to vector<16x30xf32>
    %1052 = arith.addf %1051, %1050 : vector<16x30xf32>
    %1053 = arith.mulf %1039, %1052 : vector<16x30xf32>
    %cst_330 = arith.constant 0.000000e+00 : f32
    %1054 = vector.broadcast %cst_330 : f32 to vector<16x30xf32>
    %1055 = arith.subf %1054, %1034 : vector<16x30xf32>
    %1056 = arith.mulf %1055, %1034 : vector<16x30xf32>
    %1057 = math.exp %1056 : vector<16x30xf32>
    %1058 = arith.mulf %1053, %1057 : vector<16x30xf32>
    %cst_331 = arith.constant 1.000000e+00 : f32
    %1059 = vector.broadcast %cst_331 : f32 to vector<16x30xf32>
    %1060 = arith.subf %1059, %1058 : vector<16x30xf32>
    %1061 = arith.mulf %1033, %1060 : vector<16x30xf32>
    %cst_332 = arith.constant 1.000000e+00 : f32
    %1062 = vector.broadcast %cst_332 : f32 to vector<16x30xf32>
    %1063 = arith.addf %1062, %1061 : vector<16x30xf32>
    %1064 = arith.mulf %1026, %1063 : vector<16x30xf32>
    %c0_333 = arith.constant 0 : index
    %c0_334 = arith.constant 0 : index
    %1065 = vector.load %arg6[%c0_333, %c0_334] : memref<16x30xf32, #tpu.memory_space<vmem>>, vector<16x30xf32>
    tpu.vector_store %arg6[%c0_333, %c0_334], %1064 {strides = array<i32>} : memref<16x30xf32, #tpu.memory_space<vmem>>, vector<16x30xf32>,
    return
  }
}

</mosaic_0001>

<bundles_post_ra>
// kernel: tpu_custom_call.1
= control target key start
LH: loop header
LB: loop body
LE: loop exit
PB: predicated region body
PF: predicated region fallthrough
CT: control target
= control target key end

     0   :  { %11 = vsyncpa [#allocation3], 0  ;;  %s6102_s0 = inlined_call_operand.hbm [shape: f32[16,16], index: 0, kind: input, shape index: {}]   ;;  %s6103_s1 = inlined_call_operand.hbm [shape: f32[16,16], index: 1, kind: input, shape index: {}]   ;;  %s6104_s2 = inlined_call_operand.hbm [shape: f32[8,16,16], index: 2, kind: input, shape index: {}]   ;;  %s6105_s3 = inlined_call_operand.hbm [shape: f32[3,31,896], index: 3, kind: input, shape index: {}]   ;;  %s6106_s4 = inlined_call_operand.hbm [shape: f32[3,2,8,60], index: 4, kind: input, shape index: {}]   ;;  %s6107_s5 = inlined_call_operand.vmem [shape: f32[2,30], index: 5, kind: input, shape index: {}]   ;;  %s6108_s6 = inlined_call_operand.hbm [shape: f32[16,30], index: 6, kind: output, shape index: {}]  }
   0x1   :  { %12 = vsyncpa [#allocation6], 0 }
   0x2   :  { %13 = vsyncpa [#allocation9], 0 }
   0x3   :  { %14 = vsyncpa [#allocation4], 0  ;;  %s4729_s21 = smov [#allocation5]   ;;  %s4730_s23 = smov [#allocation8]  }
   0x4   :  { %s32_s22 = sshll.u32 %s4729_s21, 4  ;;  %s56_s24 = sshll.u32 %s4730_s23, 4  ;;  %s33_s22 = int_to_ptr.vmem [resolvable:$true] %s32_s22  ;;  %s4789_s24 = int_to_ptr.vmem [resolvable:$true] %s56_s24 }
   0x5   :  { %s4589_s27 = scalar_lea.hbm %s6103_s1, 256 }
   0x6   :  { %p4590_p0 = scmp.ne.s32.totalorder %s6103_s1, %s4589_s27  ;;  %p4593_p1 = scmp.lt.u32.totalorder %s4589_s27, %s6103_s1 }
   0x8   :  { %p4595_p2 = pnand %p4593_p1, %p4590_p0 }
   0xa   :  { %4598 = shalt.err (!%p4595_p2)
}
   0xb   :  { %s4599_s8 = scalar_lea.vmem %s33_s22, 256  ;;  %p4604_p4 = scmp.lt.s32.totalorder %s33_s22, %s33_s22 }
   0xc   :  { %p4600_p3 = scmp.ne.s32.totalorder %s33_s22, %s4599_s8  ;;  %p4605_p5 = scmp.lt.s32.totalorder %s4599_s8, %s4599_s8 }
   0xe   :  { %p4606_p6 = por %p4605_p5, %p4604_p4 }
  0x10   :  { %p4607_p7 = pnand %p4606_p6, %p4600_p3 }
  0x12   :  { %4610 = shalt.err (!%p4607_p7)
}
  0x13   :  { %s4731_s9 = smov 128   ;;  %s4732_s10 = smov 8  }
  0x14   :  { %38 = dma.hbm_to_vmem [thread:$0]  %s6103_s1, 256, %s33_s22, [#allocation6], %s4731_s9, %s4731_s9, %s4732_s10  }
  0x15   :  { %s4611_s15 = scalar_lea.hbm %s6105_s3, 10752 }
  0x16   :  { %p4612_p8 = scmp.ne.s32.totalorder %s6105_s3, %s4611_s15  ;;  %p4615_p9 = scmp.lt.u32.totalorder %s4611_s15, %s6105_s3 }
  0x18   :  { %p4617_p10 = pnand %p4615_p9, %p4612_p8 }
  0x1a   :  { %4620 = shalt.err (!%p4617_p10)
}
  0x1b   :  { %s4621_s20 = scalar_lea.vmem %s4789_s24, 10752  ;;  %p4626_p12 = scmp.lt.s32.totalorder %s4789_s24, %s4789_s24 }
  0x1c   :  { %p4622_p11 = scmp.ne.s32.totalorder %s4789_s24, %s4621_s20  ;;  %p4627_p13 = scmp.lt.s32.totalorder %s4621_s20, %s4621_s20 }
  0x1e   :  { %p4628_p0 = por %p4627_p13, %p4626_p12 }
  0x20   :  { %p4629_p1 = pnand %p4628_p0, %p4622_p11 }
  0x22   :  { %4632 = shalt.err (!%p4629_p1)
}
  0x23   :  { %s4733_s1 = smov 896   ;;  %s4734_s21 = smov 56  }
  0x24   :  { %62 = dma.hbm_to_vmem [thread:$0]  %s6105_s3, 10752, %s4789_s24, [#allocation9], %s4733_s1, %s4733_s1, %s4734_s21  }
  0x25   :  { %s4735_s25 = smov [#allocation2]   ;;  %s4736_s27 = smov [#allocation7]  }
  0x26   :  { %s20_s26 = sshll.u32 %s4735_s25, 4  ;;  %s44_s28 = sshll.u32 %s4736_s27, 4  ;;  %s21_s26 = int_to_ptr.vmem [resolvable:$true] %s20_s26  ;;  %s4823_s28 = int_to_ptr.vmem [resolvable:$true] %s44_s28 }
  0x27   :  { %s4633_s7 = scalar_lea.hbm %s6102_s0, 256 }
  0x28   :  { %p4634_p2 = scmp.ne.s32.totalorder %s6102_s0, %s4633_s7  ;;  %p4637_p3 = scmp.lt.u32.totalorder %s4633_s7, %s6102_s0 }
  0x2a   :  { %p4639_p4 = pnand %p4637_p3, %p4634_p2 }
  0x2c   :  { %4642 = shalt.err (!%p4639_p4)
}
  0x2d   :  { %s4643_s3 = scalar_lea.vmem %s21_s26, 256  ;;  %p4648_p6 = scmp.lt.s32.totalorder %s21_s26, %s21_s26 }
  0x2e   :  { %p4644_p5 = scmp.ne.s32.totalorder %s21_s26, %s4643_s3  ;;  %p4649_p7 = scmp.lt.s32.totalorder %s4643_s3, %s4643_s3 }
  0x30   :  { %p4650_p8 = por %p4649_p7, %p4648_p6 }
  0x32   :  { %p4651_p9 = pnand %p4650_p8, %p4644_p5 }
  0x34   :  { %4654 = shalt.err (!%p4651_p9)
}
  0x35   :  { %26 = dma.hbm_to_vmem [thread:$0]  %s6102_s0, 256, %s21_s26, [#allocation3], %s4731_s9, %s4731_s9, %s4732_s10  }
  0x36   :  { %s4655_s17 = scalar_lea.hbm %s6104_s2, 2048 }
  0x37   :  { %p4656_p10 = scmp.ne.s32.totalorder %s6104_s2, %s4655_s17  ;;  %p4659_p11 = scmp.lt.u32.totalorder %s4655_s17, %s6104_s2 }
  0x39   :  { %p4661_p12 = pnand %p4659_p11, %p4656_p10 }
  0x3b   :  { %4664 = shalt.err (!%p4661_p12)
}
  0x3c   :  { %s4665_s21 = scalar_lea.vmem %s4823_s28, 2048  ;;  %p4670_p0 = scmp.lt.s32.totalorder %s4823_s28, %s4823_s28 }
  0x3d   :  { %p4666_p13 = scmp.ne.s32.totalorder %s4823_s28, %s4665_s21  ;;  %p4671_p1 = scmp.lt.s32.totalorder %s4665_s21, %s4665_s21 }
  0x3f   :  { %p4672_p2 = por %p4671_p1, %p4670_p0 }
  0x41   :  { %p4673_p3 = pnand %p4672_p2, %p4666_p13 }
  0x43   :  { %4676 = shalt.err (!%p4673_p3)
}
  0x44   :  { %50 = dma.hbm_to_vmem [thread:$0]  %s6104_s2, 2048, %s4823_s28, [#allocation6], %s4731_s9, %s4731_s9, %s4732_s10  }
  0x45   :  { %s4737_s23 = smov [#allocation10]   ;;  %s4677_s29 = scalar_lea.hbm %s6106_s4, 768 }
  0x46   :  { %s68_s25 = sshll.u32 %s4737_s23, 4  ;;  %p4678_p4 = scmp.ne.s32.totalorder %s6106_s4, %s4677_s29  ;;  %s69_s25 = int_to_ptr.vmem [resolvable:$true] %s68_s25 }
  0x47   :  { %p4681_p5 = scmp.lt.u32.totalorder %s4677_s29, %s6106_s4 }
  0x49   :  { %p4683_p6 = pnand %p4681_p5, %p4678_p4 }
  0x4b   :  { %4686 = shalt.err (!%p4683_p6)
}
  0x4c   :  { %s4687_s12 = scalar_lea.vmem %s69_s25, 768  ;;  %p4692_p8 = scmp.lt.s32.totalorder %s69_s25, %s69_s25 }
  0x4d   :  { %p4688_p7 = scmp.ne.s32.totalorder %s69_s25, %s4687_s12  ;;  %p4693_p9 = scmp.lt.s32.totalorder %s4687_s12, %s4687_s12 }
  0x4f   :  { %p4694_p10 = por %p4693_p9, %p4692_p8 }
  0x51   :  { %p4695_p11 = pnand %p4694_p10, %p4688_p7 }
  0x53   :  { %4698 = shalt.err (!%p4695_p11)
}
  0x54   :  { %74 = dma.hbm_to_vmem [thread:$0]  %s6106_s4, 768, %s69_s25, [#allocation9], %s4731_s9, %s4731_s9, %s4732_s10  }
  0x55   :  { %4721 = dma.done.wait [#allocation3], 256  }
  0x56   :  { %4722 = vsyncadd [#allocation3], 4294967040 }
  0x57   :  { %4723 = dma.done.wait [#allocation6], 2304  }
  0x58   :  { %4724 = vsyncadd [#allocation6], 4294964992 }
  0x59   :  { %4725 = dma.done.wait [#allocation9], 11520  }
  0x5a   :  { %4726 = vsyncadd [#allocation9], 4294955776  ;;  %v6129_v0 = vmov 0.0   ;;  %v103_v1 = vld [vmem:[#allocation8 + $0x8] sm:$0xff]  ;;  %v110_v2 = vld [vmem:[#allocation8 + $0x40] sm:$0xff]  ;;  %vm156_vm0 = vcmask 130048   ;;  %v121_v24 = vlaneseq }
  0x5b   :  { %227 = vmatprep.mubr.f32.mxu0 %v6129_v0  ;;  %304 = vmatprep.mubr.f32.mxu1 %v6129_v0  ;;  %v105_v3 = vld [vmem:[#allocation8 + $0x18] sm:$0xff]  ;;  %v4194_v4 = vpack.c.bf16 %v110_v2, %v103_v1  ;;  %v112_v5 = vld [vmem:[#allocation8 + $0x50] sm:$0xff]  ;;  %v102_v6 = vld [vmem:[#allocation8] sm:$0xff]  ;;  %v6113_v22 = vmov 1   ;;  %v6111_v23 = vmov 0   ;;  %v6123_v48 = vmov 2  }
  0x5c   :  { %v109_v7 = vld [vmem:[#allocation8 + $0x38] sm:$0xff]  ;;  %v4198_v8 = vpack.c.bf16 %v112_v5, %v105_v3  ;;  %v104_v10 = vld [vmem:[#allocation8 + $0x10] sm:$0xff]  ;;  %v111_v11 = vld [vmem:[#allocation8 + $0x48] sm:$0xff]  ;;  %4364 = vset.pattern.permute.xlu0 %v6113_v22  ;;  %4363 = vset.pattern.permute.xlu1 %v6111_v23  ;;  %v4898_v25 = vshrl.u32 %v121_v24, 7  ;;  %v6125_v49 = vmov 3   ;;  %v6115_v52 = vmov 5  }
  0x5d   :  { %v4196_v9 = vpack.c.bf16 %v109_v7, %v102_v6  ;;  %4195 = vmatprep.subr.bf16.mxu0 %v4194_v4  ;;  %v4200_v12 = vpack.c.bf16 %v111_v11, %v104_v10  ;;  %v107_v13 = vld [vmem:[#allocation8 + $0x28] sm:$0xff]  ;;  %v114_v14 = vld [vmem:[#allocation8 + $0x60] sm:$0xff]  ;;  %v113_v18 = vld [vmem:[#allocation8 + $0x58] sm:$0xff]  ;;  %v6121_v53 = vmov 4   ;;  %v6119_v55 = vmov 6   ;;  %s4749_s4 = smov 98  }
  0x5e   :  { %4199 = vmatprep.subr.bf16.mxu1 %v4198_v8  ;;  %v100_v15 = vld [vmem:[#allocation2] sm:$0xff]  ;;  %v4202_v16 = vpack.c.bf16 %v114_v14, %v107_v13  ;;  %v4877_v19 = vld [vmem:[#allocation2 + $0x8] sm:$0xff]  ;;  %vm4211_vm1 = vmpackc.low %vm156_vm0, %vm156_vm0  ;;  %v4901_v28 = vsub.s32 0, %v4898_v25  ;;  %v4906_v30 = vsub.s32 2, %v4898_v25  ;;  %v4913_v33 = vsub.s32 1, %v4898_v25 }
  0x5f   :  { %4197 = vmatpush1.bf16.msra.mxu0 %v4196_v9  ;;  %v106_v17 = vld [vmem:[#allocation8 + $0x20] sm:$0xff]  ;;  %4201 = vmatpush1.bf16.msra.mxu1 %v4200_v12  ;;  %v4210_v21 = vpack.c.bf16 %v4877_v19, %v100_v15  ;;  %v4934_v50 = vsub.s32 3, %v4898_v25  ;;  %v4746_v56 = vmov 16   ;;  %v6109_v58 = vmov 7   ;;  %v108_v1 = vld [vmem:[#allocation8 + $0x30] sm:$0xff]  ;;  %v115_v2 = vld [vmem:[#allocation8 + $0x68] sm:$0xff] }
  0x60   :  { %v4204_v20 = vpack.c.bf16 %v113_v18, %v106_v17  ;;  %4203 = vmatprep.subr.bf16.mxu0 %v4202_v16  ;;  %v117_v26 = vld [vmem:[#allocation8 + $0x70] ss:$8 sm:$0xf]  ;;  %v4984_v61 = vsub.s32 5, %v4898_v25  ;;  %v4987_v62 = vsub.s32 4, %v4898_v25  ;;  %v4206_v5 = vpack.c.bf16 %v115_v2, %v108_v1 }
  0x61   :  { %v118_v27 = vld [vmem:[#allocation8 + $0x70] ss:$8 sm:$0xf0]  ;;  %vm1454_vm4 = vcmask 1045504   ;;  %vm4750_vm5 = vmmov 1   ;;  %vm1447_vm9 = vcmask 244736  }
  0x62   :  { %3965 = vmatmul.mubr.msk.f32.vlgmr.msra.gmra.mrb[0].mxu0 %vm156_vm0, %v100_v15  ;;  %3967 = vmatmul.mubr.msk.f32.vlgmr.msra.gmra.mrb[0].mxu1 %vm156_vm0, %v100_v15  ;;  %v4903_v29 = vor.u32 %v118_v27, %v117_v26  ;;  %vm5298_vm6 = vmpackc.low %vm1454_vm4, %vm4750_vm5 }
  0x63   :  { %233 = vmatprep.mubr.f32.mxu0 %v6129_v0  ;;  %310 = vmatprep.mubr.f32.mxu1 %v6129_v0  ;;  %vm5336_vm10 = vmpackc.low %vm1447_vm9, %vm1447_vm9 }
  0x64   :  { %4205 = vmatpush1.bf16.msra.mxu0 %v4204_v20  ;;  %v124_v31 = vrot.slane %v4903_v29, %v4901_v28  ;;  %v132_v32 = vrot.slane %v4903_v29, %v4906_v30  ;;  %v128_v40 = vrot.slane %v4903_v29, %v4913_v33  ;;  %v136_v51 = vrot.slane %v4903_v29, %v4934_v50 }
  0x65   :  { %4212 = vmatprep.subr.msk.bf16.mxu0 %vm4211_vm1, %v4210_v21  ;;  %v144_v3 = vrot.slane %v4903_v29, %v4984_v61  ;;  %v140_v6 = vrot.slane %v4903_v29, %v4987_v62  ;;  %4207 = vmatprep.subr.bf16.mxu1 %v4206_v5 }
  0x66   :  { %3966 = vmatmul.mubr.msk.f32.gmra.mrb[2].mxu0 %vm156_vm0, %v4877_v19  ;;  %3968 = vmatmul.mubr.msk.f32.gmra.mrb[2].mxu1 %vm156_vm0, %v4877_v19 }
  0x67   :  { %381 = vmatprep.mubr.f32.mxu0 %v6129_v0  ;;  %4097 = vmatprep.mubr.msk.f32.mxu1 %vm156_vm0, %v100_v15 }
  0x68   :  { %4209 = vmatpush3.bf16.msra.mxu1 %v4206_v5 }
  0x6a   :  { %3969 = vmatmul.mubr.msk.f32.vlgmr.msra.gmra.mrb[4].mxu0 %vm156_vm0, %v100_v15 }
  0x6b   :  { %387 = vmatprep.mubr.f32.mxu0 %v6129_v0  ;;  %4098 = vmatmul.mubr.msk.f32.vlgmr.msra.gmra.mrb[4].mxu1 %vm156_vm0, %v4877_v19 }
  0x6d   :  { %4215 = vmatpush3.bf16.xpose.msk.msra.mxu0 %vm4211_vm1, %v4210_v21 }
  0x6e   :  { %3970 = vmatmul.mubr.msk.f32.gmra.mrb[6].mxu0 %vm156_vm0, %v4877_v19 }
 0x135   :  { %v229_v34 = vpop.f32.mrb[0].mxu0  ;;  %v306_v35 = vpop.f32.mrb[0].mxu1 }
 0x136   :  { %v4915_v36 = vadd.f32 %v229_v34, %v124_v31  ;;  %v231_v37 = vpop.f32.mrb[1].mxu0  ;;  %v4917_v38 = vadd.f32 %v306_v35, %v132_v32  ;;  %v308_v39 = vpop.f32.mrb[1].mxu1 }
 0x137   :  { %v232_v45 = vadd.f32 %v231_v37, %v128_v40  ;;  %v309_v54 = vadd.f32 %v308_v39, %v136_v51 }
 0x138   :  { %4104 = vmatprep.mubr.msk.f32.mxu0 %vm156_vm0, %v4915_v36  ;;  %600 = vperm.xlu0 %4364, %v4917_v38  }
 0x139   :  { %570 = vperm.xlu1 %4363, %v4917_v38   ;;  %v235_v41 = vpop.f32.mrb[2].mxu0  ;;  %v312_v44 = vpop.f32.mrb[2].mxu1 }
 0x13a   :  { %v4925_v42 = vadd.f32 %v235_v41, %v124_v31  ;;  %v237_v43 = vpop.f32.mrb[3].mxu0  ;;  %v314_v46 = vpop.f32.mrb[3].mxu1  ;;  %v4957_v57 = vadd.f32 %v312_v44, %v132_v32  ;;  %v5022_v44 = vld [vmem:[#allocation7] sm:$0xff] }
 0x13b   :  { %v4929_v47 = vadd.f32 %v237_v43, %v128_v40  ;;  %v315_v59 = vadd.f32 %v314_v46, %v136_v51  ;;  %v5020_v43 = vld [vmem:[#allocation7 + $0x10] sm:$0xff]  ;;  %v5025_v46 = vld [vmem:[#allocation7 + $0x20] sm:$0xff] }
 0x13c   :  { %4105 = vmatmul.mubr.msk.f32.vlgmr.msra.gmra.mrb[8].mxu0 %vm156_vm0, %v4925_v42  ;;  %4365 = vset.pattern.permute.xlu0 %v6123_v48 }
 0x13d   :  { %4366 = vset.pattern.permute.xlu1 %v6125_v49  ;;  %627 = vperm.xlu0 %4365, %v4917_v38   ;;  %v383_v60 = vpop.f32.mrb[4].mxu0 }
 0x13e   :  { %654 = vperm.xlu1 %4366, %v4917_v38   ;;  %4107 = vmatprep.mubr.msk.f32.mxu0 %vm156_vm0, %v232_v45  ;;  %v385_v63 = vpop.f32.mrb[5].mxu0  ;;  %v384_v10 = vadd.f32 %v383_v60, %v140_v6 }
 0x13f   :  { %v386_v8 = vadd.f32 %v385_v63, %v144_v3 }
 0x140   :  { %4108 = vmatmul.mubr.msk.f32.gmra.mrb[10].mxu0 %vm156_vm0, %v4929_v47 }
 0x141   :  { %1540 = vmatprep.mubr.f32.mxu0 %v6129_v0  ;;  %4368 = vset.pattern.permute.xlu0 %v6115_v52  ;;  %v389_v4 = vpop.f32.mrb[6].mxu0 }
 0x142   :  { %4367 = vset.pattern.permute.xlu1 %v6121_v53  ;;  %708 = vperm.xlu0 %4368, %v4917_v38   ;;  %v391_v7 = vpop.f32.mrb[7].mxu0  ;;  %v390_v11 = vadd.f32 %v389_v4, %v140_v6 }
 0x143   :  { %681 = vperm.xlu1 %4367, %v4917_v38   ;;  %v392_v9 = vadd.f32 %v391_v7, %v144_v3  ;;  %v5034_v3 = vld [vmem:[#allocation7 + $0x30] sm:$0xff]  ;;  %v5037_v7 = vld [vmem:[#allocation7 + $0x18] sm:$0xff] }
 0x144   :  { %v4994_v13 = vpack.c.bf16 %v390_v11, %v384_v10  ;;  %v5043_v11 = vld [vmem:[#allocation7 + $0x8] sm:$0xff] }
 0x145   :  { %v4216_v12 = vpack.c.bf16 %v392_v9, %v386_v8  ;;  %v5039_v8 = vld [vmem:[#allocation7 + $0x40] sm:$0xff] }
 0x146   :  { %4370 = vset.pattern.permute.xlu0 %v6111_v23 }
 0x147   :  { %4369 = vset.pattern.permute.xlu1 %v6119_v55  ;;  %584 = vperm.xlu0 %4370, %v309_v54  }
 0x148   :  { %735 = vperm.xlu1 %4369, %v4917_v38   ;;  %4217 = vmatprep.subr.bf16.mxu1 %v4216_v12 }
 0x149   :  { %4219 = vmatpush3.bf16.msra.mxu1 %v4216_v12 }
 0x14a   :  { %4221 = vmatprep.subr.bf16.mxu1 %v4994_v13 }
 0x14b   :  { %4371 = vset.pattern.permute.xlu0 %v6113_v22 }
 0x14c   :  { %4372 = vset.pattern.permute.xlu1 %v6123_v48  ;;  %612 = vperm.xlu0 %4371, %v309_v54  }
 0x14d   :  { %639 = vperm.xlu1 %4372, %v309_v54  }
 0x150   :  { %4374 = vset.pattern.permute.xlu0 %v6121_v53 }
 0x151   :  { %4373 = vset.pattern.permute.xlu1 %v6125_v49  ;;  %693 = vperm.xlu0 %4374, %v309_v54  }
 0x152   :  { %666 = vperm.xlu1 %4373, %v309_v54  }
 0x155   :  { %4378 = vset.pattern.permute.xlu0 %v4746_v56 }
 0x156   :  { %4375 = vset.pattern.permute.xlu1 %v6115_v52  ;;  %828 = vperm.xlu0 %4378, %v232_v45  }
 0x157   :  { %720 = vperm.xlu1 %4375, %v309_v54  }
 0x15a   :  { %4380 = vset.pattern.permute.xlu0 %v6113_v22 }
 0x15b   :  { %4376 = vset.pattern.permute.xlu1 %v6119_v55  ;;  %604 = vperm.xlu0 %4380, %v4957_v57  }
 0x15c   :  { %747 = vperm.xlu1 %4376, %v309_v54  }
 0x15f   :  { %4382 = vset.pattern.permute.xlu0 %v6125_v49 }
 0x160   :  { %4377 = vset.pattern.permute.xlu1 %v6109_v58  ;;  %658 = vperm.xlu0 %4382, %v4957_v57  }
 0x161   :  { %774 = vperm.xlu1 %4377, %v309_v54  }
 0x164   :  { %4387 = vset.pattern.permute.xlu0 %v6123_v48 }
 0x165   :  { %4379 = vset.pattern.permute.xlu1 %v6111_v23  ;;  %643 = vperm.xlu0 %4387, %v315_v59  }
 0x166   :  { %575 = vperm.xlu1 %4379, %v4957_v57  }
 0x169   :  { %4391 = vset.pattern.permute.xlu0 %v6119_v55 }
 0x16a   :  { %4381 = vset.pattern.permute.xlu1 %v6123_v48  ;;  %751 = vperm.xlu0 %4391, %v315_v59  }
 0x16b   :  { %631 = vperm.xlu1 %4381, %v4957_v57  }
 0x16e   :  { %739 = vperm.xlu0 %4391, %v4957_v57  }
 0x16f   :  { %4383 = vset.pattern.permute.xlu1 %v6121_v53 }
 0x170   :  { %685 = vperm.xlu1 %4383, %v4957_v57  }
 0x172   :  { %4395 = vset.pattern.permute.xlu0 %v4746_v56 }
 0x173   :  { %786 = vperm.xlu0 %4395, %v4915_v36  }
 0x174   :  { %4384 = vset.pattern.permute.xlu1 %v6115_v52 }
 0x175   :  { %712 = vperm.xlu1 %4384, %v4957_v57  }
 0x177   :  { %4397 = vset.pattern.permute.xlu0 %v6111_v23 }
 0x179   :  { %4385 = vset.pattern.permute.xlu1 %v6111_v23  ;;  %v5083_v23 = vld [vmem:[#allocation7 + $0x68] sm:$0xff] }
 0x17a   :  { %589 = vperm.xlu1 %4385, %v315_v59  }
 0x17e   :  { %4386 = vset.pattern.permute.xlu1 %v6113_v22 }
 0x17f   :  { %616 = vperm.xlu1 %4386, %v315_v59  }
 0x183   :  { %4388 = vset.pattern.permute.xlu1 %v6125_v49 }
 0x184   :  { %670 = vperm.xlu1 %4388, %v315_v59  }
 0x188   :  { %4389 = vset.pattern.permute.xlu1 %v6121_v53 }
 0x189   :  { %697 = vperm.xlu1 %4389, %v315_v59  }
 0x18d   :  { %4390 = vset.pattern.permute.xlu1 %v6115_v52 }
 0x18e   :  { %724 = vperm.xlu1 %4390, %v315_v59  }
 0x192   :  { %4392 = vset.pattern.permute.xlu1 %v6109_v58 }
 0x193   :  { %762 = vperm.xlu1 %4392, %v4917_v38  }
 0x197   :  { %778 = vperm.xlu1 %4392, %v315_v59  }
 0x19b   :  { %4393 = vset.pattern.permute.xlu1 %v4746_v56 }
 0x19c   :  { %832 = vperm.xlu1 %4393, %v4929_v47  }
 0x1a0   :  { %4394 = vset.pattern.permute.xlu1 %v6109_v58 }
 0x1a1   :  { %766 = vperm.xlu1 %4394, %v4957_v57  }
 0x1a5   :  { %4396 = vset.pattern.permute.xlu1 %v4746_v56 }
 0x1a6   :  { %790 = vperm.xlu1 %4396, %v4925_v42  }
 0x1aa   :  { %4398 = vset.pattern.permute.xlu1 %v6113_v22  ;;  %v4748_v22 = vmov -1e+30  }
 0x1b7   :  { %v601_v20 = vpop.permute.xlu0 %600 }
 0x1b8   :  { %v571_v14 = vpop.permute.xlu1 %570  ;;  %v607_v51 = vmul.f32 %v601_v20, %v5020_v43 }
 0x1b9   :  { %v578_v54 = vmul.f32 %v571_v14, %v5022_v44 }
 0x1bb   :  { %v609_v63 = vadd.f32 %v607_v51, %v578_v54  ;;  %v5050_v51 = vld [vmem:[#allocation7 + $0x50] sm:$0xff] }
 0x1bc   :  { %v628_v24 = vpop.permute.xlu0 %627 }
 0x1bd   :  { %v655_v15 = vpop.permute.xlu1 %654  ;;  %v634_v57 = vmul.f32 %v628_v24, %v5025_v46 }
 0x1be   :  { %v661_v10 = vmul.f32 %v655_v15, %v5034_v3 }
 0x1bf   :  { %v636_v4 = vadd.f32 %v634_v57, %v609_v63  ;;  %v5054_v57 = vld [vmem:[#allocation7 + $0x38] sm:$0xff]  ;;  %v5056_v63 = vld [vmem:[#allocation7 + $0x60] sm:$0xff] }
 0x1c1   :  { %v709_v27 = vpop.permute.xlu0 %708  ;;  %v663_v20 = vadd.f32 %v661_v10, %v636_v4 }
 0x1c2   :  { %v682_v16 = vpop.permute.xlu1 %681 }
 0x1c3   :  { %v688_v24 = vmul.f32 %v682_v16, %v5039_v8  ;;  %v5058_v16 = vld [vmem:[#allocation7 + $0x70] sm:$0xff] }
 0x1c5   :  { %v690_v15 = vadd.f32 %v688_v24, %v663_v20  ;;  %v5070_v20 = vld [vmem:[#allocation5] sm:$0xff] }
 0x1c6   :  { %v585_v32 = vpop.permute.xlu0 %584  ;;  %vm94_vm2 = vcmp.gt.f32.partialorder %v5070_v20, 0.0 }
 0x1c7   :  { %v5008_v17 = vpop.permute.xlu1 %735  ;;  %v592_v56 = vmul.f32 %v585_v32, %v5022_v44  ;;  %v5088_v52 = vsel %vm94_vm2, 0.0, %v4748_v22 }
 0x1cb   :  { %v613_v36 = vpop.permute.xlu0 %612 }
 0x1cc   :  { %v640_v18 = vpop.permute.xlu1 %639  ;;  %v619_v45 = vmul.f32 %v613_v36, %v5020_v43  ;;  %v5047_v36 = vld [vmem:[#allocation7 + $0x28] sm:$0xff] }
 0x1cd   :  { %v646_v1 = vmul.f32 %v640_v18, %v5025_v46 }
 0x1ce   :  { %v621_v59 = vadd.f32 %v619_v45, %v592_v56 }
 0x1d0   :  { %v694_v38 = vpop.permute.xlu0 %693  ;;  %v648_v5 = vadd.f32 %v646_v1, %v621_v59 }
 0x1d1   :  { %v667_v19 = vpop.permute.xlu1 %666  ;;  %v700_v45 = vmul.f32 %v694_v38, %v5039_v8  ;;  %v715_v38 = vmul.f32 %v709_v27, %v5050_v51 }
 0x1d2   :  { %v673_v6 = vmul.f32 %v667_v19, %v5034_v3 }
 0x1d3   :  { %v717_v24 = vadd.f32 %v715_v38, %v690_v15 }
 0x1d4   :  { %v675_v32 = vadd.f32 %v673_v6, %v648_v5  ;;  %v5063_v6 = vld [vmem:[#allocation7 + $0x48] sm:$0xff] }
 0x1d5   :  { %v5018_v40 = vpop.permute.xlu0 %828 }
 0x1d6   :  { %v721_v21 = vpop.permute.xlu1 %720  ;;  %v702_v54 = vadd.f32 %v700_v45, %v675_v32 }
 0x1d7   :  { %v727_v56 = vmul.f32 %v721_v21, %v5050_v51 }
 0x1d9   :  { %v729_v32 = vadd.f32 %v727_v56, %v702_v54 }
 0x1da   :  { %v605_v42 = vpop.permute.xlu0 %604 }
 0x1db   :  { %v748_v26 = vpop.permute.xlu1 %747  ;;  %v608_v21 = vmul.f32 %v605_v42, %v5037_v7 }
 0x1dc   :  { %v754_v5 = vmul.f32 %v748_v26, %v5056_v63  ;;  %v742_v26 = vmul.f32 %v5008_v17, %v5056_v63 }
 0x1de   :  { %v756_v45 = vadd.f32 %v754_v5, %v729_v32 }
 0x1df   :  { %v5031_v60 = vpop.permute.xlu0 %658 }
 0x1e0   :  { %v5010_v31 = vpop.permute.xlu1 %774 }
 0x1e1   :  { %v781_v27 = vmul.f32 %v5010_v31, %v5058_v16 }
 0x1e3   :  { %v783_v38 = vadd.f32 %v781_v27, %v756_v45 }
 0x1e4   :  { %v644_v12 = vpop.permute.xlu0 %643 }
 0x1e5   :  { %v576_v34 = vpop.permute.xlu1 %575 }
 0x1e6   :  { %v579_v10 = vmul.f32 %v576_v34, %v5043_v11 }
 0x1e8   :  { %v610_v15 = vadd.f32 %v608_v21, %v579_v10  ;;  %v662_v21 = vmul.f32 %v5031_v60, %v5054_v57 }
 0x1ea   :  { %v5012_v35 = vpop.permute.xlu1 %631 }
 0x1eb   :  { %v635_v42 = vmul.f32 %v5012_v35, %v5047_v36  ;;  %v5086_v35 = vld [vmem:[#allocation7 + $0x78] sm:$0xff] }
 0x1ef   :  { %v5014_v37 = vpop.permute.xlu1 %685 }
 0x1f4   :  { %v5016_v39 = vpop.permute.xlu1 %712 }
 0x1f9   :  { %v590_v41 = vpop.permute.xlu1 %589 }
 0x1fa   :  { %v593_v14 = vmul.f32 %v590_v41, %v5043_v11  ;;  %v752_v41 = vpop.permute.xlu0 %751 }
 0x1fb   :  { %v755_v10 = vmul.f32 %v752_v41, %v5083_v23 }
 0x1fe   :  { %v617_v47 = vpop.permute.xlu1 %616 }
 0x1ff   :  { %v620_v9 = vmul.f32 %v617_v47, %v5037_v7  ;;  %v647_v47 = vmul.f32 %v644_v12, %v5047_v36 }
 0x201   :  { %v622_v19 = vadd.f32 %v620_v9, %v593_v14 }
 0x203   :  { %v671_v2 = vpop.permute.xlu1 %670  ;;  %v649_v1 = vadd.f32 %v647_v47, %v622_v19  ;;  %v740_v47 = vpop.permute.xlu0 %739 }
 0x204   :  { %v674_v4 = vmul.f32 %v671_v2, %v5054_v57  ;;  %v5074_v2 = vld [vmem:[#allocation7 + $0x58] sm:$0xff] }
 0x205   :  { %v716_v60 = vmul.f32 %v5016_v39, %v5074_v2 }
 0x206   :  { %v676_v19 = vadd.f32 %v674_v4, %v649_v1  ;;  %v744_v1 = vadd.f32 %v742_v26, %v717_v24  ;;  %v689_v26 = vmul.f32 %v5014_v37, %v5063_v6 }
 0x208   :  { %v698_v18 = vpop.permute.xlu1 %697 }
 0x209   :  { %v701_v12 = vmul.f32 %v698_v18, %v5063_v6 }
 0x20b   :  { %v703_v54 = vadd.f32 %v701_v12, %v676_v19  ;;  %v5094_v19 = vld [vmem:[#allocation5 + $0x8] sm:$0xff] }
 0x20c   :  { %vm95_vm3 = vcmp.gt.f32.partialorder %v5094_v19, 0.0 }
 0x20d   :  { %v725_v59 = vpop.permute.xlu1 %724 }
 0x20e   :  { %v728_v34 = vmul.f32 %v725_v59, %v5074_v2  ;;  %v637_v59 = vadd.f32 %v635_v42, %v610_v15 }
 0x20f   :  { %v5065_v9 = vpop.f32.mrb[8].mxu0 }
 0x210   :  { %v547_v14 = vpop.f32.mrb[9].mxu0  ;;  %v730_v4 = vadd.f32 %v728_v34, %v703_v54  ;;  %v664_v24 = vadd.f32 %v662_v21, %v637_v59 }
 0x212   :  { %v763_v18 = vpop.permute.xlu1 %762  ;;  %v757_v34 = vadd.f32 %v755_v10, %v730_v4 }
 0x213   :  { %v4109_v58 = vpop.f32.mrb[10].mxu0  ;;  %v769_v31 = vmul.f32 %v763_v18, %v5058_v16 }
 0x214   :  { %v557_v56 = vpop.f32.mrb[11].mxu0 }
 0x215   :  { %v835_v17 = vadd.f32 %v5018_v40, %v557_v56  ;;  %v771_v12 = vadd.f32 %v769_v31, %v744_v1  ;;  %v787_v40 = vpop.permute.xlu0 %786  ;;  %v5103_v1 = vsel %vm95_vm3, 0.0, %v4748_v22 }
 0x216   :  { %v779_v5 = vpop.permute.xlu1 %778  ;;  %v793_v42 = vadd.f32 %v787_v40, %v547_v14 }
 0x217   :  { %v837_v32 = vadd.f32 %v835_v17, %v783_v38  ;;  %v782_v27 = vmul.f32 %v779_v5, %v5086_v35  ;;  %v691_v38 = vadd.f32 %v689_v26, %v664_v24  ;;  %v743_v5 = vmul.f32 %v740_v47, %v5083_v23 }
 0x218   :  { %v795_v31 = vadd.f32 %v793_v42, %v771_v12 }
 0x219   :  { %v839_v18 = vmul.f32 0.18257418, %v837_v32  ;;  %v784_v41 = vadd.f32 %v782_v27, %v757_v34  ;;  %v718_v37 = vadd.f32 %v716_v60, %v691_v38 }
 0x21a   :  { %v797_v4 = vmul.f32 0.18257418, %v795_v31 }
 0x21b   :  { %v833_v45 = vpop.permute.xlu1 %832  ;;  %v841_v15 = vadd.f32 %v839_v18, %v5088_v52  ;;  %v745_v21 = vadd.f32 %v743_v5, %v718_v37 }
 0x21c   :  { %v836_v54 = vadd.f32 %v4109_v58, %v833_v45  ;;  %v799_v10 = vadd.f32 %v797_v4, %v5088_v52 }
 0x21d   :  { %v843_v56 = vsel %vm156_vm0, %v841_v15, -inf }
 0x21e   :  { %v838_v17 = vadd.f32 %v836_v54, %v784_v41  ;;  %844 = vmax.xlane.f32.xlu1 %v843_v56  ;;  %v801_v18 = vsel %vm156_vm0, %v799_v10, -inf }
 0x220   :  { %v840_v14 = vmul.f32 0.18257418, %v838_v17  ;;  %v767_v59 = vpop.permute.xlu1 %766 }
 0x221   :  { %v770_v32 = vmul.f32 %v767_v59, %v5086_v35 }
 0x222   :  { %v842_v39 = vadd.f32 %v840_v14, %v5103_v1 }
 0x223   :  { %v772_v27 = vadd.f32 %v770_v32, %v745_v21 }
 0x224   :  { %v846_v58 = vsel %vm156_vm0, %v842_v39, -inf }
 0x225   :  { %v791_v12 = vpop.permute.xlu1 %790  ;;  %847 = vmax.xlane.f32.xlu0 %v846_v58 }
 0x226   :  { %v794_v22 = vadd.f32 %v5065_v9, %v791_v12 }
 0x228   :  { %v796_v40 = vadd.f32 %v794_v22, %v772_v27 }
 0x229   :  { %802 = vmax.xlane.f32.xlu0 %v801_v18 }
 0x22a   :  { %v798_v24 = vmul.f32 0.18257418, %v796_v40 }
 0x22c   :  { %v800_v47 = vadd.f32 %v798_v24, %v5103_v1 }
 0x22e   :  { %v804_v26 = vsel %vm156_vm0, %v800_v47, -inf }
 0x22f   :  { %805 = vmax.xlane.f32.xlu1 %v804_v26 }
 0x2ab   :  { %v845_v42 = vpop.xlane.xlu1 %844 }
 0x2ac   :  { %v849_v34 = vsub.f32 %v841_v15, %v845_v42 }
 0x2ae   :  { %v851_v45 = vmul.f32 1.442695, %v849_v34 }
 0x2b0   :  { %4465 = vpow2.f32 %v851_v45 }
 0x2b2   :  { %v848_v60 = vpop.xlane.xlu0 %847 }
 0x2b3   :  { %v850_v41 = vsub.f32 %v842_v39, %v848_v60 }
 0x2b5   :  { %v853_v54 = vmul.f32 1.442695, %v850_v41 }
 0x2b6   :  { %v803_v31 = vpop.xlane.xlu0 %802 }
 0x2b7   :  { %4467 = vpow2.f32 %v853_v54  ;;  %v807_v9 = vsub.f32 %v799_v10, %v803_v31 }
 0x2b9   :  { %v809_v56 = vmul.f32 1.442695, %v807_v9 }
 0x2ba   :  { %v4466_v38 = vpop.eup %4465 }
 0x2bb   :  { %4469 = vpow2.f32 %v809_v56  ;;  %v855_v17 = vmul.f32 %v4466_v38, %v5070_v20 }
 0x2bc   :  { %v806_v37 = vpop.xlane.xlu1 %805 }
 0x2bd   :  { %v808_v14 = vsub.f32 %v800_v47, %v806_v37  ;;  %v857_v59 = vsel %vm156_vm0, %v855_v17, 0.0 }
 0x2be   :  { %858 = vadd.xlane.f32.xlu0 %v857_v59 }
 0x2bf   :  { %v811_v4 = vmul.f32 1.442695, %v808_v14 }
 0x2c1   :  { %v4468_v15 = vpop.eup %4467  ;;  %4471 = vpow2.f32 %v811_v4 }
 0x2c2   :  { %v856_v5 = vmul.f32 %v4468_v15, %v5094_v19 }
 0x2c4   :  { %v860_v32 = vsel %vm156_vm0, %v856_v5, 0.0 }
 0x2c5   :  { %v4470_v39 = vpop.eup %4469  ;;  %861 = vadd.xlane.f32.xlu1 %v860_v32 }
 0x2c6   :  { %v813_v21 = vmul.f32 %v4470_v39, %v5070_v20 }
 0x2c8   :  { %v815_v58 = vsel %vm156_vm0, %v813_v21, 0.0 }
 0x2c9   :  { %816 = vadd.xlane.f32.xlu0 %v815_v58 }
 0x2cb   :  { %v4472_v10 = vpop.eup %4471 }
 0x2cc   :  { %v814_v12 = vmul.f32 %v4472_v10, %v5094_v19 }
 0x2ce   :  { %v818_v27 = vsel %vm156_vm0, %v814_v12, 0.0 }
 0x2cf   :  { %819 = vadd.xlane.f32.xlu1 %v818_v27 }
 0x34b   :  { %v859_v22 = vpop.xlane.xlu0 %858 }
 0x34c   :  { %v863_v40 = vmax.f32 %v859_v22, 1e-30 }
 0x34e   :  { %4473 = vrcp.f32 %v863_v40 }
 0x352   :  { %v862_v18 = vpop.xlane.xlu1 %861 }
 0x353   :  { %v864_v24 = vmax.f32 %v862_v18, 1e-30 }
 0x355   :  { %4475 = vrcp.f32 %v864_v24 }
 0x356   :  { %v817_v47 = vpop.xlane.xlu0 %816 }
 0x357   :  { %v821_v26 = vmax.f32 %v817_v47, 1e-30 }
 0x358   :  { %v4474_v42 = vpop.eup %4473 }
 0x359   :  { %v5122_v34 = vmul.f32 %v4474_v42, %v855_v17  ;;  %4477 = vrcp.f32 %v821_v26 }
 0x35b   :  { %4114 = vmatprep.mubr.msk.f32.mxu1 %vm156_vm0, %v5122_v34 }
 0x35c   :  { %v820_v20 = vpop.xlane.xlu1 %819 }
 0x35d   :  { %v822_v19 = vmax.f32 %v820_v20, 1e-30 }
 0x35f   :  { %v4476_v45 = vpop.eup %4475  ;;  %4479 = vrcp.f32 %v822_v19  ;;  %v1050_v19 = vmul.f32 %v5122_v34, %v5022_v44 }
 0x360   :  { %v5126_v60 = vmul.f32 %v4476_v45, %v856_v5 }
 0x362   :  { %4115 = vmatmul.mubr.msk.f32.vlgmr.msra.gmra.mrb[6].mxu1 %vm156_vm0, %v5126_v60 }
 0x363   :  { %v4478_v41 = vpop.eup %4477  ;;  %4223 = vmatpush3.bf16.msra.mxu1 %v4994_v13 }
 0x364   :  { %v825_v54 = vmul.f32 %v4478_v41, %v813_v21 }
 0x366   :  { %4121 = vmatprep.mubr.msk.f32.mxu1 %vm156_vm0, %v825_v54  ;;  %v1066_v31 = vmul.f32 %v825_v54, %v5020_v43  ;;  %v1098_v56 = vmul.f32 %v825_v54, %v5025_v46  ;;  %v1130_v14 = vmul.f32 %v825_v54, %v5034_v3  ;;  %v1162_v5 = vmul.f32 %v825_v54, %v5039_v8 }
 0x367   :  { %v1194_v58 = vmul.f32 %v825_v54, %v5050_v51  ;;  %v1226_v22 = vmul.f32 %v825_v54, %v5056_v63  ;;  %v1258_v47 = vmul.f32 %v825_v54, %v5058_v16 }
 0x368   :  { %v1068_v9 = vsel %vm156_vm0, %v1066_v31, 0.0  ;;  %v1100_v37 = vsel %vm156_vm0, %v1098_v56, 0.0  ;;  %v1132_v15 = vsel %vm156_vm0, %v1130_v14, 0.0  ;;  %v1164_v21 = vsel %vm156_vm0, %v1162_v5, 0.0 }
 0x369   :  { %v4480_v38 = vpop.eup %4479  ;;  %1069 = vadd.xlane.f32.xlu1 %v1068_v9  ;;  %v1196_v27 = vsel %vm156_vm0, %v1194_v58, 0.0  ;;  %v1228_v24 = vsel %vm156_vm0, %v1226_v22, 0.0  ;;  %v1260_v20 = vsel %vm156_vm0, %v1258_v47, 0.0  ;;  %v1052_v31 = vsel %vm156_vm0, %v1050_v19, 0.0 }
 0x36a   :  { %v5135_v17 = vmul.f32 %v4480_v38, %v814_v12  ;;  %v1082_v9 = vmul.f32 %v5122_v34, %v5020_v43  ;;  %v1034_v38 = vmul.f32 %v825_v54, %v5022_v44  ;;  %v1083_v54 = vmul.f32 %v5126_v60, %v5037_v7 }
 0x36b   :  { %v1115_v5 = vmul.f32 %v5126_v60, %v5047_v36  ;;  %v1179_v58 = vmul.f32 %v5126_v60, %v5063_v6  ;;  %v1243_v22 = vmul.f32 %v5126_v60, %v5083_v23 }
 0x36c   :  { %4122 = vmatmul.mubr.msk.f32.vlgmr.msra.gmra.mrb[6].mxu1 %vm156_vm0, %v5135_v17  ;;  %v1035_v13 = vmul.f32 %v5135_v17, %v5043_v11  ;;  %v1067_v4 = vmul.f32 %v5135_v17, %v5037_v7  ;;  %v1099_v39 = vmul.f32 %v5135_v17, %v5047_v36  ;;  %v1131_v12 = vmul.f32 %v5135_v17, %v5054_v57 }
 0x36d   :  { %1101 = vadd.xlane.f32.xlu1 %v1100_v37  ;;  %1617 = vmatprep.mubr.f32.mxu1 %v6129_v0  ;;  %v1163_v18 = vmul.f32 %v5135_v17, %v5063_v6  ;;  %v1195_v42 = vmul.f32 %v5135_v17, %v5074_v2  ;;  %v1227_v41 = vmul.f32 %v5135_v17, %v5083_v23  ;;  %v1084_v37 = vsel %vm156_vm0, %v1082_v9, 0.0 }
 0x36e   :  { %v1039_v59 = vsel %vm156_vm0, %v1035_v13, 0.0  ;;  %v1071_v32 = vsel %vm156_vm0, %v1067_v4, 0.0  ;;  %v1103_v10 = vsel %vm156_vm0, %v1099_v39, 0.0  ;;  %v1135_v40 = vsel %vm156_vm0, %v1131_v12, 0.0 }
 0x36f   :  { %1040 = vadd.xlane.f32.xlu0 %v1039_v59  ;;  %v1167_v26 = vsel %vm156_vm0, %v1163_v18, 0.0  ;;  %v1199_v45 = vsel %vm156_vm0, %v1195_v42, 0.0  ;;  %v1231_v56 = vsel %vm156_vm0, %v1227_v41, 0.0  ;;  %v1114_v13 = vmul.f32 %v5122_v34, %v5025_v46  ;;  %v5225_v18 = vpop.f32.mrb[4].mxu1 }
 0x370   :  { %v1036_v14 = vsel %vm156_vm0, %v1034_v38, 0.0  ;;  %v1051_v59 = vmul.f32 %v5126_v60, %v5043_v11  ;;  %v1146_v4 = vmul.f32 %v5122_v34, %v5034_v3  ;;  %v1087_v11 = vsel %vm156_vm0, %v1083_v54, 0.0 }
 0x371   :  { %1133 = vadd.xlane.f32.xlu1 %v1132_v15  ;;  %v1116_v43 = vsel %vm156_vm0, %v1114_v13, 0.0  ;;  %v1178_v15 = vmul.f32 %v5122_v34, %v5039_v8  ;;  %v1119_v7 = vsel %vm156_vm0, %v1115_v5, 0.0  ;;  %v1147_v39 = vmul.f32 %v5126_v60, %v5054_v57 }
 0x372   :  { %v1055_v44 = vsel %vm156_vm0, %v1051_v59, 0.0  ;;  %v1148_v46 = vsel %vm156_vm0, %v1146_v4, 0.0  ;;  %v1183_v57 = vsel %vm156_vm0, %v1179_v58, 0.0  ;;  %v1211_v12 = vmul.f32 %v5126_v60, %v5074_v2  ;;  %v5243_v4 = vld [vmem:[#allocation10] sm:$0xff] }
 0x373   :  { %1072 = vadd.xlane.f32.xlu0 %v1071_v32  ;;  %v1180_v3 = vsel %vm156_vm0, %v1178_v15, 0.0  ;;  %v1210_v32 = vmul.f32 %v5122_v34, %v5050_v51  ;;  %v1151_v36 = vsel %vm156_vm0, %v1147_v39, 0.0  ;;  %v1259_v2 = vmul.f32 %v5135_v17, %v5086_v35 }
 0x374   :  { %v1215_v6 = vsel %vm156_vm0, %v1211_v12, 0.0  ;;  %v1045_v54 = vrot.slane %v5243_v4, %v4901_v28 }
 0x375   :  { %1165 = vadd.xlane.f32.xlu1 %v1164_v21  ;;  %v1212_v8 = vsel %vm156_vm0, %v1210_v32, 0.0  ;;  %v1242_v21 = vmul.f32 %v5122_v34, %v5056_v63 }
 0x377   :  { %1104 = vadd.xlane.f32.xlu0 %v1103_v10  ;;  %v1244_v51 = vsel %vm156_vm0, %v1242_v21, 0.0  ;;  %v1274_v10 = vmul.f32 %v5122_v34, %v5058_v16  ;;  %v1247_v34 = vsel %vm156_vm0, %v1243_v22, 0.0 }
 0x379   :  { %1197 = vadd.xlane.f32.xlu1 %v1196_v27  ;;  %v1276_v63 = vsel %vm156_vm0, %v1274_v10, 0.0  ;;  %v1275_v27 = vmul.f32 %v5126_v60, %v5086_v35 }
 0x37b   :  { %1136 = vadd.xlane.f32.xlu0 %v1135_v40  ;;  %v1279_v16 = vsel %vm156_vm0, %v1275_v27, 0.0  ;;  %v1263_v40 = vsel %vm156_vm0, %v1259_v2, 0.0 }
 0x37d   :  { %1229 = vadd.xlane.f32.xlu1 %v1228_v24  ;;  %v5227_v24 = vpop.f32.mrb[5].mxu1 }
 0x37f   :  { %1168 = vadd.xlane.f32.xlu0 %v1167_v26 }
 0x381   :  { %1261 = vadd.xlane.f32.xlu1 %v1260_v20 }
 0x383   :  { %1200 = vadd.xlane.f32.xlu0 %v1199_v45 }
 0x385   :  { %1053 = vadd.xlane.f32.xlu1 %v1052_v31 }
 0x387   :  { %1232 = vadd.xlane.f32.xlu0 %v1231_v56 }
 0x389   :  { %1085 = vadd.xlane.f32.xlu1 %v1084_v37 }
 0x38b   :  { %1037 = vadd.xlane.f32.xlu0 %v1036_v14 }
 0x38d   :  { %1117 = vadd.xlane.f32.xlu1 %v1116_v43 }
 0x38f   :  { %1056 = vadd.xlane.f32.xlu0 %v1055_v44 }
 0x391   :  { %1149 = vadd.xlane.f32.xlu1 %v1148_v46  ;;  %v5247_v46 = vld [vmem:[#allocation10 + $0x8] sm:$0xff] }
 0x393   :  { %1088 = vadd.xlane.f32.xlu0 %v1087_v11  ;;  %v1061_v11 = vrot.slane %v5247_v46, %v4901_v28 }
 0x395   :  { %1181 = vadd.xlane.f32.xlu1 %v1180_v3  ;;  %v1077_v3 = vrot.slane %v5243_v4, %v4913_v33 }
 0x397   :  { %1120 = vadd.xlane.f32.xlu0 %v1119_v7 }
 0x399   :  { %1213 = vadd.xlane.f32.xlu1 %v1212_v8 }
 0x39b   :  { %1152 = vadd.xlane.f32.xlu0 %v1151_v36 }
 0x39d   :  { %1245 = vadd.xlane.f32.xlu1 %v1244_v51  ;;  %v1093_v51 = vrot.slane %v5247_v46, %v4913_v33 }
 0x39f   :  { %1184 = vadd.xlane.f32.xlu0 %v1183_v57 }
 0x3a1   :  { %1277 = vadd.xlane.f32.xlu1 %v1276_v63 }
 0x3a3   :  { %1216 = vadd.xlane.f32.xlu0 %v1215_v6  ;;  %v1109_v6 = vrot.slane %v5243_v4, %v4906_v30 }
 0x3a5   :  { %1280 = vadd.xlane.f32.xlu1 %v1279_v16 }
 0x3a7   :  { %1248 = vadd.xlane.f32.xlu0 %v1247_v34 }
 0x3ab   :  { %1264 = vadd.xlane.f32.xlu0 %v1263_v40  ;;  %v1125_v40 = vrot.slane %v5247_v46, %v4906_v30 }
 0x3f6   :  { %v1070_v26 = vpop.xlane.xlu1 %1069 }
 0x3f7   :  { %v1078_v27 = vmul.f32 %v1077_v3, %v1070_v26 }
 0x3fa   :  { %v1102_v60 = vpop.xlane.xlu1 %1101 }
 0x3fc   :  { %v1041_v47 = vpop.xlane.xlu0 %1040 }
 0x3fd   :  { %v1047_v5 = vmul.f32 %v1045_v54, %v1041_v47 }
 0x3fe   :  { %v1134_v20 = vpop.xlane.xlu1 %1133 }
 0x400   :  { %v1073_v23 = vpop.xlane.xlu0 %1072 }
 0x401   :  { %v1079_v12 = vmul.f32 %v1077_v3, %v1073_v23  ;;  %v1141_v23 = vrot.slane %v5243_v4, %v4934_v50 }
 0x402   :  { %v5229_v45 = vpop.xlane.xlu1 %1165 }
 0x404   :  { %v1105_v42 = vpop.xlane.xlu0 %1104 }
 0x406   :  { %v5233_v35 = vpop.xlane.xlu1 %1197 }
 0x408   :  { %v1137_v19 = vpop.xlane.xlu0 %1136 }
 0x40a   :  { %v5237_v31 = vpop.xlane.xlu1 %1229 }
 0x40c   :  { %v5231_v41 = vpop.xlane.xlu0 %1168 }
 0x40e   :  { %v5241_v56 = vpop.xlane.xlu1 %1261 }
 0x410   :  { %v5235_v17 = vpop.xlane.xlu0 %1200 }
 0x412   :  { %v1054_v37 = vpop.xlane.xlu1 %1053 }
 0x413   :  { %v1062_v58 = vmul.f32 %v1061_v11, %v1054_v37  ;;  %v1111_v37 = vmul.f32 %v1109_v6, %v1105_v42  ;;  %v1173_v42 = vrot.slane %v5243_v4, %v4987_v62 }
 0x414   :  { %v5239_v9 = vpop.xlane.xlu0 %1232 }
 0x416   :  { %v1086_v14 = vpop.xlane.xlu1 %1085 }
 0x417   :  { %v1094_v2 = vmul.f32 %v1093_v51, %v1086_v14 }
 0x418   :  { %v1038_v38 = vpop.xlane.xlu0 %1037 }
 0x419   :  { %v1046_v32 = vmul.f32 %v1045_v54, %v1038_v38  ;;  %v1110_v54 = vmul.f32 %v1109_v6, %v1102_v60  ;;  %v5272_v6 = vsub.s32 6, %v4898_v25 }
 0x41a   :  { %v1118_v43 = vpop.xlane.xlu1 %1117 }
 0x41c   :  { %v1057_v13 = vpop.xlane.xlu0 %1056 }
 0x41d   :  { %v1063_v8 = vmul.f32 %v1061_v11, %v1057_v13 }
 0x41e   :  { %v1150_v15 = vpop.xlane.xlu1 %1149 }
 0x420   :  { %v1089_v59 = vpop.xlane.xlu0 %1088 }
 0x421   :  { %v1095_v16 = vmul.f32 %v1093_v51, %v1089_v59  ;;  %v1157_v59 = vrot.slane %v5247_v46, %v4934_v50 }
 0x422   :  { %v1182_v10 = vpop.xlane.xlu1 %1181 }
 0x424   :  { %v1121_v44 = vpop.xlane.xlu0 %1120 }
 0x426   :  { %v1214_v11 = vpop.xlane.xlu1 %1213 }
 0x428   :  { %v1153_v7 = vpop.xlane.xlu0 %1152 }
 0x42c   :  { %v1185_v47 = vpop.xlane.xlu0 %1184 }
 0x43f   :  { %v4123_v39 = vpop.f32.mrb[6].mxu1 }
 0x440   :  { %v1049_v21 = vadd.f32 %v4123_v39, %v1047_v5  ;;  %v1025_v36 = vpop.f32.mrb[7].mxu1  ;;  %v1127_v5 = vmul.f32 %v1125_v40, %v1121_v44  ;;  %v1143_v39 = vmul.f32 %v1141_v23, %v1137_v19  ;;  %v1189_v44 = vrot.slane %v5247_v46, %v4987_v62 }
 0x441   :  { %v1048_v57 = vadd.f32 %v1046_v32, %v1025_v36  ;;  %v1126_v32 = vmul.f32 %v1125_v40, %v1118_v43  ;;  %v1217_v36 = vpop.xlane.xlu0 %1216  ;;  %v1174_v19 = vmul.f32 %v1173_v42, %v5229_v45 }
 0x442   :  { %v1065_v63 = vadd.f32 %v1063_v8, %v1049_v21  ;;  %v1142_v21 = vmul.f32 %v1141_v23, %v1134_v20  ;;  %v1205_v20 = vrot.slane %v5243_v4, %v4984_v61 }
 0x443   :  { %v1064_v22 = vadd.f32 %v1062_v58, %v1048_v57  ;;  %v1159_v58 = vmul.f32 %v1157_v59, %v1153_v7  ;;  %v1158_v57 = vmul.f32 %v1157_v59, %v1150_v15  ;;  %v1191_v7 = vmul.f32 %v1189_v44, %v1185_v47 }
 0x444   :  { %v1081_v34 = vadd.f32 %v1079_v12, %v1065_v63  ;;  %v1246_v12 = vpop.xlane.xlu1 %1245  ;;  %v1175_v63 = vmul.f32 %v1173_v42, %v5231_v41  ;;  %v1190_v15 = vmul.f32 %v1189_v44, %v1182_v10  ;;  %v1207_v41 = vmul.f32 %v1205_v20, %v5235_v17 }
 0x445   :  { %v1080_v38 = vadd.f32 %v1078_v27, %v1064_v22  ;;  %v1206_v45 = vmul.f32 %v1205_v20, %v5233_v35 }
 0x446   :  { %v1097_v13 = vadd.f32 %v1095_v16, %v1081_v34  ;;  %v1221_v34 = vrot.slane %v5247_v46, %v4984_v61 }
 0x447   :  { %v1096_v26 = vadd.f32 %v1094_v2, %v1080_v38  ;;  %v1249_v2 = vpop.xlane.xlu0 %1248 }
 0x448   :  { %v1113_v3 = vadd.f32 %v1111_v37, %v1097_v13  ;;  %v1237_v37 = vrot.slane %v5243_v4, %v5272_v6  ;;  %v5281_v13 = vsub.s32 7, %v4898_v25  ;;  %v1223_v23 = vmul.f32 %v1221_v34, %v1217_v36 }
 0x449   :  { %v1112_v14 = vadd.f32 %v1110_v54, %v1096_v26  ;;  %v1278_v54 = vpop.xlane.xlu1 %1277  ;;  %v1222_v26 = vmul.f32 %v1221_v34, %v1214_v11  ;;  %v1386_v34 = vld [vmem:[#allocation8 + $0x118] sm:$0xff] }
 0x44a   :  { %v1129_v8 = vadd.f32 %v1127_v5, %v1113_v3  ;;  %v1253_v5 = vrot.slane %v5247_v46, %v5272_v6  ;;  %v1239_v17 = vmul.f32 %v1237_v37, %v5239_v9  ;;  %v1238_v35 = vmul.f32 %v1237_v37, %v5237_v31  ;;  %v1394_v37 = vld [vmem:[#allocation8 + $0x158] sm:$0xff] }
 0x44b   :  { %v1128_v60 = vadd.f32 %v1126_v32, %v1112_v14  ;;  %v1269_v59 = vrot.slane %v5243_v4, %v5281_v13  ;;  %v1265_v14 = vpop.xlane.xlu0 %1264  ;;  %v1285_v11 = vrot.slane %v5247_v46, %v5281_v13  ;;  %v148_v31 = vrot.slane %v4903_v29, %v5272_v6  ;;  %v1380_v29 = vld [vmem:[#allocation8 + $0xe8] sm:$0xff] }
 0x44c   :  { %v1145_v51 = vadd.f32 %v1143_v39, %v1129_v8  ;;  %v1255_v39 = vmul.f32 %v1253_v5, %v1249_v2  ;;  %v1382_v2 = vld [vmem:[#allocation8 + $0xf8] sm:$0xff] }
 0x44d   :  { %v1144_v43 = vadd.f32 %v1142_v21, %v1128_v60  ;;  %v1254_v21 = vmul.f32 %v1253_v5, %v1246_v12  ;;  %v1281_v42 = vpop.xlane.xlu1 %1280  ;;  %v1271_v60 = vmul.f32 %v1269_v59, %v1265_v14  ;;  %v1270_v9 = vmul.f32 %v1269_v59, %v5241_v56  ;;  %v1387_v56 = vld [vmem:[#allocation8 + $0x120] sm:$0xff]  ;;  %v1396_v5 = vld [vmem:[#allocation8 + $0x168] sm:$0xff] }
 0x44e   :  { %v1161_v27 = vadd.f32 %v1159_v58, %v1145_v51  ;;  %v1286_v44 = vmul.f32 %v1285_v11, %v1278_v54  ;;  %v466_v12 = vadd.f32 %v5225_v18, %v148_v31  ;;  %v461_v46 = vadd.f32 %v5227_v24, %v148_v31  ;;  %v1381_v18 = vld [vmem:[#allocation8 + $0xf0] sm:$0xff] }
 0x44f   :  { %v1160_v22 = vadd.f32 %v1158_v57, %v1144_v43  ;;  %v1287_v57 = vmul.f32 %v1285_v11, %v1281_v42  ;;  %v1401_v54 = vld [vmem:[#allocation8 + $0x190] sm:$0x3f]  ;;  %v1392_v11 = vld [vmem:[#allocation8 + $0x148] sm:$0xff] }
 0x450   :  { %v1177_v16 = vadd.f32 %v1175_v63, %v1161_v27 }
 0x451   :  { %v1176_v40 = vadd.f32 %v1174_v19, %v1160_v22 }
 0x452   :  { %v1193_v38 = vadd.f32 %v1191_v7, %v1177_v16  ;;  %v4224_v16 = vpack.c.bf16 %v1387_v56, %v1380_v29 }
 0x453   :  { %v1192_v47 = vadd.f32 %v1190_v15, %v1176_v40  ;;  %v1379_v15 = vld [vmem:[#allocation8 + $0xe0] sm:$0xff] }
 0x454   :  { %v1209_v10 = vadd.f32 %v1207_v41, %v1193_v38  ;;  %v4226_v40 = vpack.c.bf16 %v1386_v34, %v1379_v15  ;;  %v1389_v41 = vld [vmem:[#allocation8 + $0x130] sm:$0xff]  ;;  %v1388_v38 = vld [vmem:[#allocation8 + $0x128] sm:$0xff]  ;;  %4225 = vmatprep.subr.bf16.mxu0 %v4224_v16 }
 0x455   :  { %v1208_v3 = vadd.f32 %v1206_v45, %v1192_v47  ;;  %v4234_v24 = vpack.c.bf16 %v1389_v41, %v1382_v2  ;;  %v4236_v45 = vpack.c.bf16 %v1388_v38, %v1381_v18  ;;  %v1393_v47 = vld [vmem:[#allocation8 + $0x150] sm:$0xff] }
 0x456   :  { %v1225_v32 = vadd.f32 %v1223_v23, %v1209_v10  ;;  %4227 = vmatpush1.bf16.msra.mxu0 %v4226_v40  ;;  %v4228_v23 = vpack.c.bf16 %v1401_v54, %v1394_v37  ;;  %v6139_v10 = vmov 0 }
 0x457   :  { %v1224_v25 = vadd.f32 %v1222_v26, %v1208_v3  ;;  %4235 = vmatprep.subr.bf16.mxu1 %v4234_v24  ;;  %v6140_v10 = vsel %vm5298_vm6, 4294967295, %v6139_v10  ;;  %v1400_v26 = vld [vmem:[#allocation8 + $0x188] sm:$0x3f] }
 0x458   :  { %v1241_v8 = vadd.f32 %v1239_v17, %v1225_v32  ;;  %6141 = vst [vmem:[#allocation16_spill] sm:$0xff] %v6140_v10  ;;  %4237 = vmatpush1.bf16.msra.mxu1 %v4236_v45  ;;  %v4231_v3 = vpack.c.bf16 %v1400_v26, %v1393_v47  ;;  %v1403_v17 = vld [vmem:[#allocation8 + $0x1a0] sm:$0x3f]  ;;  %4230 = vmatprep.subr.msk.bf16.mxu0 %vm5298_vm6, %v4228_v23  ;;  %v5506_v10 = vld [vmem:[#allocation7 + $0x68] sm:$0xff] }
 0x459   :  { %v1240_v36 = vadd.f32 %v1238_v35, %v1224_v25  ;;  %v1395_v32 = vld [vmem:[#allocation8 + $0x160] sm:$0xff]  ;;  %v1402_v35 = vld [vmem:[#allocation8 + $0x198] sm:$0x3f]  ;;  %v4238_v59 = vpack.c.bf16 %v1403_v17, %v1396_v5  ;;  %v1384_v25 = vld [vmem:[#allocation8 + $0x108] sm:$0xff] }
 0x45a   :  { %v1257_v58 = vadd.f32 %v1255_v39, %v1241_v8  ;;  %v4241_v14 = vpack.c.bf16 %v1402_v35, %v1395_v32  ;;  %v1391_v39 = vld [vmem:[#allocation8 + $0x140] sm:$0xff]  ;;  %4233 = vmatpush1.bf16.msk.msra.mxu0 %vm5298_vm6, %v4231_v3 }
 0x45b   :  { %v1256_v51 = vadd.f32 %v1254_v21, %v1240_v36  ;;  %v4244_v8 = vpack.c.bf16 %v1391_v39, %v1384_v25  ;;  %v1385_v21 = vld [vmem:[#allocation8 + $0x110] sm:$0xff]  ;;  %4240 = vmatprep.subr.msk.bf16.mxu1 %vm5298_vm6, %v4238_v59 }
 0x45c   :  { %v1273_v4 = vadd.f32 %v1271_v60, %v1257_v58  ;;  %v5308_v42 = vpack.c.bf16 %v1392_v11, %v1385_v21  ;;  %4243 = vmatpush1.bf16.msk.msra.mxu1 %vm5298_vm6, %v4241_v14 }
 0x45d   :  { %v1272_v43 = vadd.f32 %v1270_v9, %v1256_v51  ;;  %4245 = vmatprep.subr.bf16.mxu0 %v4244_v8 }
 0x45e   :  { %v1289_v63 = vadd.f32 %v1287_v57, %v1273_v4  ;;  %4255 = vmatprep.subr.bf16.mxu1 %v5308_v42 }
 0x45f   :  { %v1288_v27 = vadd.f32 %v1286_v44, %v1272_v43 }
 0x460   :  { %v1291_v19 = vmul.f32 0.5, %v1289_v63 }
 0x461   :  { %v1290_v20 = vmul.f32 0.5, %v1288_v27  ;;  %v3983_v27 = vld [vmem:[%s6107_s5] ss:$0 sm:$0xff] }
 0x462   :  { %v1293_v22 = vadd.f32 %v1291_v19, %v466_v12 }
 0x463   :  { %v1292_v7 = vadd.f32 %v1290_v20, %v461_v46  ;;  %v3984_v46 = vld [vmem:[%s6107_s5 + $0x1] ss:$0 sm:$0xff] }
 0x464   :  { %1298 = vrot.lane.b32.xlu1 %v1293_v22, %s4749_s4 }
 0x465   :  { %1296 = vrot.lane.b32.xlu0 %v1292_v7, %s4749_s4 }
 0x4d6   :  { %v1299_v36 = vpop.permute.xlu1 %1298 }
 0x4d7   :  { %v1303_v60 = vsub.f32 %v1293_v22, %v1299_v36  ;;  %v1297_v58 = vpop.permute.xlu0 %1296 }
 0x4d8   :  { %v1302_v9 = vsub.f32 %v1292_v7, %v1297_v58 }
 0x4d9   :  { %v1305_v51 = vmul.f32 0.5, %v1303_v60 }
 0x4da   :  { %v1304_v31 = vmul.f32 0.5, %v1302_v9 }
 0x4db   :  { %v1307_v57 = vmul.f32 %v1305_v51, %v1305_v51 }
 0x4dc   :  { %v1306_v4 = vmul.f32 %v1304_v31, %v1304_v31 }
 0x4dd   :  { %v1309_v44 = vadd.f32 1e-05, %v1307_v57 }
 0x4de   :  { %v1308_v43 = vadd.f32 1e-05, %v1306_v4 }
 0x4df   :  { %4481 = vrsqrt.f32 %v1309_v44 }
 0x4e0   :  { %4483 = vrsqrt.f32 %v1308_v43 }
 0x4e9   :  { %v4482_v63 = vpop.eup %4481 }
 0x4ea   :  { %v4484_v12 = vpop.eup %4483  ;;  %v1313_v19 = vmul.f32 %v4482_v63, %v1305_v51 }
 0x4eb   :  { %v1312_v20 = vmul.f32 %v4484_v12, %v1304_v31  ;;  %v6127_v12 = vmov -1.0  }
 0x4ec   :  { %v1319_v22 = vmul.f32 %v3983_v27, %v1313_v19 }
 0x4ed   :  { %v1318_v7 = vmul.f32 %v3983_v27, %v1312_v20 }
 0x4ee   :  { %v5319_v29 = vadd.f32 %v3984_v46, %v1319_v22 }
 0x4ef   :  { %v1324_v56 = vadd.f32 %v3984_v46, %v1318_v7 }
 0x4f0   :  { %v1329_v16 = vmul.f32 0.70710677, %v5319_v29 }
 0x4f1   :  { %v1328_v15 = vmul.f32 0.70710677, %v1324_v56 }
 0x4f2   :  { %v1335_v34 = vand.u32 2147483647, %v1329_v16  ;;  %vm1331_vm7 = vcmp.ge.f32.partialorder %v1329_v16, 0.0  ;;  %v1399_v16 = vld [vmem:[#allocation8 + $0x180] sm:$0xff] }
 0x4f3   :  { %v1334_v2 = vand.u32 2147483647, %v1328_v15  ;;  %vm1330_vm8 = vcmp.ge.f32.partialorder %v1328_v15, 0.0  ;;  %v1333_v19 = vsel %vm1331_vm7, 1.0, %v6127_v12 }
 0x4f4   :  { %v1337_v40 = vmul.f32 0.3275911, %v1335_v34  ;;  %v1361_v24 = vsub.f32 0.0, %v1335_v34  ;;  %v1332_v22 = vsel %vm1330_vm8, 1.0, %v6127_v12 }
 0x4f5   :  { %v1336_v41 = vmul.f32 0.3275911, %v1334_v2  ;;  %v1360_v45 = vsub.f32 0.0, %v1334_v2 }
 0x4f6   :  { %v1339_v18 = vadd.f32 1.0, %v1337_v40  ;;  %v1363_v54 = vmul.f32 %v1361_v24, %v1335_v34  ;;  %v1383_v34 = vld [vmem:[#allocation8 + $0x100] sm:$0xff]  ;;  %v1398_v40 = vld [vmem:[#allocation8 + $0x178] sm:$0xff] }
 0x4f7   :  { %v1338_v38 = vadd.f32 1.0, %v1336_v41  ;;  %v1362_v26 = vmul.f32 %v1360_v45, %v1334_v2  ;;  %v1390_v2 = vld [vmem:[#allocation8 + $0x138] sm:$0xff]  ;;  %v1405_v41 = vld [vmem:[#allocation8 + $0x1b0] sm:$0x3f] }
 0x4f8   :  { %4485 = vrcp.f32 %v1339_v18  ;;  %v1366_v17 = vmul.f32 1.442695, %v1363_v54  ;;  %v1326_v18 = vmul.f32 0.5, %v1324_v56  ;;  %v1406_v45 = vld [vmem:[#allocation8 + $0x1b8] sm:$0x3f]  ;;  %v4246_v15 = vpack.c.bf16 %v1390_v2, %v1383_v34 }
 0x4f9   :  { %4487 = vrcp.f32 %v1338_v38  ;;  %v1364_v59 = vmul.f32 1.442695, %v1362_v26  ;;  %v4248_v26 = vpack.c.bf16 %v1405_v41, %v1398_v40 }
 0x4fa   :  { %4489 = vpow2.f32 %v1366_v17  ;;  %v1408_v17 = vld [vmem:[#allocation8 + $0x18e] ss:$8 sm:$0xf] }
 0x4fb   :  { %4491 = vpow2.f32 %v1364_v59 }
 0x502   :  { %v4486_v37 = vpop.eup %4485 }
 0x503   :  { %v4488_v47 = vpop.eup %4487  ;;  %v1343_v23 = vmul.f32 1.0614054, %v4486_v37 }
 0x504   :  { %v1342_v5 = vmul.f32 1.0614054, %v4488_v47  ;;  %v4490_v57 = vpop.eup %4489 }
 0x505   :  { %v1345_v3 = vadd.f32 -1.4531521, %v1343_v23  ;;  %v4492_v44 = vpop.eup %4491  ;;  %v1404_v23 = vld [vmem:[#allocation8 + $0x1a8] sm:$0x3f] }
 0x506   :  { %v1344_v32 = vadd.f32 -1.4531521, %v1342_v5  ;;  %v4258_v5 = vpack.c.bf16 %v1406_v45, %v1399_v16  ;;  %v6145_v45 = vmov 5  }
 0x507   :  { %v1347_v35 = vmul.f32 %v4486_v37, %v1345_v3 }
 0x508   :  { %v1346_v14 = vmul.f32 %v4488_v47, %v1344_v32  ;;  %v1409_v32 = vld [vmem:[#allocation8 + $0x18e] ss:$8 sm:$0xf0] }
 0x509   :  { %v1349_v25 = vadd.f32 1.4214138, %v1347_v35  ;;  %v5356_v35 = vor.u32 %v1409_v32, %v1408_v17 }
 0x50a   :  { %v1348_v39 = vadd.f32 1.4214138, %v1346_v14 }
 0x50b   :  { %v1351_v8 = vmul.f32 %v4486_v37, %v1349_v25  ;;  %v1415_v59 = vrot.slane %v5356_v35, %v4901_v28  ;;  %v1423_v14 = vrot.slane %v5356_v35, %v4906_v30 }
 0x50c   :  { %v1350_v21 = vmul.f32 %v4488_v47, %v1348_v39 }
 0x50d   :  { %v1353_v11 = vadd.f32 -0.28449672, %v1351_v8 }
 0x50e   :  { %v1352_v36 = vadd.f32 -0.28449672, %v1350_v21 }
 0x50f   :  { %v1355_v60 = vmul.f32 %v4486_v37, %v1353_v11 }
 0x510   :  { %v1354_v58 = vmul.f32 %v4488_v47, %v1352_v36 }
 0x511   :  { %v1357_v9 = vadd.f32 0.2548296, %v1355_v60  ;;  %v1419_v60 = vrot.slane %v5356_v35, %v4913_v33 }
 0x512   :  { %v1356_v51 = vadd.f32 0.2548296, %v1354_v58 }
 0x513   :  { %v1359_v31 = vmul.f32 %v4486_v37, %v1357_v9  ;;  %v1327_v37 = vmul.f32 0.5, %v5319_v29  ;;  %v6142_v29 = vmov 0 }
 0x514   :  { %v1358_v4 = vmul.f32 %v4488_v47, %v1356_v51  ;;  %v1397_v47 = vld [vmem:[#allocation8 + $0x170] sm:$0xff]  ;;  %v6143_v29 = vsel %vm5336_vm10, 4294967295, %v6142_v29 }
 0x515   :  { %v1369_v43 = vmul.f32 %v4490_v57, %v1359_v31  ;;  %v4251_v56 = vpack.c.bf16 %v1404_v23, %v1397_v47  ;;  %6144 = vst [vmem:[#allocation17_spill] sm:$0xff] %v6143_v29 }
 0x516   :  { %v1368_v63 = vmul.f32 %v4492_v44, %v1358_v4 }
 0x517   :  { %v1371_v27 = vsub.f32 1.0, %v1369_v43 }
 0x518   :  { %v1370_v46 = vsub.f32 1.0, %v1368_v63  ;;  %v1431_v63 = vrot.slane %v5356_v35, %v4987_v62 }
 0x519   :  { %v1373_v20 = vmul.f32 %v1371_v27, %v1333_v19 }
 0x51a   :  { %v1372_v7 = vmul.f32 %v1370_v46, %v1332_v22 }
 0x51b   :  { %v1375_v24 = vadd.f32 1.0, %v1373_v20  ;;  %v1435_v20 = vrot.slane %v5356_v35, %v4984_v61 }
 0x51c   :  { %v1374_v38 = vadd.f32 1.0, %v1372_v7  ;;  %v1427_v7 = vrot.slane %v5356_v35, %v4934_v50 }
 0x51d   :  { %v1377_v3 = vmul.f32 %v1375_v24, %v1327_v37  ;;  %v6147_v37 = vmov 0  }
 0x51e   :  { %v1376_v54 = vmul.f32 %v1374_v38, %v1326_v18 }
 0x520   :  { %3987 = vmatmul.mubr.msk.f32.vlgmr.msra.gmra.mrb[12].mxu0 %vm1447_vm9, %v1376_v54  ;;  %3991 = vmatmul.mubr.msk.f32.vlgmr.msra.gmra.mrb[8].mxu1 %vm1447_vm9, %v1376_v54 }
 0x521   :  { %4247 = vmatpush1.bf16.msra.mxu0 %v4246_v15  ;;  %4257 = vmatpush3.bf16.msra.mxu1 %v5308_v42  ;;  %v4264_v42 = vpack.c.bf16 %v1377_v3, %v1376_v54  ;;  %v6146_v15 = vmov 1  }
 0x522   :  { %1546 = vmatprep.mubr.f32.mxu0 %v6129_v0  ;;  %1623 = vmatprep.mubr.f32.mxu1 %v6129_v0 }
 0x523   :  { %4250 = vmatprep.subr.msk.bf16.mxu0 %vm5298_vm6, %v4248_v26  ;;  %4260 = vmatprep.subr.msk.bf16.mxu1 %vm5298_vm6, %v4258_v5  ;;  %v6117_v26 = vmov 30  }
 0x524   :  { %3988 = vmatmul.mubr.msk.f32.gmra.mrb[14].mxu0 %vm1447_vm9, %v1377_v3  ;;  %3992 = vmatmul.mubr.msk.f32.gmra.mrb[10].mxu1 %vm1447_vm9, %v1377_v3 }
 0x525   :  { %4253 = vmatpush1.bf16.msk.msra.mxu0 %vm5298_vm6, %v4251_v56  ;;  %4263 = vmatpush3.bf16.msk.msra.mxu1 %vm5298_vm6, %v4258_v5 }
 0x526   :  { %4132 = vmatprep.mubr.msk.f32.mxu1 %vm1447_vm9, %v1376_v54  ;;  %4266 = vmatprep.subr.msk.bf16.mxu0 %vm5336_vm10, %v4264_v42 }
 0x527   :  { %1694 = vmatprep.mubr.f32.mxu0 %v6129_v0 }
 0x528   :  { %3995 = vmatmul.mubr.msk.f32.vlgmr.msra.gmra.mrb[16].mxu0 %vm1447_vm9, %v1376_v54  ;;  %4133 = vmatmul.mubr.msk.f32.vlgmr.msra.gmra.mrb[12].mxu1 %vm1447_vm9, %v1377_v3  ;;  %v6148_v54 = vmov 7  }
 0x529   :  { %1700 = vmatprep.mubr.f32.mxu0 %v6129_v0 }
 0x52c   :  { %3996 = vmatmul.mubr.msk.f32.gmra.mrb[18].mxu0 %vm1447_vm9, %v1377_v3 }
 0x52e   :  { %4269 = vmatpush3.bf16.xpose.msk.msra.mxu0 %vm5336_vm10, %v4264_v42 }
 0x5f3   :  { %v1542_v25 = vpop.f32.mrb[12].mxu0  ;;  %v1619_v39 = vpop.f32.mrb[8].mxu1 }
 0x5f4   :  { %v5362_v8 = vadd.f32 %v1542_v25, %v1415_v59  ;;  %v5364_v21 = vadd.f32 %v1619_v39, %v1423_v14  ;;  %v1544_v11 = vpop.f32.mrb[13].mxu0  ;;  %v1621_v36 = vpop.f32.mrb[9].mxu1 }
 0x5f5   :  { %v1545_v4 = vadd.f32 %v1544_v11, %v1419_v60  ;;  %v1622_v16 = vadd.f32 %v1621_v36, %v1427_v7 }
 0x5f6   :  { %1908 = vperm.xlu1 %4398, %v5364_v21   ;;  %1881 = vperm.xlu0 %4397, %v5364_v21  }
 0x5f7   :  { %4139 = vmatprep.mubr.msk.f32.mxu0 %vm1447_vm9, %v5362_v8  ;;  %v1548_v58 = vpop.f32.mrb[14].mxu0  ;;  %v1625_v9 = vpop.f32.mrb[10].mxu1 }
 0x5f8   :  { %v5372_v51 = vadd.f32 %v1548_v58, %v1415_v59  ;;  %v1550_v31 = vpop.f32.mrb[15].mxu0  ;;  %v1627_v57 = vpop.f32.mrb[11].mxu1  ;;  %v1626_v47 = vadd.f32 %v1625_v9, %v1423_v14 }
 0x5f9   :  { %v1551_v46 = vadd.f32 %v1550_v31, %v1419_v60  ;;  %v1628_v23 = vadd.f32 %v1627_v57, %v1427_v7 }
 0x5fa   :  { %4399 = vset.pattern.permute.xlu1 %v6123_v48  ;;  %4401 = vset.pattern.permute.xlu0 %v6121_v53 }
 0x5fb   :  { %4140 = vmatmul.mubr.msk.f32.vlgmr.msra.gmra.mrb[20].mxu0 %vm1447_vm9, %v5372_v51  ;;  %v5378_v44 = vpop.f32.mrb[12].mxu1  ;;  %1932 = vperm.xlu1 %4399, %v5364_v21   ;;  %v1696_v43 = vpop.f32.mrb[16].mxu0 }
 0x5fc   :  { %1980 = vperm.xlu0 %4401, %v5364_v21   ;;  %4142 = vmatprep.mubr.msk.f32.mxu0 %vm1447_vm9, %v1545_v4  ;;  %v1698_v27 = vpop.f32.mrb[17].mxu0  ;;  %v5385_v19 = vpop.f32.mrb[13].mxu1  ;;  %v1697_v34 = vadd.f32 %v1696_v43, %v1431_v63  ;;  %v5452_v43 = vld [vmem:[#allocation7] sm:$0xff] }
 0x5fd   :  { %v1699_v41 = vadd.f32 %v1698_v27, %v1435_v20 }
 0x5ff   :  { %4143 = vmatmul.mubr.msk.f32.gmra.mrb[22].mxu0 %vm1447_vm9, %v1551_v46  ;;  %4400 = vset.pattern.permute.xlu1 %v6125_v49  ;;  %v1702_v22 = vpop.f32.mrb[18].mxu0 }
 0x600   :  { %4403 = vset.pattern.permute.xlu0 %v6119_v55  ;;  %v1703_v2 = vadd.f32 %v1702_v22, %v1431_v63  ;;  %1956 = vperm.xlu1 %4400, %v5364_v21   ;;  %v1704_v40 = vpop.f32.mrb[19].mxu0 }
 0x601   :  { %2028 = vperm.xlu0 %4403, %v5364_v21   ;;  %v1705_v18 = vadd.f32 %v1704_v40, %v1435_v20  ;;  %2821 = vmatprep.mubr.f32.mxu0 %v6129_v0 }
 0x602   :  { %v5397_v38 = vpack.c.bf16 %v1703_v2, %v1697_v34  ;;  %v5458_v34 = vld [vmem:[#allocation7 + $0x20] sm:$0xff] }
 0x603   :  { %v4270_v24 = vpack.c.bf16 %v1705_v18, %v1699_v41 }
 0x604   :  { %4402 = vset.pattern.permute.xlu1 %v6145_v45 }
 0x605   :  { %4405 = vset.pattern.permute.xlu0 %v6146_v15  ;;  %2004 = vperm.xlu1 %4402, %v5364_v21  }
 0x606   :  { %1920 = vperm.xlu0 %4405, %v1622_v16   ;;  %4271 = vmatprep.subr.bf16.mxu1 %v4270_v24 }
 0x607   :  { %4273 = vmatpush3.bf16.msra.mxu1 %v4270_v24  ;;  %v5461_v24 = vld [vmem:[#allocation7 + $0x30] sm:$0xff] }
 0x608   :  { %4275 = vmatprep.subr.bf16.mxu1 %v5397_v38 }
 0x609   :  { %4404 = vset.pattern.permute.xlu1 %v6147_v37 }
 0x60a   :  { %4406 = vset.pattern.permute.xlu0 %v6123_v48  ;;  %1895 = vperm.xlu1 %4404, %v1622_v16  }
 0x60b   :  { %1944 = vperm.xlu0 %4406, %v1622_v16  }
 0x60e   :  { %4407 = vset.pattern.permute.xlu1 %v6125_v49 }
 0x60f   :  { %4411 = vset.pattern.permute.xlu0 %v6148_v54  ;;  %1968 = vperm.xlu1 %4407, %v1622_v16  }
 0x610   :  { %2064 = vperm.xlu0 %4411, %v1622_v16  }
 0x613   :  { %4408 = vset.pattern.permute.xlu1 %v6121_v53 }
 0x614   :  { %4413 = vset.pattern.permute.xlu0 %v6147_v37  ;;  %1992 = vperm.xlu1 %4408, %v1622_v16  }
 0x615   :  { %1886 = vperm.xlu0 %4413, %v1626_v47  }
 0x618   :  { %4409 = vset.pattern.permute.xlu1 %v6145_v45 }
 0x619   :  { %4415 = vset.pattern.permute.xlu0 %v6123_v48  ;;  %2016 = vperm.xlu1 %4409, %v1622_v16  }
 0x61a   :  { %1936 = vperm.xlu0 %4415, %v1626_v47  }
 0x61d   :  { %4410 = vset.pattern.permute.xlu1 %v6119_v55 }
 0x61e   :  { %4423 = vset.pattern.permute.xlu0 %v6125_v49  ;;  %2040 = vperm.xlu1 %4410, %v1622_v16  }
 0x61f   :  { %1972 = vperm.xlu0 %4423, %v1628_v23  }
 0x622   :  { %4412 = vset.pattern.permute.xlu1 %v6117_v26 }
 0x623   :  { %4425 = vset.pattern.permute.xlu0 %v6145_v45  ;;  %2118 = vperm.xlu1 %4412, %v1545_v4  }
 0x624   :  { %2020 = vperm.xlu0 %4425, %v1628_v23  }
 0x627   :  { %4414 = vset.pattern.permute.xlu1 %v6146_v15 }
 0x628   :  { %4428 = vset.pattern.permute.xlu0 %v6117_v26  ;;  %1912 = vperm.xlu1 %4414, %v1626_v47  }
 0x629   :  { %2122 = vperm.xlu0 %4428, %v1551_v46   ;;  %v5455_v46 = vld [vmem:[#allocation7 + $0x10] sm:$0xff] }
 0x62c   :  { %4416 = vset.pattern.permute.xlu1 %v6125_v49  ;;  %v5479_v49 = vld [vmem:[#allocation7 + $0x60] sm:$0xff] }
 0x62d   :  { %4429 = vset.pattern.permute.xlu0 %v6148_v54  ;;  %1960 = vperm.xlu1 %4416, %v1626_v47  }
 0x62e   :  { %2056 = vperm.xlu0 %4429, %v1626_v47  }
 0x631   :  { %4417 = vset.pattern.permute.xlu1 %v6121_v53 }
 0x632   :  { %1984 = vperm.xlu1 %4417, %v1626_v47   ;;  %4432 = vset.pattern.permute.xlu0 %v6146_v15 }
 0x636   :  { %4418 = vset.pattern.permute.xlu1 %v6145_v45 }
 0x637   :  { %2008 = vperm.xlu1 %4418, %v1626_v47  }
 0x63b   :  { %4419 = vset.pattern.permute.xlu1 %v6119_v55 }
 0x63c   :  { %2032 = vperm.xlu1 %4419, %v1626_v47   ;;  %v5464_v47 = vld [vmem:[#allocation7 + $0x18] sm:$0xff] }
 0x640   :  { %4420 = vset.pattern.permute.xlu1 %v6147_v37 }
 0x641   :  { %1900 = vperm.xlu1 %4420, %v1628_v23  }
 0x645   :  { %4421 = vset.pattern.permute.xlu1 %v6146_v15 }
 0x646   :  { %1924 = vperm.xlu1 %4421, %v1628_v23  }
 0x64a   :  { %4422 = vset.pattern.permute.xlu1 %v6123_v48 }
 0x64b   :  { %1948 = vperm.xlu1 %4422, %v1628_v23  }
 0x64f   :  { %4424 = vset.pattern.permute.xlu1 %v6121_v53  ;;  %v5476_v53 = vld [vmem:[#allocation7 + $0x28] sm:$0xff] }
 0x650   :  { %1996 = vperm.xlu1 %4424, %v1628_v23  }
 0x654   :  { %4426 = vset.pattern.permute.xlu1 %v6119_v55 }
 0x655   :  { %2044 = vperm.xlu1 %4426, %v1628_v23  }
 0x659   :  { %4427 = vset.pattern.permute.xlu1 %v6148_v54 }
 0x65a   :  { %2068 = vperm.xlu1 %4427, %v1628_v23  }
 0x65e   :  { %2052 = vperm.xlu1 %4427, %v5364_v21  }
 0x662   :  { %4430 = vset.pattern.permute.xlu1 %v6117_v26  ;;  %v5473_v26 = vld [vmem:[#allocation7 + $0x50] sm:$0xff] }
 0x663   :  { %2076 = vperm.xlu1 %4430, %v5362_v8  }
 0x667   :  { %2080 = vperm.xlu1 %4430, %v5372_v51  }
 0x66b   :  { %4431 = vset.pattern.permute.xlu1 %v6147_v37 }
 0x675   :  { %v1909_v5 = vpop.permute.xlu1 %1908  ;;  %v1882_v25 = vpop.permute.xlu0 %1881 }
 0x676   :  { %v1915_v12 = vmul.f32 %v5455_v46, %v1909_v5 }
 0x67a   :  { %v1933_v3 = vpop.permute.xlu1 %1932 }
 0x67b   :  { %v5438_v21 = vpop.permute.xlu0 %1980 }
 0x67f   :  { %v5434_v56 = vpop.permute.xlu1 %1956 }
 0x680   :  { %v5442_v8 = vpop.permute.xlu0 %2028  ;;  %v1963_v15 = vmul.f32 %v5461_v24, %v5434_v56 }
 0x684   :  { %v5436_v42 = vpop.permute.xlu1 %2004 }
 0x685   :  { %v1921_v60 = vpop.permute.xlu0 %1920 }
 0x686   :  { %v1927_v20 = vmul.f32 %v5455_v46, %v1921_v60 }
 0x689   :  { %v1896_v17 = vpop.permute.xlu1 %1895 }
 0x68a   :  { %v1945_v51 = vpop.permute.xlu0 %1944  ;;  %v1903_v63 = vmul.f32 %v5452_v43, %v1896_v17  ;;  %v5467_v17 = vld [vmem:[#allocation7 + $0x40] sm:$0xff] }
 0x68b   :  { %v1951_v2 = vmul.f32 %v5458_v34, %v1945_v51 }
 0x68c   :  { %v1929_v7 = vadd.f32 %v1927_v20, %v1903_v63  ;;  %v5470_v63 = vld [vmem:[#allocation7 + $0x8] sm:$0xff] }
 0x68e   :  { %v1969_v32 = vpop.permute.xlu1 %1968  ;;  %v1953_v18 = vadd.f32 %v1951_v2, %v1929_v7 }
 0x68f   :  { %v2065_v57 = vpop.permute.xlu0 %2064  ;;  %v1975_v16 = vmul.f32 %v5461_v24, %v1969_v32 }
 0x691   :  { %v1977_v51 = vadd.f32 %v1975_v16, %v1953_v18  ;;  %v5484_v18 = vld [vmem:[#allocation7 + $0x38] sm:$0xff] }
 0x693   :  { %v1993_v59 = vpop.permute.xlu1 %1992 }
 0x694   :  { %v1887_v27 = vpop.permute.xlu0 %1886  ;;  %v1999_v60 = vmul.f32 %v5467_v17, %v1993_v59 }
 0x696   :  { %v2001_v48 = vadd.f32 %v1999_v60, %v1977_v51 }
 0x698   :  { %v2017_v14 = vpop.permute.xlu1 %2016 }
 0x699   :  { %v1937_v40 = vpop.permute.xlu0 %1936  ;;  %v2023_v7 = vmul.f32 %v5473_v26, %v2017_v14 }
 0x69b   :  { %v2025_v0 = vadd.f32 %v2023_v7, %v2001_v48  ;;  %v5498_v7 = vld [vmem:[#allocation7 + $0x70] sm:$0xff] }
 0x69d   :  { %v2041_v39 = vpop.permute.xlu1 %2040 }
 0x69e   :  { %v1973_v2 = vpop.permute.xlu0 %1972  ;;  %v2047_v59 = vmul.f32 %v5479_v49, %v2041_v39  ;;  %v5492_v39 = vld [vmem:[#allocation7 + $0x48] sm:$0xff] }
 0x69f   :  { %v1976_v14 = vmul.f32 %v5484_v18, %v1973_v2 }
 0x6a0   :  { %v2049_v54 = vadd.f32 %v2047_v59, %v2025_v0  ;;  %v1890_v0 = vmul.f32 %v5470_v63, %v1887_v27  ;;  %v1987_v27 = vmul.f32 %v5467_v17, %v5438_v21 }
 0x6a2   :  { %v5440_v11 = vpop.permute.xlu1 %2118 }
 0x6a3   :  { %v2021_v2 = vpop.permute.xlu0 %2020 }
 0x6a7   :  { %v1913_v36 = vpop.permute.xlu1 %1912 }
 0x6a8   :  { %v1916_v48 = vmul.f32 %v5464_v47, %v1913_v36  ;;  %v2123_v21 = vpop.permute.xlu0 %2122 }
 0x6aa   :  { %v1918_v36 = vadd.f32 %v1916_v48, %v1890_v0  ;;  %v5516_v48 = vld [vmem:[#allocation7 + $0x78] sm:$0xff] }
 0x6ac   :  { %v5444_v58 = vpop.permute.xlu1 %1960 }
 0x6b1   :  { %v5446_v9 = vpop.permute.xlu1 %1984 }
 0x6b6   :  { %v5448_v31 = vpop.permute.xlu1 %2008 }
 0x6bb   :  { %v5450_v4 = vpop.permute.xlu1 %2032 }
 0x6c0   :  { %v1901_v22 = vpop.permute.xlu1 %1900 }
 0x6c1   :  { %v1904_v20 = vmul.f32 %v5470_v63, %v1901_v22  ;;  %v1889_v22 = vmul.f32 %v5452_v43, %v1882_v25 }
 0x6c3   :  { %v1917_v25 = vadd.f32 %v1915_v12, %v1889_v22 }
 0x6c5   :  { %v1925_v41 = vpop.permute.xlu1 %1924 }
 0x6c6   :  { %v1928_v23 = vmul.f32 %v5464_v47, %v1925_v41 }
 0x6c8   :  { %v1930_v32 = vadd.f32 %v1928_v23, %v1904_v20  ;;  %v1939_v20 = vmul.f32 %v5458_v34, %v1933_v3  ;;  %v2071_v3 = vmul.f32 %v5498_v7, %v2065_v57 }
 0x6ca   :  { %v1949_v55 = vpop.permute.xlu1 %1948  ;;  %v2073_v22 = vadd.f32 %v2071_v3, %v2049_v54  ;;  %v2011_v54 = vmul.f32 %v5473_v26, %v5436_v42 }
 0x6cb   :  { %v1952_v41 = vmul.f32 %v5476_v53, %v1949_v55 }
 0x6cd   :  { %v1954_v16 = vadd.f32 %v1952_v41, %v1930_v32 }
 0x6ce   :  { %v5487_v23 = vpop.f32.mrb[20].mxu0 }
 0x6cf   :  { %v5490_v55 = vpop.f32.mrb[21].mxu0  ;;  %v1978_v60 = vadd.f32 %v1976_v14, %v1954_v16  ;;  %v1997_v51 = vpop.permute.xlu1 %1996  ;;  %v1941_v14 = vadd.f32 %v1939_v20, %v1917_v25  ;;  %v5502_v16 = vld [vmem:[#allocation7 + $0x58] sm:$0xff]  ;;  %v1940_v20 = vmul.f32 %v5476_v53, %v1937_v40 }
 0x6d0   :  { %v2000_v5 = vmul.f32 %v5492_v39, %v1997_v51  ;;  %v2024_v12 = vmul.f32 %v5502_v16, %v2021_v2 }
 0x6d1   :  { %v1965_v37 = vadd.f32 %v1963_v15, %v1941_v14  ;;  %v1964_v15 = vmul.f32 %v5484_v18, %v5444_v58  ;;  %v2012_v58 = vmul.f32 %v5502_v16, %v5448_v31 }
 0x6d2   :  { %v2002_v32 = vadd.f32 %v2000_v5, %v1978_v60  ;;  %v4144_v41 = vpop.f32.mrb[22].mxu0 }
 0x6d3   :  { %v1870_v59 = vpop.f32.mrb[23].mxu0  ;;  %v1989_v5 = vadd.f32 %v1987_v27, %v1965_v37  ;;  %v2126_v37 = vadd.f32 %v4144_v41, %v2123_v21 }
 0x6d4   :  { %v2125_v56 = vadd.f32 %v5440_v11, %v1870_v59  ;;  %v2045_v51 = vpop.permute.xlu1 %2044  ;;  %v2026_v29 = vadd.f32 %v2024_v12, %v2002_v32  ;;  %v1942_v11 = vadd.f32 %v1940_v20, %v1918_v36  ;;  %v2035_v12 = vmul.f32 %v5479_v49, %v5442_v8 }
 0x6d5   :  { %v2048_v57 = vmul.f32 %v5506_v10, %v2045_v51  ;;  %v2013_v14 = vadd.f32 %v2011_v54, %v1989_v5 }
 0x6d6   :  { %v2127_v45 = vadd.f32 %v2125_v56, %v2073_v22  ;;  %v1966_v0 = vadd.f32 %v1964_v15, %v1942_v11  ;;  %v2036_v56 = vmul.f32 %v5506_v10, %v5450_v4 }
 0x6d7   :  { %v2050_v2 = vadd.f32 %v2048_v57, %v2026_v29  ;;  %v2037_v36 = vadd.f32 %v2035_v12, %v2013_v14  ;;  %v2057_v57 = vpop.permute.xlu0 %2056 }
 0x6d8   :  { %v2129_v60 = vmul.f32 0.18257418, %v2127_v45  ;;  %v1988_v45 = vmul.f32 %v5492_v39, %v5446_v9  ;;  %v2060_v8 = vmul.f32 %v5516_v48, %v2057_v57 }
 0x6d9   :  { %v2069_v25 = vpop.permute.xlu1 %2068 }
 0x6da   :  { %v2072_v3 = vmul.f32 %v5516_v48, %v2069_v25  ;;  %v2131_v32 = vadd.f32 %v2129_v60, %v5088_v52  ;;  %v1990_v22 = vadd.f32 %v1988_v45, %v1966_v0 }
 0x6dc   :  { %v2074_v40 = vadd.f32 %v2072_v3, %v2050_v2  ;;  %v2133_v42 = vsel %vm156_vm0, %v2131_v32, -inf  ;;  %v2014_v51 = vadd.f32 %v2012_v58, %v1990_v22 }
 0x6dd   :  { %2134 = vmax.xlane.f32.xlu0 %v2133_v42  ;;  %v2053_v29 = vpop.permute.xlu1 %2052 }
 0x6de   :  { %v2128_v59 = vadd.f32 %v2126_v37, %v2074_v40  ;;  %v2059_v9 = vmul.f32 %v5498_v7, %v2053_v29  ;;  %v2038_v31 = vadd.f32 %v2036_v56, %v2014_v51  ;;  %v4565_v56 = vld [vmem:[#allocation5] sm:$0xff] }
 0x6e0   :  { %v2130_v41 = vmul.f32 0.18257418, %v2128_v59  ;;  %v2061_v60 = vadd.f32 %v2059_v9, %v2037_v36  ;;  %v2062_v25 = vadd.f32 %v2060_v8, %v2038_v31  ;;  %v4566_v31 = vld [vmem:[#allocation5 + $0x8] sm:$0xff] }
 0x6e2   :  { %v2077_v27 = vpop.permute.xlu1 %2076  ;;  %v2132_v20 = vadd.f32 %v2130_v41, %v5103_v1 }
 0x6e3   :  { %v2083_v5 = vadd.f32 %v2077_v27, %v5490_v55 }
 0x6e4   :  { %v2136_v54 = vsel %vm156_vm0, %v2132_v20, -inf }
 0x6e5   :  { %v2085_v11 = vadd.f32 %v2083_v5, %v2061_v60  ;;  %2137 = vmax.xlane.f32.xlu1 %v2136_v54 }
 0x6e6   :  { %v2081_v4 = vpop.permute.xlu1 %2080 }
 0x6e7   :  { %v2087_v15 = vmul.f32 0.18257418, %v2085_v11  ;;  %v2084_v2 = vadd.f32 %v5487_v23, %v2081_v4 }
 0x6e9   :  { %v2086_v3 = vadd.f32 %v2084_v2, %v2062_v25  ;;  %v2089_v21 = vadd.f32 %v2087_v15, %v5088_v52 }
 0x6eb   :  { %v2088_v45 = vmul.f32 0.18257418, %v2086_v3  ;;  %v2091_v37 = vsel %vm156_vm0, %v2089_v21, -inf }
 0x6ec   :  { %2092 = vmax.xlane.f32.xlu0 %v2091_v37 }
 0x6ed   :  { %v2090_v55 = vadd.f32 %v2088_v45, %v5103_v1 }
 0x6ef   :  { %v2094_v40 = vsel %vm156_vm0, %v2090_v55, -inf }
 0x6f0   :  { %2095 = vmax.xlane.f32.xlu0 %v2094_v40 }
 0x76a   :  { %v2135_v42 = vpop.xlane.xlu0 %2134 }
 0x76b   :  { %v2139_v14 = vsub.f32 %v2131_v32, %v2135_v42 }
 0x76d   :  { %v2141_v0 = vmul.f32 1.442695, %v2139_v14 }
 0x76f   :  { %4493 = vpow2.f32 %v2141_v0 }
 0x772   :  { %v2138_v58 = vpop.xlane.xlu1 %2137 }
 0x773   :  { %v2140_v29 = vsub.f32 %v2132_v20, %v2138_v58 }
 0x775   :  { %v2143_v59 = vmul.f32 1.442695, %v2140_v29 }
 0x777   :  { %4495 = vpow2.f32 %v2143_v59 }
 0x779   :  { %v4494_v23 = vpop.eup %4493  ;;  %v2093_v12 = vpop.xlane.xlu0 %2092 }
 0x77a   :  { %v2097_v22 = vsub.f32 %v2089_v21, %v2093_v12  ;;  %v2145_v9 = vmul.f32 %v4565_v56, %v4494_v23 }
 0x77c   :  { %v2099_v41 = vmul.f32 1.442695, %v2097_v22  ;;  %v2147_v51 = vsel %vm156_vm0, %v2145_v9, 0.0 }
 0x77d   :  { %2148 = vadd.xlane.f32.xlu1 %v2147_v51  ;;  %v2096_v36 = vpop.xlane.xlu0 %2095 }
 0x77e   :  { %4497 = vpow2.f32 %v2099_v41  ;;  %v2098_v57 = vsub.f32 %v2090_v55, %v2096_v36  ;;  %v6149_v41 = vmov 0.0  }
 0x780   :  { %v2101_v27 = vmul.f32 1.442695, %v2098_v57 }
 0x781   :  { %v4496_v32 = vpop.eup %4495 }
 0x782   :  { %4499 = vpow2.f32 %v2101_v27  ;;  %v2146_v60 = vmul.f32 %v4566_v31, %v4496_v32 }
 0x784   :  { %v2150_v20 = vsel %vm156_vm0, %v2146_v60, 0.0 }
 0x785   :  { %2151 = vadd.xlane.f32.xlu0 %v2150_v20 }
 0x788   :  { %v4498_v5 = vpop.eup %4497 }
 0x789   :  { %v2103_v54 = vmul.f32 %v4565_v56, %v4498_v5 }
 0x78b   :  { %v2105_v8 = vsel %vm156_vm0, %v2103_v54, 0.0 }
 0x78c   :  { %v4500_v11 = vpop.eup %4499  ;;  %2106 = vadd.xlane.f32.xlu1 %v2105_v8 }
 0x78d   :  { %v2104_v4 = vmul.f32 %v4566_v31, %v4500_v11 }
 0x78f   :  { %v2108_v15 = vsel %vm156_vm0, %v2104_v4, 0.0 }
 0x790   :  { %2109 = vadd.xlane.f32.xlu0 %v2108_v15 }
 0x80a   :  { %v2149_v25 = vpop.xlane.xlu1 %2148 }
 0x80b   :  { %v2153_v2 = vmax.f32 %v2149_v25, 1e-30 }
 0x80d   :  { %4501 = vrcp.f32 %v2153_v2 }
 0x812   :  { %v2152_v3 = vpop.xlane.xlu0 %2151 }
 0x813   :  { %v2154_v21 = vmax.f32 %v2152_v3, 1e-30 }
 0x815   :  { %4503 = vrcp.f32 %v2154_v21 }
 0x817   :  { %v4502_v45 = vpop.eup %4501 }
 0x818   :  { %v5543_v37 = vmul.f32 %v4502_v45, %v2145_v9 }
 0x819   :  { %v2107_v55 = vpop.xlane.xlu1 %2106 }
 0x81a   :  { %4149 = vmatprep.mubr.msk.f32.mxu1 %vm156_vm0, %v5543_v37  ;;  %v2111_v40 = vmax.f32 %v2107_v55, 1e-30 }
 0x81c   :  { %4505 = vrcp.f32 %v2111_v40 }
 0x81d   :  { %v2110_v42 = vpop.xlane.xlu0 %2109 }
 0x81e   :  { %v2112_v14 = vmax.f32 %v2110_v42, 1e-30 }
 0x81f   :  { %v4504_v0 = vpop.eup %4503 }
 0x820   :  { %v5547_v58 = vmul.f32 %v4504_v0, %v2146_v60  ;;  %4507 = vrcp.f32 %v2112_v14  ;;  %v2341_v14 = vmul.f32 %v5452_v43, %v5543_v37 }
 0x822   :  { %4150 = vmatmul.mubr.msk.f32.vlgmr.msra.gmra.mrb[14].mxu1 %vm156_vm0, %v5547_v58 }
 0x823   :  { %4277 = vmatpush3.bf16.msra.mxu1 %v5397_v38 }
 0x826   :  { %v4506_v29 = vpop.eup %4505 }
 0x827   :  { %v2115_v59 = vmul.f32 %v4506_v29, %v2103_v54  ;;  %v2343_v29 = vsel %vm156_vm0, %v2341_v14, 0.0 }
 0x829   :  { %4156 = vmatprep.mubr.msk.f32.mxu1 %vm156_vm0, %v2115_v59  ;;  %v2357_v23 = vmul.f32 %v5455_v46, %v2115_v59  ;;  %v2389_v9 = vmul.f32 %v5458_v34, %v2115_v59  ;;  %v2421_v57 = vmul.f32 %v5461_v24, %v2115_v59  ;;  %v2453_v60 = vmul.f32 %v5467_v17, %v2115_v59 }
 0x82a   :  { %v4508_v12 = vpop.eup %4507  ;;  %v2485_v8 = vmul.f32 %v5473_v26, %v2115_v59  ;;  %v2517_v25 = vmul.f32 %v5479_v49, %v2115_v59  ;;  %v2549_v45 = vmul.f32 %v5498_v7, %v2115_v59 }
 0x82b   :  { %v5554_v22 = vmul.f32 %v4508_v12, %v2104_v4  ;;  %v2359_v56 = vsel %vm156_vm0, %v2357_v23, 0.0  ;;  %v2391_v51 = vsel %vm156_vm0, %v2389_v9, 0.0  ;;  %v2423_v32 = vsel %vm156_vm0, %v2421_v57, 0.0 }
 0x82c   :  { %2360 = vadd.xlane.f32.xlu0 %v2359_v56  ;;  %v2455_v5 = vsel %vm156_vm0, %v2453_v60, 0.0  ;;  %v2487_v4 = vsel %vm156_vm0, %v2485_v8, 0.0  ;;  %v2519_v3 = vsel %vm156_vm0, %v2517_v25, 0.0  ;;  %v2551_v40 = vsel %vm156_vm0, %v2549_v45, 0.0 }
 0x82d   :  { %4157 = vmatmul.mubr.msk.f32.vlgmr.msra.gmra.mrb[14].mxu1 %vm156_vm0, %v5554_v22  ;;  %v2326_v38 = vmul.f32 %v5470_v63, %v5554_v22  ;;  %v2358_v27 = vmul.f32 %v5464_v47, %v5554_v22  ;;  %v2390_v20 = vmul.f32 %v5476_v53, %v5554_v22  ;;  %v2422_v11 = vmul.f32 %v5484_v18, %v5554_v22 }
 0x82e   :  { %2898 = vmatprep.mubr.f32.mxu1 %v6149_v41  ;;  %v2454_v2 = vmul.f32 %v5492_v39, %v5554_v22  ;;  %v2486_v55 = vmul.f32 %v5502_v16, %v5554_v22  ;;  %v2518_v0 = vmul.f32 %v5506_v10, %v5554_v22  ;;  %v2373_v12 = vmul.f32 %v5455_v46, %v5543_v37 }
 0x82f   :  { %v2330_v36 = vsel %vm156_vm0, %v2326_v38, 0.0  ;;  %v2362_v31 = vsel %vm156_vm0, %v2358_v27, 0.0  ;;  %v2394_v54 = vsel %vm156_vm0, %v2390_v20, 0.0  ;;  %v2426_v15 = vsel %vm156_vm0, %v2422_v11, 0.0 }
 0x830   :  { %2392 = vadd.xlane.f32.xlu0 %v2391_v51  ;;  %2331 = vadd.xlane.f32.xlu1 %v2330_v36  ;;  %v2458_v21 = vsel %vm156_vm0, %v2454_v2, 0.0  ;;  %v2490_v42 = vsel %vm156_vm0, %v2486_v55, 0.0  ;;  %v2522_v23 = vsel %vm156_vm0, %v2518_v0, 0.0  ;;  %v2325_v56 = vmul.f32 %v5452_v43, %v2115_v59 }
 0x831   :  { %v2375_v9 = vsel %vm156_vm0, %v2373_v12, 0.0  ;;  %v2405_v51 = vmul.f32 %v5458_v34, %v5543_v37  ;;  %v2342_v36 = vmul.f32 %v5470_v63, %v5547_v58  ;;  %v2437_v43 = vmul.f32 %v5461_v24, %v5543_v37 }
 0x832   :  { %v2327_v38 = vsel %vm156_vm0, %v2325_v56, 0.0  ;;  %v2374_v59 = vmul.f32 %v5464_v47, %v5547_v58  ;;  %v2469_v63 = vmul.f32 %v5467_v17, %v5543_v37  ;;  %v2501_v47 = vmul.f32 %v5473_v26, %v5543_v37 }
 0x833   :  { %v2407_v57 = vsel %vm156_vm0, %v2405_v51, 0.0  ;;  %v2346_v46 = vsel %vm156_vm0, %v2342_v36, 0.0  ;;  %v2439_v27 = vsel %vm156_vm0, %v2437_v43, 0.0  ;;  %v2438_v60 = vmul.f32 %v5484_v18, %v5547_v58  ;;  %v5660_v51 = vld [vmem:[#allocation10 + $0x10] sm:$0xff] }
 0x834   :  { %2424 = vadd.xlane.f32.xlu0 %v2423_v32  ;;  %2363 = vadd.xlane.f32.xlu1 %v2362_v31  ;;  %v2378_v34 = vsel %vm156_vm0, %v2374_v59, 0.0  ;;  %v2406_v32 = vmul.f32 %v5476_v53, %v5547_v58  ;;  %v2471_v31 = vsel %vm156_vm0, %v2469_v63, 0.0  ;;  %v2503_v20 = vsel %vm156_vm0, %v2501_v47, 0.0 }
 0x835   :  { %v2442_v17 = vsel %vm156_vm0, %v2438_v60, 0.0  ;;  %v2533_v53 = vmul.f32 %v5479_v49, %v5543_v37  ;;  %v2565_v18 = vmul.f32 %v5498_v7, %v5543_v37  ;;  %v2502_v8 = vmul.f32 %v5502_v16, %v5547_v58 }
 0x836   :  { %v2410_v24 = vsel %vm156_vm0, %v2406_v32, 0.0  ;;  %v2550_v16 = vmul.f32 %v5516_v48, %v5554_v22 }
 0x837   :  { %v2567_v11 = vsel %vm156_vm0, %v2565_v18, 0.0  ;;  %v2506_v49 = vsel %vm156_vm0, %v2502_v8, 0.0  ;;  %v2400_v8 = vrot.slane %v5660_v51, %v4906_v30 }
 0x838   :  { %2456 = vadd.xlane.f32.xlu0 %v2455_v5  ;;  %2395 = vadd.xlane.f32.xlu1 %v2394_v54  ;;  %v2470_v5 = vmul.f32 %v5492_v39, %v5547_v58  ;;  %v2535_v54 = vsel %vm156_vm0, %v2533_v53, 0.0  ;;  %v2566_v39 = vmul.f32 %v5516_v48, %v5547_v58  ;;  %v2554_v37 = vsel %vm156_vm0, %v2550_v16, 0.0 }
 0x83a   :  { %v2474_v26 = vsel %vm156_vm0, %v2470_v5, 0.0 }
 0x83c   :  { %2488 = vadd.xlane.f32.xlu0 %v2487_v4  ;;  %2427 = vadd.xlane.f32.xlu1 %v2426_v15  ;;  %v2534_v4 = vmul.f32 %v5506_v10, %v5547_v58  ;;  %v2570_v15 = vsel %vm156_vm0, %v2566_v39, 0.0 }
 0x83e   :  { %v2538_v7 = vsel %vm156_vm0, %v2534_v4, 0.0 }
 0x840   :  { %2520 = vadd.xlane.f32.xlu0 %v2519_v3  ;;  %2459 = vadd.xlane.f32.xlu1 %v2458_v21 }
 0x844   :  { %2552 = vadd.xlane.f32.xlu0 %v2551_v40  ;;  %2491 = vadd.xlane.f32.xlu1 %v2490_v42 }
 0x848   :  { %2344 = vadd.xlane.f32.xlu0 %v2343_v29  ;;  %2523 = vadd.xlane.f32.xlu1 %v2522_v23 }
 0x84c   :  { %2376 = vadd.xlane.f32.xlu0 %v2375_v9  ;;  %2328 = vadd.xlane.f32.xlu1 %v2327_v38 }
 0x850   :  { %2408 = vadd.xlane.f32.xlu0 %v2407_v57  ;;  %2347 = vadd.xlane.f32.xlu1 %v2346_v46  ;;  %v2336_v57 = vrot.slane %v5660_v51, %v4901_v28  ;;  %v5664_v46 = vld [vmem:[#allocation10 + $0x18] sm:$0xff] }
 0x851   :  { %v2352_v59 = vrot.slane %v5664_v46, %v4901_v28 }
 0x854   :  { %2440 = vadd.xlane.f32.xlu0 %v2439_v27  ;;  %2379 = vadd.xlane.f32.xlu1 %v2378_v34  ;;  %v2368_v34 = vrot.slane %v5660_v51, %v4913_v33 }
 0x858   :  { %2472 = vadd.xlane.f32.xlu0 %v2471_v31  ;;  %2411 = vadd.xlane.f32.xlu1 %v2410_v24 }
 0x85c   :  { %2504 = vadd.xlane.f32.xlu0 %v2503_v20  ;;  %2443 = vadd.xlane.f32.xlu1 %v2442_v17  ;;  %v2384_v17 = vrot.slane %v5664_v46, %v4913_v33 }
 0x860   :  { %2536 = vadd.xlane.f32.xlu0 %v2535_v54  ;;  %2475 = vadd.xlane.f32.xlu1 %v2474_v26 }
 0x864   :  { %2568 = vadd.xlane.f32.xlu0 %v2567_v11  ;;  %2507 = vadd.xlane.f32.xlu1 %v2506_v49 }
 0x868   :  { %2571 = vadd.xlane.f32.xlu0 %v2570_v15  ;;  %2539 = vadd.xlane.f32.xlu1 %v2538_v7  ;;  %v2416_v15 = vrot.slane %v5664_v46, %v4906_v30 }
 0x86c   :  { %2555 = vadd.xlane.f32.xlu1 %v2554_v37 }
 0x8b9   :  { %v2361_v2 = vpop.xlane.xlu0 %2360 }
 0x8ba   :  { %v2369_v18 = vmul.f32 %v2368_v34, %v2361_v2 }
 0x8bd   :  { %v2332_v25 = vpop.xlane.xlu1 %2331  ;;  %v2393_v21 = vpop.xlane.xlu0 %2392 }
 0x8be   :  { %v2338_v27 = vmul.f32 %v2336_v57, %v2332_v25 }
 0x8c1   :  { %v2364_v3 = vpop.xlane.xlu1 %2363  ;;  %v2425_v10 = vpop.xlane.xlu0 %2424 }
 0x8c2   :  { %v2370_v54 = vmul.f32 %v2368_v34, %v2364_v3  ;;  %v2432_v3 = vrot.slane %v5660_v51, %v4934_v50 }
 0x8c5   :  { %v2396_v45 = vpop.xlane.xlu1 %2395  ;;  %v5646_v55 = vpop.xlane.xlu0 %2456 }
 0x8c6   :  { %v2402_v37 = vmul.f32 %v2400_v8, %v2396_v45  ;;  %v2464_v45 = vrot.slane %v5660_v51, %v4987_v62 }
 0x8c9   :  { %v2428_v58 = vpop.xlane.xlu1 %2427  ;;  %v5650_v42 = vpop.xlane.xlu0 %2488 }
 0x8cd   :  { %v5648_v40 = vpop.xlane.xlu1 %2459  ;;  %v5654_v48 = vpop.xlane.xlu0 %2520 }
 0x8d1   :  { %v5652_v14 = vpop.xlane.xlu1 %2491  ;;  %v5658_v0 = vpop.xlane.xlu0 %2552 }
 0x8d5   :  { %v5656_v22 = vpop.xlane.xlu1 %2523  ;;  %v2345_v23 = vpop.xlane.xlu0 %2344 }
 0x8d6   :  { %v2353_v20 = vmul.f32 %v2352_v59, %v2345_v23 }
 0x8d9   :  { %v2329_v29 = vpop.xlane.xlu1 %2328  ;;  %v2377_v56 = vpop.xlane.xlu0 %2376 }
 0x8da   :  { %v2337_v63 = vmul.f32 %v2336_v57, %v2329_v29  ;;  %v2385_v4 = vmul.f32 %v2384_v17, %v2377_v56  ;;  %v2401_v29 = vmul.f32 %v2400_v8, %v2393_v21 }
 0x8dd   :  { %v2348_v12 = vpop.xlane.xlu1 %2347  ;;  %v2409_v38 = vpop.xlane.xlu0 %2408 }
 0x8de   :  { %v2354_v24 = vmul.f32 %v2352_v59, %v2348_v12  ;;  %v2417_v59 = vmul.f32 %v2416_v15, %v2409_v38 }
 0x8e1   :  { %v2380_v9 = vpop.xlane.xlu1 %2379  ;;  %v2441_v43 = vpop.xlane.xlu0 %2440 }
 0x8e2   :  { %v2386_v49 = vmul.f32 %v2384_v17, %v2380_v9  ;;  %v2448_v9 = vrot.slane %v5664_v46, %v4934_v50  ;;  %v2466_v17 = vmul.f32 %v2464_v45, %v5648_v40 }
 0x8e5   :  { %v2412_v36 = vpop.xlane.xlu1 %2411  ;;  %v2473_v53 = vpop.xlane.xlu0 %2472 }
 0x8e6   :  { %v2418_v12 = vmul.f32 %v2416_v15, %v2412_v36  ;;  %v2480_v36 = vrot.slane %v5664_v46, %v4987_v62 }
 0x8e8   :  { %v2481_v8 = vmul.f32 %v2480_v36, %v2473_v53  ;;  %v2544_v53 = vrot.slane %v5664_v46, %v5272_v6 }
 0x8e9   :  { %v2444_v32 = vpop.xlane.xlu1 %2443  ;;  %v2505_v23 = vpop.xlane.xlu0 %2504 }
 0x8ed   :  { %v2476_v7 = vpop.xlane.xlu1 %2475 }
 0x900   :  { %v4158_v31 = vpop.f32.mrb[14].mxu1 }
 0x901   :  { %v2340_v47 = vadd.f32 %v4158_v31, %v2338_v27  ;;  %v2316_v60 = vpop.f32.mrb[15].mxu1  ;;  %v2434_v27 = vmul.f32 %v2432_v3, %v2428_v58  ;;  %v2508_v31 = vpop.xlane.xlu1 %2507  ;;  %v2465_v58 = vmul.f32 %v2464_v45, %v5646_v55  ;;  %v2528_v55 = vrot.slane %v5660_v51, %v5272_v6 }
 0x902   :  { %v2339_v5 = vadd.f32 %v2337_v63, %v2316_v60  ;;  %v2433_v63 = vmul.f32 %v2432_v3, %v2425_v10  ;;  %v2449_v60 = vmul.f32 %v2448_v9, %v2441_v43  ;;  %v2496_v10 = vrot.slane %v5660_v51, %v4984_v61 }
 0x903   :  { %v2356_v26 = vadd.f32 %v2354_v24, %v2340_v47  ;;  %v2450_v24 = vmul.f32 %v2448_v9, %v2444_v32  ;;  %v2512_v43 = vrot.slane %v5664_v46, %v4984_v61 }
 0x904   :  { %v2355_v11 = vadd.f32 %v2353_v20, %v2339_v5  ;;  %v2537_v20 = vpop.xlane.xlu0 %2536  ;;  %v2497_v40 = vmul.f32 %v2496_v10, %v5650_v42  ;;  %v2560_v42 = vrot.slane %v5660_v51, %v5281_v13 }
 0x905   :  { %v2372_v39 = vadd.f32 %v2370_v54, %v2356_v26  ;;  %v2482_v26 = vmul.f32 %v2480_v36, %v2476_v7  ;;  %v2540_v32 = vpop.xlane.xlu1 %2539  ;;  %v2513_v7 = vmul.f32 %v2512_v43, %v2505_v23  ;;  %v2545_v9 = vmul.f32 %v2544_v53, %v2537_v20 }
 0x906   :  { %v2371_v16 = vadd.f32 %v2369_v18, %v2355_v11  ;;  %v2576_v23 = vrot.slane %v5664_v46, %v5281_v13 }
 0x907   :  { %v2388_v25 = vadd.f32 %v2386_v49, %v2372_v39  ;;  %v2498_v49 = vmul.f32 %v2496_v10, %v5652_v14  ;;  %v2529_v14 = vmul.f32 %v2528_v55, %v5654_v48  ;;  %v1439_v48 = vrot.slane %v5356_v35, %v5272_v6  ;;  %v2670_v35 = vld [vmem:[#allocation8 + $0x200] sm:$0xff] }
 0x908   :  { %v2387_v2 = vadd.f32 %v2385_v4, %v2371_v16  ;;  %v2569_v4 = vpop.xlane.xlu0 %2568  ;;  %v2514_v16 = vmul.f32 %v2512_v43, %v2508_v31  ;;  %v2662_v10 = vld [vmem:[#allocation8 + $0x1c0] sm:$0xff]  ;;  %v2664_v43 = vld [vmem:[#allocation8 + $0x1d0] sm:$0xff] }
 0x909   :  { %v2404_v57 = vadd.f32 %v2402_v37, %v2388_v25  ;;  %v1779_v36 = vadd.f32 %v5378_v44, %v1439_v48  ;;  %v1774_v46 = vadd.f32 %v5385_v19, %v1439_v48  ;;  %v2671_v44 = vld [vmem:[#allocation8 + $0x208] sm:$0xff] }
 0x90a   :  { %v2403_v56 = vadd.f32 %v2401_v29, %v2387_v2  ;;  %v2530_v29 = vmul.f32 %v2528_v55, %v5656_v22  ;;  %v2556_v2 = vpop.xlane.xlu1 %2555  ;;  %v2561_v22 = vmul.f32 %v2560_v42, %v5658_v0  ;;  %v2663_v0 = vld [vmem:[#allocation8 + $0x1c8] sm:$0xff]  ;;  %v4290_v19 = vpack.c.bf16 %v2671_v44, %v2664_v43 }
 0x90b   :  { %v2420_v34 = vadd.f32 %v2418_v12, %v2404_v57  ;;  %v2546_v57 = vmul.f32 %v2544_v53, %v2540_v32  ;;  %v2683_v55 = vld [vmem:[#allocation8 + $0x268] sm:$0x3f]  ;;  %v2685_v53 = vld [vmem:[#allocation8 + $0x278] sm:$0x3f] }
 0x90c   :  { %v2419_v21 = vadd.f32 %v2417_v59, %v2403_v56  ;;  %v2572_v56 = vpop.xlane.xlu0 %2571 }
 0x90d   :  { %v2436_v47 = vadd.f32 %v2434_v27, %v2420_v34  ;;  %v2562_v34 = vmul.f32 %v2560_v42, %v2556_v2  ;;  %v2578_v31 = vmul.f32 %v2576_v23, %v2572_v56  ;;  %v2668_v2 = vld [vmem:[#allocation8 + $0x1f0] sm:$0xff] }
 0x90e   :  { %v2435_v38 = vadd.f32 %v2433_v63, %v2419_v21  ;;  %v2577_v21 = vmul.f32 %v2576_v23, %v2569_v4  ;;  %v2679_v4 = vld [vmem:[#allocation8 + $0x248] sm:$0xff] }
 0x90f   :  { %v2452_v5 = vadd.f32 %v2450_v24, %v2436_v47 }
 0x910   :  { %v2451_v54 = vadd.f32 %v2449_v60, %v2435_v38 }
 0x911   :  { %v2468_v18 = vadd.f32 %v2466_v17, %v2452_v5 }
 0x912   :  { %v2467_v11 = vadd.f32 %v2465_v58, %v2451_v54  ;;  %v4278_v58 = vpack.c.bf16 %v2670_v35, %v2663_v0  ;;  %v2669_v54 = vld [vmem:[#allocation8 + $0x1f8] sm:$0xff] }
 0x913   :  { %v2484_v39 = vadd.f32 %v2482_v26, %v2468_v18  ;;  %v2665_v26 = vld [vmem:[#allocation8 + $0x1d8] sm:$0xff]  ;;  %v4280_v18 = vpack.c.bf16 %v2669_v54, %v2662_v10 }
 0x914   :  { %v2483_v15 = vadd.f32 %v2481_v8, %v2467_v11  ;;  %v2672_v8 = vld [vmem:[#allocation8 + $0x210] sm:$0xff]  ;;  %4279 = vmatprep.subr.bf16.mxu0 %v4278_v58  ;;  %v2677_v11 = vld [vmem:[#allocation8 + $0x238] sm:$0xff] }
 0x915   :  { %v2500_v37 = vadd.f32 %v2498_v49, %v2484_v39  ;;  %v4288_v32 = vpack.c.bf16 %v2672_v8, %v2665_v26  ;;  %4281 = vmatpush1.bf16.msra.mxu0 %v4280_v18  ;;  %v2684_v49 = vld [vmem:[#allocation8 + $0x270] sm:$0x3f] }
 0x916   :  { %v2499_v25 = vadd.f32 %v2497_v40, %v2483_v15  ;;  %v2676_v39 = vld [vmem:[#allocation8 + $0x230] sm:$0xff]  ;;  %v4282_v40 = vpack.c.bf16 %v2684_v49, %v2677_v11  ;;  %v2686_v15 = vld [vmem:[#allocation8 + $0x280] sm:$0x3f] }
 0x917   :  { %v2516_v3 = vadd.f32 %v2514_v16, %v2500_v37  ;;  %4289 = vmatprep.subr.bf16.mxu1 %v4288_v32  ;;  %v4285_v16 = vpack.c.bf16 %v2683_v55, %v2676_v39  ;;  %v4292_v37 = vpack.c.bf16 %v2686_v15, %v2679_v4 }
 0x918   :  { %v2515_v12 = vadd.f32 %v2513_v7, %v2499_v25  ;;  %4291 = vmatpush1.bf16.msra.mxu1 %v4290_v19  ;;  %v2678_v7 = vld [vmem:[#allocation8 + $0x240] sm:$0xff]  ;;  %v2667_v25 = vld [vmem:[#allocation8 + $0x1e8] sm:$0xff]  ;;  %4284 = vmatprep.subr.msk.bf16.mxu0 %vm5298_vm6, %v4282_v40 }
 0x919   :  { %v2532_v59 = vadd.f32 %v2530_v29, %v2516_v3  ;;  %v4295_v3 = vpack.c.bf16 %v2685_v53, %v2678_v7  ;;  %4287 = vmatpush1.bf16.msk.msra.mxu0 %vm5298_vm6, %v4285_v16  ;;  %4294 = vmatprep.subr.msk.bf16.mxu1 %vm5298_vm6, %v4292_v37  ;;  %v2691_v29 = vld [vmem:[#allocation8 + $0x26e] ss:$8 sm:$0xf] }
 0x91a   :  { %v2531_v27 = vadd.f32 %v2529_v14, %v2515_v12  ;;  %v2674_v14 = vld [vmem:[#allocation8 + $0x220] sm:$0xff]  ;;  %v2675_v12 = vld [vmem:[#allocation8 + $0x228] sm:$0xff] }
 0x91b   :  { %v2548_v63 = vadd.f32 %v2546_v57, %v2532_v59  ;;  %v4298_v42 = vpack.c.bf16 %v2674_v14, %v2667_v25  ;;  %v5715_v57 = vpack.c.bf16 %v2675_v12, %v2668_v2 }
 0x91c   :  { %v2547_v45 = vadd.f32 %v2545_v9, %v2531_v27  ;;  %4297 = vmatpush1.bf16.msk.msra.mxu1 %vm5298_vm6, %v4295_v3 }
 0x91d   :  { %v2564_v51 = vadd.f32 %v2562_v34, %v2548_v63  ;;  %4299 = vmatprep.subr.bf16.mxu0 %v4298_v42  ;;  %4309 = vmatprep.subr.bf16.mxu1 %v5715_v57 }
 0x91e   :  { %v2563_v24 = vadd.f32 %v2561_v22, %v2547_v45 }
 0x91f   :  { %v2580_v47 = vadd.f32 %v2578_v31, %v2564_v51 }
 0x920   :  { %v2579_v60 = vadd.f32 %v2577_v21, %v2563_v24 }
 0x921   :  { %v2582_v20 = vmul.f32 0.5, %v2580_v47  ;;  %v4567_v47 = vld [vmem:[%s6107_s5] ss:$0 sm:$0xff] }
 0x922   :  { %v2581_v38 = vmul.f32 0.5, %v2579_v60 }
 0x923   :  { %v2584_v17 = vadd.f32 %v2582_v20, %v1779_v36  ;;  %v4568_v20 = vld [vmem:[%s6107_s5 + $0x1] ss:$0 sm:$0xff] }
 0x924   :  { %v2583_v5 = vadd.f32 %v2581_v38, %v1774_v46 }
 0x925   :  { %2589 = vrot.lane.b32.xlu0 %v2584_v17, %s4749_s4 }
 0x926   :  { %2587 = vrot.lane.b32.xlu1 %v2583_v5, %s4749_s4 }
 0x997   :  { %v2590_v59 = vpop.permute.xlu0 %2589 }
 0x998   :  { %v2594_v9 = vsub.f32 %v2584_v17, %v2590_v59  ;;  %v2588_v23 = vpop.permute.xlu1 %2587 }
 0x999   :  { %v2593_v56 = vsub.f32 %v2583_v5, %v2588_v23 }
 0x99a   :  { %v2596_v27 = vmul.f32 0.5, %v2594_v9 }
 0x99b   :  { %v2595_v34 = vmul.f32 0.5, %v2593_v56 }
 0x99c   :  { %v2598_v63 = vmul.f32 %v2596_v27, %v2596_v27 }
 0x99d   :  { %v2597_v22 = vmul.f32 %v2595_v34, %v2595_v34 }
 0x99e   :  { %v2600_v45 = vadd.f32 1e-05, %v2598_v63 }
 0x99f   :  { %v2599_v48 = vadd.f32 1e-05, %v2597_v22 }
 0x9a0   :  { %4509 = vrsqrt.f32 %v2600_v45  ;;  %v6151_v45 = vmov -1.0  }
 0x9a1   :  { %4511 = vrsqrt.f32 %v2599_v48 }
 0x9aa   :  { %v4510_v31 = vpop.eup %4509 }
 0x9ab   :  { %v4512_v51 = vpop.eup %4511  ;;  %v2604_v21 = vmul.f32 %v4510_v31, %v2596_v27 }
 0x9ac   :  { %v2603_v24 = vmul.f32 %v4512_v51, %v2595_v34 }
 0x9ad   :  { %v2606_v60 = vmul.f32 %v4567_v47, %v2604_v21 }
 0x9ae   :  { %v2605_v36 = vmul.f32 %v4567_v47, %v2603_v24  ;;  %v2666_v47 = vld [vmem:[#allocation8 + $0x1e0] sm:$0xff] }
 0x9af   :  { %v2608_v46 = vadd.f32 %v4568_v20, %v2606_v60  ;;  %v2673_v60 = vld [vmem:[#allocation8 + $0x218] sm:$0xff] }
 0x9b0   :  { %v2607_v38 = vadd.f32 %v4568_v20, %v2605_v36  ;;  %v2681_v36 = vld [vmem:[#allocation8 + $0x258] sm:$0xff]  ;;  %v2688_v20 = vld [vmem:[#allocation8 + $0x290] sm:$0x3f] }
 0x9b1   :  { %v2612_v17 = vmul.f32 0.70710677, %v2608_v46 }
 0x9b2   :  { %v2611_v5 = vmul.f32 0.70710677, %v2607_v38 }
 0x9b3   :  { %v2618_v0 = vand.u32 2147483647, %v2612_v17  ;;  %vm2614_vm11 = vcmp.ge.f32.partialorder %v2612_v17, 0.0  ;;  %v2689_v17 = vld [vmem:[#allocation8 + $0x298] sm:$0x3f] }
 0x9b4   :  { %v2617_v35 = vand.u32 2147483647, %v2611_v5  ;;  %vm2613_vm12 = vcmp.ge.f32.partialorder %v2611_v5, 0.0  ;;  %v2616_v48 = vsel %vm2614_vm11, 1.0, %v6151_v45  ;;  %v2610_v5 = vmul.f32 0.5, %v2608_v46 }
 0x9b5   :  { %v2620_v58 = vmul.f32 0.3275911, %v2618_v0  ;;  %v2644_v18 = vsub.f32 0.0, %v2618_v0  ;;  %v2615_v21 = vsel %vm2613_vm12, 1.0, %v6151_v45 }
 0x9b6   :  { %v2619_v10 = vmul.f32 0.3275911, %v2617_v35  ;;  %v2643_v8 = vsub.f32 0.0, %v2617_v35 }
 0x9b7   :  { %v2622_v54 = vadd.f32 1.0, %v2620_v58  ;;  %v2646_v44 = vmul.f32 %v2644_v18, %v2618_v0  ;;  %v2680_v18 = vld [vmem:[#allocation8 + $0x250] sm:$0xff] }
 0x9b8   :  { %v2621_v26 = vadd.f32 1.0, %v2619_v10  ;;  %v2645_v11 = vmul.f32 %v2643_v8, %v2617_v35  ;;  %v2609_v35 = vmul.f32 0.5, %v2607_v38  ;;  %v2682_v10 = vld [vmem:[#allocation8 + $0x260] sm:$0xff]  ;;  %v2687_v8 = vld [vmem:[#allocation8 + $0x288] sm:$0x3f] }
 0x9b9   :  { %4513 = vrcp.f32 %v2622_v54  ;;  %v2649_v40 = vmul.f32 1.442695, %v2646_v44  ;;  %v4300_v54 = vpack.c.bf16 %v2673_v60, %v2666_v47  ;;  %v4312_v44 = vpack.c.bf16 %v2689_v17, %v2682_v10  ;;  %v2692_v38 = vld [vmem:[#allocation8 + $0x26e] ss:$8 sm:$0xf0] }
 0x9ba   :  { %4515 = vrcp.f32 %v2621_v26  ;;  %v2647_v15 = vmul.f32 1.442695, %v2645_v11  ;;  %v5753_v11 = vor.u32 %v2692_v38, %v2691_v29  ;;  %v6158_v10 = vmov 0  }
 0x9bb   :  { %4517 = vpow2.f32 %v2649_v40  ;;  %v6159_v17 = vmov 30  }
 0x9bc   :  { %4519 = vpow2.f32 %v2647_v15 }
 0x9c3   :  { %v4514_v43 = vpop.eup %4513 }
 0x9c4   :  { %v4516_v32 = vpop.eup %4515  ;;  %v2626_v19 = vmul.f32 1.0614054, %v4514_v43 }
 0x9c5   :  { %v2625_v49 = vmul.f32 1.0614054, %v4516_v32  ;;  %v4518_v23 = vpop.eup %4517 }
 0x9c6   :  { %v2628_v39 = vadd.f32 -1.4531521, %v2626_v19  ;;  %v4520_v27 = vpop.eup %4519  ;;  %v4305_v19 = vpack.c.bf16 %v2687_v8, %v2680_v18  ;;  %v6161_v18 = vmov 7  }
 0x9c7   :  { %v2627_v55 = vadd.f32 -1.4531521, %v2625_v49  ;;  %v2698_v49 = vrot.slane %v5753_v11, %v4901_v28 }
 0x9c8   :  { %v2630_v4 = vmul.f32 %v4514_v43, %v2628_v39  ;;  %v2706_v39 = vrot.slane %v5753_v11, %v4906_v30 }
 0x9c9   :  { %v2629_v16 = vmul.f32 %v4516_v32, %v2627_v55 }
 0x9ca   :  { %v2632_v37 = vadd.f32 1.4214138, %v2630_v4 }
 0x9cb   :  { %v2631_v7 = vadd.f32 1.4214138, %v2629_v16 }
 0x9cc   :  { %v2634_v53 = vmul.f32 %v4514_v43, %v2632_v37  ;;  %v2702_v37 = vrot.slane %v5753_v11, %v4913_v33 }
 0x9cd   :  { %v2633_v25 = vmul.f32 %v4516_v32, %v2631_v7 }
 0x9ce   :  { %v2636_v3 = vadd.f32 -0.28449672, %v2634_v53 }
 0x9cf   :  { %v2635_v14 = vadd.f32 -0.28449672, %v2633_v25 }
 0x9d0   :  { %v2638_v42 = vmul.f32 %v4514_v43, %v2636_v3 }
 0x9d1   :  { %v2637_v2 = vmul.f32 %v4516_v32, %v2635_v14 }
 0x9d2   :  { %v2640_v12 = vadd.f32 0.2548296, %v2638_v42 }
 0x9d3   :  { %v2639_v59 = vadd.f32 0.2548296, %v2637_v2  ;;  %v6153_v2 = vmov 3  }
 0x9d4   :  { %v2642_v9 = vmul.f32 %v4514_v43, %v2640_v12  ;;  %v4302_v43 = vpack.c.bf16 %v2688_v20, %v2681_v36  ;;  %v6154_v12 = vmov 2  }
 0x9d5   :  { %v2641_v56 = vmul.f32 %v4516_v32, %v2639_v59 }
 0x9d6   :  { %v2652_v34 = vmul.f32 %v4518_v23, %v2642_v9  ;;  %v2714_v23 = vrot.slane %v5753_v11, %v4987_v62 }
 0x9d7   :  { %v2651_v63 = vmul.f32 %v4520_v27, %v2641_v56 }
 0x9d8   :  { %v2654_v22 = vsub.f32 1.0, %v2652_v34 }
 0x9d9   :  { %v2653_v31 = vsub.f32 1.0, %v2651_v63  ;;  %v2718_v63 = vrot.slane %v5753_v11, %v4984_v61 }
 0x9da   :  { %v2656_v51 = vmul.f32 %v2654_v22, %v2616_v48  ;;  %v6155_v22 = vmov 4  }
 0x9db   :  { %v2655_v24 = vmul.f32 %v2653_v31, %v2615_v21  ;;  %v2710_v31 = vrot.slane %v5753_v11, %v4934_v50  ;;  %v6156_v21 = vmov 5  }
 0x9dc   :  { %v2658_v0 = vadd.f32 1.0, %v2656_v51 }
 0x9dd   :  { %v2657_v58 = vadd.f32 1.0, %v2655_v24 }
 0x9de   :  { %v2660_v32 = vmul.f32 %v2658_v0, %v2610_v5  ;;  %v6160_v5 = vmov 1  }
 0x9df   :  { %v2659_v26 = vmul.f32 %v2657_v58, %v2609_v35  ;;  %v6157_v58 = vmov 6  }
 0x9e1   :  { %4012 = vmatmul.mubr.msk.f32.vlgmr.msra.gmra.mrb[24].mxu0 %vm1447_vm9, %v2659_v26  ;;  %4016 = vmatmul.mubr.msk.f32.vlgmr.msra.gmra.mrb[16].mxu1 %vm1447_vm9, %v2659_v26  ;;  %v4318_v46 = vpack.c.bf16 %v2660_v32, %v2659_v26 }
 0x9e2   :  { %4301 = vmatpush1.bf16.msra.mxu0 %v4300_v54  ;;  %4311 = vmatpush3.bf16.msra.mxu1 %v5715_v57 }
 0x9e3   :  { %2827 = vmatprep.mubr.f32.mxu0 %v6149_v41  ;;  %2904 = vmatprep.mubr.f32.mxu1 %v6149_v41 }
 0x9e4   :  { %4304 = vmatprep.subr.msk.bf16.mxu0 %vm5298_vm6, %v4302_v43  ;;  %4314 = vmatprep.subr.msk.bf16.mxu1 %vm5298_vm6, %v4312_v44 }
 0x9e5   :  { %4013 = vmatmul.mubr.msk.f32.gmra.mrb[26].mxu0 %vm1447_vm9, %v2660_v32  ;;  %4017 = vmatmul.mubr.msk.f32.gmra.mrb[18].mxu1 %vm1447_vm9, %v2660_v32 }
 0x9e6   :  { %4307 = vmatpush1.bf16.msk.msra.mxu0 %vm5298_vm6, %v4305_v19  ;;  %4317 = vmatpush3.bf16.msk.msra.mxu1 %vm5298_vm6, %v4312_v44  ;;  %v5832_v44 = vld [vmem:[#allocation7] sm:$0xff]  ;;  %v5835_v19 = vld [vmem:[#allocation7 + $0x10] sm:$0xff] }
 0x9e7   :  { %4167 = vmatprep.mubr.msk.f32.mxu1 %vm1447_vm9, %v2659_v26  ;;  %4320 = vmatprep.subr.msk.bf16.mxu0 %vm5336_vm10, %v4318_v46 }
 0x9e8   :  { %2975 = vmatprep.mubr.f32.mxu0 %v6149_v41 }
 0x9e9   :  { %4020 = vmatmul.mubr.msk.f32.vlgmr.msra.gmra.mrb[28].mxu0 %vm1447_vm9, %v2659_v26  ;;  %4168 = vmatmul.mubr.msk.f32.vlgmr.msra.gmra.mrb[20].mxu1 %vm1447_vm9, %v2660_v32 }
 0x9ea   :  { %2981 = vmatprep.mubr.f32.mxu0 %v6149_v41 }
 0x9ed   :  { %4021 = vmatmul.mubr.msk.f32.gmra.mrb[30].mxu0 %vm1447_vm9, %v2660_v32 }
 0x9ef   :  { %4323 = vmatpush3.bf16.xpose.msk.msra.mxu0 %vm5336_vm10, %v4318_v46 }
 0xab4   :  { %v2823_v40 = vpop.f32.mrb[24].mxu0  ;;  %v2900_v55 = vpop.f32.mrb[16].mxu1 }
 0xab5   :  { %v5759_v4 = vadd.f32 %v2823_v40, %v2698_v49  ;;  %v5761_v41 = vadd.f32 %v2900_v55, %v2706_v39  ;;  %v2825_v15 = vpop.f32.mrb[25].mxu0  ;;  %v2902_v16 = vpop.f32.mrb[17].mxu1  ;;  %v5841_v40 = vld [vmem:[#allocation7 + $0x30] sm:$0xff] }
 0xab6   :  { %v2826_v42 = vadd.f32 %v2825_v15, %v2702_v37  ;;  %v2903_v35 = vadd.f32 %v2902_v16, %v2710_v31  ;;  %v5844_v16 = vld [vmem:[#allocation7 + $0x40] sm:$0xff] }
 0xab7   :  { %3162 = vperm.xlu1 %4431, %v5761_v41   ;;  %3189 = vperm.xlu0 %4432, %v5761_v41  }
 0xab8   :  { %4174 = vmatprep.mubr.msk.f32.mxu0 %vm1447_vm9, %v5759_v4  ;;  %v2829_v7 = vpop.f32.mrb[26].mxu0  ;;  %v2906_v53 = vpop.f32.mrb[18].mxu1 }
 0xab9   :  { %v5769_v25 = vadd.f32 %v2829_v7, %v2698_v49  ;;  %v2831_v3 = vpop.f32.mrb[27].mxu0  ;;  %v2908_v14 = vpop.f32.mrb[19].mxu1  ;;  %v2907_v54 = vadd.f32 %v2906_v53, %v2706_v39  ;;  %v5838_v49 = vld [vmem:[#allocation7 + $0x20] sm:$0xff] }
 0xaba   :  { %v5784_v34 = vadd.f32 %v2831_v3, %v2702_v37  ;;  %v2909_v26 = vadd.f32 %v2908_v14, %v2710_v31 }
 0xabb   :  { %4434 = vset.pattern.permute.xlu1 %v6153_v2  ;;  %4433 = vset.pattern.permute.xlu0 %v6154_v12 }
 0xabc   :  { %4175 = vmatmul.mubr.msk.f32.vlgmr.msra.gmra.mrb[32].mxu0 %vm1447_vm9, %v5769_v25  ;;  %3237 = vperm.xlu1 %4434, %v5761_v41   ;;  %v2977_v59 = vpop.f32.mrb[28].mxu0  ;;  %v5776_v9 = vpop.f32.mrb[20].mxu1 }
 0xabd   :  { %3213 = vperm.xlu0 %4433, %v5761_v41   ;;  %4177 = vmatprep.mubr.msk.f32.mxu0 %vm1447_vm9, %v2826_v42  ;;  %v2979_v56 = vpop.f32.mrb[29].mxu0  ;;  %v5782_v27 = vpop.f32.mrb[21].mxu1  ;;  %v2978_v51 = vadd.f32 %v2977_v59, %v2714_v23 }
 0xabe   :  { %v2980_v60 = vadd.f32 %v2979_v56, %v2718_v63 }
 0xac0   :  { %4178 = vmatmul.mubr.msk.f32.gmra.mrb[34].mxu0 %vm1447_vm9, %v5784_v34  ;;  %4435 = vset.pattern.permute.xlu1 %v6155_v22  ;;  %v2983_v48 = vpop.f32.mrb[30].mxu0 }
 0xac1   :  { %4436 = vset.pattern.permute.xlu0 %v6156_v21  ;;  %v2984_v24 = vadd.f32 %v2983_v48, %v2714_v23  ;;  %3261 = vperm.xlu1 %4435, %v5761_v41   ;;  %v2985_v47 = vpop.f32.mrb[31].mxu0 }
 0xac2   :  { %3285 = vperm.xlu0 %4436, %v5761_v41   ;;  %v2986_v36 = vadd.f32 %v2985_v47, %v2718_v63 }
 0xac3   :  { %v5796_v20 = vpack.c.bf16 %v2984_v24, %v2978_v51 }
 0xac4   :  { %v4324_v0 = vpack.c.bf16 %v2986_v36, %v2980_v60 }
 0xac5   :  { %4437 = vset.pattern.permute.xlu1 %v6157_v58 }
 0xac6   :  { %4442 = vset.pattern.permute.xlu0 %v6155_v22  ;;  %3309 = vperm.xlu1 %4437, %v5761_v41  }
 0xac7   :  { %3273 = vperm.xlu0 %4442, %v2903_v35   ;;  %4325 = vmatprep.subr.bf16.mxu1 %v4324_v0 }
 0xac8   :  { %4327 = vmatpush3.bf16.msra.mxu1 %v4324_v0 }
 0xac9   :  { %4329 = vmatprep.subr.bf16.mxu1 %v5796_v20 }
 0xaca   :  { %4438 = vset.pattern.permute.xlu1 %v6158_v10 }
 0xacb   :  { %4446 = vset.pattern.permute.xlu0 %v6159_v17  ;;  %3176 = vperm.xlu1 %4438, %v2903_v35  }
 0xacc   :  { %3399 = vperm.xlu0 %4446, %v2826_v42  }
 0xacf   :  { %4439 = vset.pattern.permute.xlu1 %v6160_v5 }
 0xad0   :  { %4448 = vset.pattern.permute.xlu0 %v6160_v5  ;;  %3201 = vperm.xlu1 %4439, %v2903_v35  }
 0xad1   :  { %3193 = vperm.xlu0 %4448, %v2907_v54  }
 0xad4   :  { %4440 = vset.pattern.permute.xlu1 %v6154_v12 }
 0xad5   :  { %4450 = vset.pattern.permute.xlu0 %v6153_v2  ;;  %3225 = vperm.xlu1 %4440, %v2903_v35  }
 0xad6   :  { %3241 = vperm.xlu0 %4450, %v2907_v54  }
 0xad9   :  { %4441 = vset.pattern.permute.xlu1 %v6153_v2 }
 0xada   :  { %4453 = vset.pattern.permute.xlu0 %v6158_v10  ;;  %3249 = vperm.xlu1 %4441, %v2903_v35  }
 0xadb   :  { %3181 = vperm.xlu0 %4453, %v2909_v26  }
 0xade   :  { %4443 = vset.pattern.permute.xlu1 %v6156_v21 }
 0xadf   :  { %4455 = vset.pattern.permute.xlu0 %v6154_v12  ;;  %3297 = vperm.xlu1 %4443, %v2903_v35  }
 0xae0   :  { %3229 = vperm.xlu0 %4455, %v2909_v26  }
 0xae3   :  { %4444 = vset.pattern.permute.xlu1 %v6157_v58 }
 0xae4   :  { %4459 = vset.pattern.permute.xlu0 %v6157_v58  ;;  %3321 = vperm.xlu1 %4444, %v2903_v35  }
 0xae5   :  { %3325 = vperm.xlu0 %4459, %v2909_v26  }
 0xae8   :  { %4445 = vset.pattern.permute.xlu1 %v6161_v18 }
 0xae9   :  { %3313 = vperm.xlu0 %4459, %v2907_v54   ;;  %3345 = vperm.xlu1 %4445, %v2903_v35  }
 0xaed   :  { %4463 = vset.pattern.permute.xlu0 %v6159_v17  ;;  %4447 = vset.pattern.permute.xlu1 %v6158_v10 }
 0xaee   :  { %3357 = vperm.xlu0 %4463, %v5759_v4   ;;  %3167 = vperm.xlu1 %4447, %v2907_v54  }
 0xaf2   :  { %4449 = vset.pattern.permute.xlu1 %v6154_v12 }
 0xaf3   :  { %3217 = vperm.xlu1 %4449, %v2907_v54  }
 0xaf7   :  { %4451 = vset.pattern.permute.xlu1 %v6155_v22 }
 0xaf8   :  { %3265 = vperm.xlu1 %4451, %v2907_v54  }
 0xafc   :  { %4452 = vset.pattern.permute.xlu1 %v6156_v21 }
 0xafd   :  { %3289 = vperm.xlu1 %4452, %v2907_v54  }
 0xb01   :  { %4454 = vset.pattern.permute.xlu1 %v6160_v5 }
 0xb02   :  { %3205 = vperm.xlu1 %4454, %v2909_v26  }
 0xb06   :  { %4456 = vset.pattern.permute.xlu1 %v6153_v2  ;;  %v5850_v2 = vld [vmem:[#allocation7 + $0x60] sm:$0xff] }
 0xb07   :  { %3253 = vperm.xlu1 %4456, %v2909_v26  }
 0xb0b   :  { %4457 = vset.pattern.permute.xlu1 %v6155_v22 }
 0xb0c   :  { %3277 = vperm.xlu1 %4457, %v2909_v26  }
 0xb10   :  { %4458 = vset.pattern.permute.xlu1 %v6156_v21 }
 0xb11   :  { %3301 = vperm.xlu1 %4458, %v2909_v26  }
 0xb15   :  { %4460 = vset.pattern.permute.xlu1 %v6161_v18 }
 0xb16   :  { %3333 = vperm.xlu1 %4460, %v5761_v41  }
 0xb1a   :  { %3349 = vperm.xlu1 %4460, %v2909_v26  }
 0xb1e   :  { %4461 = vset.pattern.permute.xlu1 %v6159_v17 }
 0xb1f   :  { %3403 = vperm.xlu1 %4461, %v5784_v34  }
 0xb23   :  { %4462 = vset.pattern.permute.xlu1 %v6161_v18 }
 0xb24   :  { %3337 = vperm.xlu1 %4462, %v2907_v54  }
 0xb28   :  { %4464 = vset.pattern.permute.xlu1 %v6159_v17 }
 0xb29   :  { %3361 = vperm.xlu1 %4464, %v5769_v25   ;;  %v5847_v25 = vld [vmem:[#allocation7 + $0x50] sm:$0xff] }
 0xb36   :  { %v3163_v8 = vpop.permute.xlu1 %3162  ;;  %v3190_v43 = vpop.permute.xlu0 %3189 }
 0xb37   :  { %v3170_v32 = vmul.f32 %v5832_v44, %v3163_v8  ;;  %v3196_v46 = vmul.f32 %v5835_v19, %v3190_v43 }
 0xb39   :  { %v3198_v38 = vadd.f32 %v3196_v46, %v3170_v32 }
 0xb3b   :  { %v3238_v57 = vpop.permute.xlu1 %3237 }
 0xb3c   :  { %v3214_v29 = vpop.permute.xlu0 %3213  ;;  %v3244_v55 = vmul.f32 %v5841_v40, %v3238_v57  ;;  %v5863_v57 = vld [vmem:[#allocation7 + $0x18] sm:$0xff] }
 0xb3d   :  { %v3220_v39 = vmul.f32 %v5838_v49, %v3214_v29 }
 0xb3f   :  { %v3222_v4 = vadd.f32 %v3220_v39, %v3198_v38  ;;  %v5867_v39 = vld [vmem:[#allocation7 + $0x8] sm:$0xff] }
 0xb40   :  { %v3262_v41 = vpop.permute.xlu1 %3261 }
 0xb41   :  { %v3246_v15 = vadd.f32 %v3244_v55, %v3222_v4  ;;  %v3268_v37 = vmul.f32 %v5844_v16, %v3262_v41  ;;  %v3286_v7 = vpop.permute.xlu0 %3285 }
 0xb42   :  { %v3292_v3 = vmul.f32 %v5847_v25, %v3286_v7 }
 0xb43   :  { %v3270_v53 = vadd.f32 %v3268_v37, %v3246_v15 }
 0xb45   :  { %v3294_v14 = vadd.f32 %v3292_v3, %v3270_v53  ;;  %v3310_v42 = vpop.permute.xlu1 %3309  ;;  %v5872_v3 = vld [vmem:[#allocation7 + $0x28] sm:$0xff] }
 0xb46   :  { %v3316_v12 = vmul.f32 %v5850_v2, %v3310_v42  ;;  %v3274_v31 = vpop.permute.xlu0 %3273 }
 0xb47   :  { %v3280_v38 = vmul.f32 %v5844_v16, %v3274_v31 }
 0xb48   :  { %v5853_v59 = vadd.f32 %v3316_v12, %v3294_v14 }
 0xb4a   :  { %v3177_v23 = vpop.permute.xlu1 %3176 }
 0xb4b   :  { %v3400_v21 = vpop.permute.xlu0 %3399  ;;  %v3184_v54 = vmul.f32 %v5832_v44, %v3177_v23  ;;  %v5877_v23 = vld [vmem:[#allocation7 + $0x70] sm:$0xff] }
 0xb4f   :  { %v3202_v56 = vpop.permute.xlu1 %3201 }
 0xb50   :  { %v3194_v60 = vpop.permute.xlu0 %3193  ;;  %v3208_v10 = vmul.f32 %v5835_v19, %v3202_v56 }
 0xb52   :  { %v3210_v26 = vadd.f32 %v3208_v10, %v3184_v54  ;;  %v5880_v10 = vld [vmem:[#allocation7 + $0x38] sm:$0xff]  ;;  %v5884_v54 = vld [vmem:[#allocation7 + $0x48] sm:$0xff] }
 0xb54   :  { %v3226_v34 = vpop.permute.xlu1 %3225 }
 0xb55   :  { %v3242_v0 = vpop.permute.xlu0 %3241  ;;  %v3232_v5 = vmul.f32 %v5838_v49, %v3226_v34 }
 0xb57   :  { %v3234_v43 = vadd.f32 %v3232_v5, %v3210_v26 }
 0xb59   :  { %v3250_v63 = vpop.permute.xlu1 %3249 }
 0xb5a   :  { %v3182_v58 = vpop.permute.xlu0 %3181  ;;  %v3256_v18 = vmul.f32 %v5841_v40, %v3250_v63 }
 0xb5b   :  { %v3185_v55 = vmul.f32 %v5867_v39, %v3182_v58 }
 0xb5c   :  { %v3258_v46 = vadd.f32 %v3256_v18, %v3234_v43  ;;  %v3197_v18 = vmul.f32 %v5863_v57, %v3194_v60 }
 0xb5e   :  { %v3298_v22 = vpop.permute.xlu1 %3297  ;;  %v3282_v15 = vadd.f32 %v3280_v38, %v3258_v46 }
 0xb5f   :  { %v3230_v8 = vpop.permute.xlu0 %3229  ;;  %v3304_v37 = vmul.f32 %v5847_v25, %v3298_v22 }
 0xb60   :  { %v3233_v14 = vmul.f32 %v5872_v3, %v3230_v8 }
 0xb61   :  { %v3306_v12 = vadd.f32 %v3304_v37, %v3282_v15 }
 0xb63   :  { %v3322_v48 = vpop.permute.xlu1 %3321 }
 0xb64   :  { %v3326_v4 = vpop.permute.xlu0 %3325  ;;  %v3328_v53 = vmul.f32 %v5850_v2, %v3322_v48 }
 0xb66   :  { %v3330_v48 = vadd.f32 %v3328_v53, %v3306_v12 }
 0xb68   :  { %v3346_v51 = vpop.permute.xlu1 %3345  ;;  %v3314_v31 = vpop.permute.xlu0 %3313 }
 0xb69   :  { %v3352_v56 = vmul.f32 %v5877_v23, %v3346_v51 }
 0xb6b   :  { %v3354_v8 = vadd.f32 %v3352_v56, %v3330_v48  ;;  %v5895_v48 = vld [vmem:[#allocation7 + $0x68] sm:$0xff] }
 0xb6d   :  { %v3168_v24 = vpop.permute.xlu1 %3167  ;;  %v3358_v15 = vpop.permute.xlu0 %3357 }
 0xb72   :  { %v3218_v47 = vpop.permute.xlu1 %3217 }
 0xb73   :  { %v3221_v43 = vmul.f32 %v5872_v3, %v3218_v47 }
 0xb77   :  { %v5855_v36 = vpop.permute.xlu1 %3265 }
 0xb7c   :  { %v5857_v35 = vpop.permute.xlu1 %3289 }
 0xb81   :  { %v3206_v17 = vpop.permute.xlu1 %3205 }
 0xb82   :  { %v3209_v29 = vmul.f32 %v5863_v57, %v3206_v17  ;;  %v3171_v17 = vmul.f32 %v5867_v39, %v3168_v24 }
 0xb84   :  { %v3211_v7 = vadd.f32 %v3209_v29, %v3185_v55  ;;  %v5889_v29 = vld [vmem:[#allocation7 + $0x58] sm:$0xff]  ;;  %v3199_v37 = vadd.f32 %v3197_v18, %v3171_v17 }
 0xb86   :  { %v3254_v32 = vpop.permute.xlu1 %3253  ;;  %v3235_v58 = vadd.f32 %v3233_v14, %v3211_v7  ;;  %v3223_v14 = vadd.f32 %v3221_v43, %v3199_v37  ;;  %v3317_v37 = vmul.f32 %v5895_v48, %v3314_v31 }
 0xb87   :  { %v3257_v22 = vmul.f32 %v5880_v10, %v3254_v32 }
 0xb89   :  { %v3259_v46 = vadd.f32 %v3257_v22, %v3235_v58  ;;  %v3245_v22 = vmul.f32 %v5880_v10, %v3242_v0  ;;  %v3293_v0 = vmul.f32 %v5889_v29, %v5857_v35 }
 0xb8b   :  { %v3278_v41 = vpop.permute.xlu1 %3277 }
 0xb8c   :  { %v3281_v5 = vmul.f32 %v5884_v54, %v3278_v41 }
 0xb8e   :  { %v3283_v7 = vadd.f32 %v3281_v5, %v3259_v46 }
 0xb8f   :  { %v5875_v42 = vpop.f32.mrb[32].mxu0 }
 0xb90   :  { %v3141_v34 = vpop.f32.mrb[33].mxu0  ;;  %v3302_v63 = vpop.permute.xlu1 %3301 }
 0xb91   :  { %v3305_v38 = vmul.f32 %v5889_v29, %v3302_v63  ;;  %v3364_v53 = vadd.f32 %v3358_v15, %v3141_v34  ;;  %v5898_v63 = vld [vmem:[#allocation7 + $0x78] sm:$0xff]  ;;  %v3247_v34 = vadd.f32 %v3245_v22, %v3223_v14 }
 0xb93   :  { %v4179_v26 = vpop.f32.mrb[34].mxu0  ;;  %v3307_v12 = vadd.f32 %v3305_v38, %v3283_v7 }
 0xb94   :  { %v3151_v51 = vpop.f32.mrb[35].mxu0 }
 0xb95   :  { %v3406_v32 = vadd.f32 %v3400_v21, %v3151_v51  ;;  %v3334_v55 = vpop.permute.xlu1 %3333  ;;  %v3329_v21 = vmul.f32 %v5895_v48, %v3326_v4 }
 0xb96   :  { %v3340_v24 = vmul.f32 %v5877_v23, %v3334_v55 }
 0xb97   :  { %v3408_v41 = vadd.f32 %v3406_v32, %v3354_v8  ;;  %v3331_v18 = vadd.f32 %v3329_v21, %v3307_v12 }
 0xb98   :  { %v3342_v60 = vadd.f32 %v3340_v24, %v5853_v59  ;;  %v3269_v59 = vmul.f32 %v5884_v54, %v5855_v36 }
 0xb99   :  { %v3410_v56 = vmul.f32 0.18257418, %v3408_v41  ;;  %v3350_v47 = vpop.permute.xlu1 %3349 }
 0xb9a   :  { %v3366_v58 = vadd.f32 %v3364_v53, %v3342_v60  ;;  %v3353_v17 = vmul.f32 %v5898_v63, %v3350_v47  ;;  %v3271_v46 = vadd.f32 %v3269_v59, %v3247_v34 }
 0xb9b   :  { %v3412_v5 = vadd.f32 %v3410_v56, %v5088_v52 }
 0xb9c   :  { %v3355_v43 = vadd.f32 %v3353_v17, %v3331_v18  ;;  %v3295_v32 = vadd.f32 %v3293_v0, %v3271_v46  ;;  %v3368_v55 = vmul.f32 0.18257418, %v3366_v58 }
 0xb9d   :  { %v3414_v8 = vsel %vm156_vm0, %v3412_v5, -inf }
 0xb9e   :  { %3415 = vmax.xlane.f32.xlu1 %v3414_v8  ;;  %v3404_v51 = vpop.permute.xlu1 %3403  ;;  %v3319_v41 = vadd.f32 %v3317_v37, %v3295_v32  ;;  %v3370_v60 = vadd.f32 %v3368_v55, %v5088_v52  ;;  %v4586_v32 = vld [vmem:[#allocation5 + $0x8] sm:$0xff] }
 0xb9f   :  { %v3407_v4 = vadd.f32 %v4179_v26, %v3404_v51  ;;  %v4585_v51 = vld [vmem:[#allocation5] sm:$0xff] }
 0xba0   :  { %v3372_v56 = vsel %vm156_vm0, %v3370_v60, -inf }
 0xba1   :  { %v3409_v38 = vadd.f32 %v3407_v4, %v3355_v43 }
 0xba3   :  { %v3411_v24 = vmul.f32 0.18257418, %v3409_v38  ;;  %v3338_v15 = vpop.permute.xlu1 %3337 }
 0xba4   :  { %v3341_v36 = vmul.f32 %v5898_v63, %v3338_v15 }
 0xba5   :  { %v3413_v7 = vadd.f32 %v3411_v24, %v5103_v1 }
 0xba6   :  { %v3343_v26 = vadd.f32 %v3341_v36, %v3319_v41 }
 0xba7   :  { %v3417_v53 = vsel %vm156_vm0, %v3413_v7, -inf }
 0xba8   :  { %v3362_v35 = vpop.permute.xlu1 %3361  ;;  %3418 = vmax.xlane.f32.xlu0 %v3417_v53 }
 0xba9   :  { %v3365_v14 = vadd.f32 %v5875_v42, %v3362_v35 }
 0xbab   :  { %v3367_v12 = vadd.f32 %v3365_v14, %v3343_v26 }
 0xbac   :  { %3373 = vmax.xlane.f32.xlu0 %v3372_v56 }
 0xbad   :  { %v3369_v47 = vmul.f32 0.18257418, %v3367_v12 }
 0xbaf   :  { %v3371_v31 = vadd.f32 %v3369_v47, %v5103_v1 }
 0xbb1   :  { %v3375_v58 = vsel %vm156_vm0, %v3371_v31, -inf }
 0xbb2   :  { %3376 = vmax.xlane.f32.xlu1 %v3375_v58 }
 0xc2b   :  { %v3416_v22 = vpop.xlane.xlu1 %3415 }
 0xc2c   :  { %v3420_v21 = vsub.f32 %v3412_v5, %v3416_v22 }
 0xc2e   :  { %v3422_v17 = vmul.f32 1.442695, %v3420_v21 }
 0xc30   :  { %4521 = vpow2.f32 %v3422_v17 }
 0xc35   :  { %v3419_v52 = vpop.xlane.xlu0 %3418 }
 0xc36   :  { %v3421_v34 = vsub.f32 %v3413_v7, %v3419_v52 }
 0xc38   :  { %v3424_v59 = vmul.f32 1.442695, %v3421_v34 }
 0xc39   :  { %v3374_v18 = vpop.xlane.xlu0 %3373 }
 0xc3a   :  { %v4522_v8 = vpop.eup %4521  ;;  %4523 = vpow2.f32 %v3424_v59  ;;  %v3378_v42 = vsub.f32 %v3370_v60, %v3374_v18 }
 0xc3b   :  { %v3426_v0 = vmul.f32 %v4585_v51, %v4522_v8 }
 0xc3c   :  { %v3380_v43 = vmul.f32 1.442695, %v3378_v42 }
 0xc3d   :  { %v3428_v4 = vsel %vm156_vm0, %v3426_v0, 0.0 }
 0xc3e   :  { %4525 = vpow2.f32 %v3380_v43  ;;  %3429 = vadd.xlane.f32.xlu0 %v3428_v4 }
 0xc3f   :  { %v3377_v1 = vpop.xlane.xlu1 %3376 }
 0xc40   :  { %v3379_v46 = vsub.f32 %v3371_v31, %v3377_v1 }
 0xc42   :  { %v3382_v38 = vmul.f32 1.442695, %v3379_v46 }
 0xc44   :  { %v4524_v5 = vpop.eup %4523  ;;  %4527 = vpow2.f32 %v3382_v38 }
 0xc45   :  { %v3427_v55 = vmul.f32 %v4586_v32, %v4524_v5 }
 0xc47   :  { %v3431_v24 = vsel %vm156_vm0, %v3427_v55, 0.0 }
 0xc48   :  { %v4526_v15 = vpop.eup %4525  ;;  %3432 = vadd.xlane.f32.xlu1 %v3431_v24 }
 0xc49   :  { %v3384_v37 = vmul.f32 %v4585_v51, %v4526_v15 }
 0xc4b   :  { %v3386_v36 = vsel %vm156_vm0, %v3384_v37, 0.0 }
 0xc4c   :  { %3387 = vadd.xlane.f32.xlu0 %v3386_v36 }
 0xc4e   :  { %v4528_v7 = vpop.eup %4527 }
 0xc4f   :  { %v3385_v41 = vmul.f32 %v4586_v32, %v4528_v7 }
 0xc51   :  { %v3389_v53 = vsel %vm156_vm0, %v3385_v41, 0.0 }
 0xc52   :  { %3390 = vadd.xlane.f32.xlu1 %v3389_v53 }
 0xccb   :  { %v3430_v60 = vpop.xlane.xlu0 %3429 }
 0xccc   :  { %v3434_v35 = vmax.f32 %v3430_v60, 1e-30 }
 0xcce   :  { %4529 = vrcp.f32 %v3434_v35 }
 0xcd5   :  { %v3433_v26 = vpop.xlane.xlu1 %3432 }
 0xcd6   :  { %v3435_v14 = vmax.f32 %v3433_v26, 1e-30 }
 0xcd8   :  { %v4530_v12 = vpop.eup %4529  ;;  %4531 = vrcp.f32 %v3435_v14 }
 0xcd9   :  { %v5920_v56 = vmul.f32 %v4530_v12, %v3426_v0  ;;  %v3388_v47 = vpop.xlane.xlu0 %3387 }
 0xcda   :  { %v3392_v31 = vmax.f32 %v3388_v47, 1e-30 }
 0xcdb   :  { %4184 = vmatprep.mubr.msk.f32.mxu1 %vm156_vm0, %v5920_v56 }
 0xcdc   :  { %4533 = vrcp.f32 %v3392_v31 }
 0xcdf   :  { %v3391_v58 = vpop.xlane.xlu1 %3390 }
 0xce0   :  { %v3393_v22 = vmax.f32 %v3391_v58, 1e-30 }
 0xce2   :  { %v4532_v21 = vpop.eup %4531  ;;  %4535 = vrcp.f32 %v3393_v22 }
 0xce3   :  { %v5924_v17 = vmul.f32 %v4532_v21, %v3427_v55  ;;  %v3622_v21 = vmul.f32 %v5832_v44, %v5920_v56 }
 0xce5   :  { %4185 = vmatmul.mubr.msk.f32.vlgmr.msra.gmra.mrb[22].mxu1 %vm156_vm0, %v5924_v17 }
 0xce6   :  { %v4534_v52 = vpop.eup %4533  ;;  %4331 = vmatpush3.bf16.msra.mxu1 %v5796_v20 }
 0xce7   :  { %v3396_v34 = vmul.f32 %v4534_v52, %v3384_v37 }
 0xce9   :  { %4191 = vmatprep.mubr.msk.f32.mxu1 %vm156_vm0, %v3396_v34  ;;  %v3606_v59 = vmul.f32 %v5832_v44, %v3396_v34  ;;  %v3638_v8 = vmul.f32 %v5835_v19, %v3396_v34  ;;  %v3670_v20 = vmul.f32 %v5838_v49, %v3396_v34  ;;  %v3702_v38 = vmul.f32 %v5841_v40, %v3396_v34 }
 0xcea   :  { %v3734_v24 = vmul.f32 %v5844_v16, %v3396_v34  ;;  %v3766_v7 = vmul.f32 %v5847_v25, %v3396_v34  ;;  %v3798_v35 = vmul.f32 %v5850_v2, %v3396_v34  ;;  %v3830_v47 = vmul.f32 %v5877_v23, %v3396_v34 }
 0xceb   :  { %v3608_v18 = vsel %vm156_vm0, %v3606_v59, 0.0  ;;  %v3640_v0 = vsel %vm156_vm0, %v3638_v8, 0.0  ;;  %v3672_v46 = vsel %vm156_vm0, %v3670_v20, 0.0  ;;  %v3704_v55 = vsel %vm156_vm0, %v3702_v38, 0.0 }
 0xcec   :  { %v4536_v42 = vpop.eup %4535  ;;  %3609 = vadd.xlane.f32.xlu0 %v3608_v18  ;;  %v3736_v36 = vsel %vm156_vm0, %v3734_v24, 0.0  ;;  %v3768_v60 = vsel %vm156_vm0, %v3766_v7, 0.0  ;;  %v3800_v12 = vsel %vm156_vm0, %v3798_v35, 0.0  ;;  %v3832_v22 = vsel %vm156_vm0, %v3830_v47, 0.0 }
 0xced   :  { %v3397_v51 = vmul.f32 %v4536_v42, %v3385_v41  ;;  %v3624_v18 = vsel %vm156_vm0, %v3622_v21, 0.0  ;;  %v3654_v34 = vmul.f32 %v5835_v19, %v5920_v56  ;;  %v3623_v42 = vmul.f32 %v5867_v39, %v5924_v17 }
 0xcee   :  { %v3718_v20 = vmul.f32 %v5841_v40, %v5920_v56  ;;  %v3782_v38 = vmul.f32 %v5847_v25, %v5920_v56  ;;  %v3846_v24 = vmul.f32 %v5877_v23, %v5920_v56 }
 0xcef   :  { %4192 = vmatmul.mubr.msk.f32.vlgmr.msra.gmra.mrb[22].mxu1 %vm156_vm0, %v3397_v51  ;;  %v3607_v43 = vmul.f32 %v5867_v39, %v3397_v51  ;;  %v3639_v1 = vmul.f32 %v5863_v57, %v3397_v51  ;;  %v3671_v32 = vmul.f32 %v5872_v3, %v3397_v51  ;;  %v3703_v37 = vmul.f32 %v5880_v10, %v3397_v51 }
 0xcf0   :  { %3641 = vadd.xlane.f32.xlu0 %v3640_v0  ;;  %v3735_v53 = vmul.f32 %v5884_v54, %v3397_v51  ;;  %v3767_v14 = vmul.f32 %v5889_v29, %v3397_v51  ;;  %v3799_v58 = vmul.f32 %v5895_v48, %v3397_v51  ;;  %v3831_v59 = vmul.f32 %v5898_v63, %v3397_v51 }
 0xcf1   :  { %v3611_v4 = vsel %vm156_vm0, %v3607_v43, 0.0  ;;  %v3643_v5 = vsel %vm156_vm0, %v3639_v1, 0.0  ;;  %v3675_v15 = vsel %vm156_vm0, %v3671_v32, 0.0  ;;  %v3707_v41 = vsel %vm156_vm0, %v3703_v37, 0.0 }
 0xcf2   :  { %3612 = vadd.xlane.f32.xlu1 %v3611_v4  ;;  %v3739_v26 = vsel %vm156_vm0, %v3735_v53, 0.0  ;;  %v3771_v31 = vsel %vm156_vm0, %v3767_v14, 0.0  ;;  %v3803_v52 = vsel %vm156_vm0, %v3799_v58, 0.0  ;;  %v3835_v8 = vsel %vm156_vm0, %v3831_v59, 0.0 }
 0xcf3   :  { %v3656_v44 = vsel %vm156_vm0, %v3654_v34, 0.0  ;;  %v3686_v0 = vmul.f32 %v5838_v49, %v5920_v56  ;;  %v3627_v51 = vsel %vm156_vm0, %v3623_v42, 0.0  ;;  %v3655_v43 = vmul.f32 %v5863_v57, %v5924_v17  ;;  %v6029_v34 = vld [vmem:[#allocation10 + $0x28] sm:$0xff] }
 0xcf4   :  { %3673 = vadd.xlane.f32.xlu0 %v3672_v46  ;;  %v3687_v4 = vmul.f32 %v5872_v3, %v5924_v17  ;;  %v3720_v49 = vsel %vm156_vm0, %v3718_v20, 0.0  ;;  %v3750_v1 = vmul.f32 %v5844_v16, %v5920_v56  ;;  %v3719_v46 = vmul.f32 %v5880_v10, %v5924_v17 }
 0xcf5   :  { %v3688_v19 = vsel %vm156_vm0, %v3686_v0, 0.0  ;;  %v3659_v39 = vsel %vm156_vm0, %v3655_v43, 0.0  ;;  %v3784_v16 = vsel %vm156_vm0, %v3782_v38, 0.0  ;;  %v3814_v32 = vmul.f32 %v5850_v2, %v5920_v56 }
 0xcf6   :  { %3644 = vadd.xlane.f32.xlu1 %v3643_v5  ;;  %v3691_v57 = vsel %vm156_vm0, %v3687_v4, 0.0  ;;  %v3752_v40 = vsel %vm156_vm0, %v3750_v1, 0.0  ;;  %v3723_v3 = vsel %vm156_vm0, %v3719_v46, 0.0  ;;  %v3751_v5 = vmul.f32 %v5884_v54, %v5924_v17 }
 0xcf7   :  { %v3816_v25 = vsel %vm156_vm0, %v3814_v32, 0.0  ;;  %v3848_v2 = vsel %vm156_vm0, %v3846_v24, 0.0  ;;  %v3633_v0 = vrot.slane %v6029_v34, %v4901_v28  ;;  %v3697_v24 = vrot.slane %v6029_v34, %v4906_v30 }
 0xcf8   :  { %3705 = vadd.xlane.f32.xlu0 %v3704_v55  ;;  %v3755_v10 = vsel %vm156_vm0, %v3751_v5, 0.0  ;;  %v3783_v55 = vmul.f32 %v5889_v29, %v5924_v17  ;;  %v3847_v29 = vmul.f32 %v5898_v63, %v5924_v17 }
 0xcfa   :  { %3676 = vadd.xlane.f32.xlu1 %v3675_v15  ;;  %v3787_v54 = vsel %vm156_vm0, %v3783_v55, 0.0  ;;  %v3815_v15 = vmul.f32 %v5895_v48, %v5924_v17 }
 0xcfc   :  { %3737 = vadd.xlane.f32.xlu0 %v3736_v36  ;;  %v3819_v37 = vsel %vm156_vm0, %v3815_v15, 0.0  ;;  %v3851_v36 = vsel %vm156_vm0, %v3847_v29, 0.0 }
 0xcfe   :  { %3708 = vadd.xlane.f32.xlu1 %v3707_v41 }
 0xd00   :  { %3769 = vadd.xlane.f32.xlu0 %v3768_v60 }
 0xd02   :  { %3740 = vadd.xlane.f32.xlu1 %v3739_v26 }
 0xd04   :  { %3801 = vadd.xlane.f32.xlu0 %v3800_v12 }
 0xd06   :  { %3772 = vadd.xlane.f32.xlu1 %v3771_v31 }
 0xd08   :  { %3833 = vadd.xlane.f32.xlu0 %v3832_v22 }
 0xd0a   :  { %3804 = vadd.xlane.f32.xlu1 %v3803_v52 }
 0xd0c   :  { %3625 = vadd.xlane.f32.xlu0 %v3624_v18  ;;  %v6027_v18 = vld [vmem:[#allocation10 + $0x20] sm:$0xff] }
 0xd0e   :  { %3836 = vadd.xlane.f32.xlu1 %v3835_v8  ;;  %v3617_v8 = vrot.slane %v6027_v18, %v4901_v28  ;;  %v3681_v28 = vrot.slane %v6027_v18, %v4906_v30 }
 0xd10   :  { %3657 = vadd.xlane.f32.xlu0 %v3656_v44 }
 0xd12   :  { %3628 = vadd.xlane.f32.xlu1 %v3627_v51 }
 0xd14   :  { %3689 = vadd.xlane.f32.xlu0 %v3688_v19  ;;  %v3649_v19 = vrot.slane %v6027_v18, %v4913_v33 }
 0xd16   :  { %3660 = vadd.xlane.f32.xlu1 %v3659_v39 }
 0xd18   :  { %3721 = vadd.xlane.f32.xlu0 %v3720_v49 }
 0xd1a   :  { %3692 = vadd.xlane.f32.xlu1 %v3691_v57  ;;  %v3665_v57 = vrot.slane %v6029_v34, %v4913_v33 }
 0xd1c   :  { %3753 = vadd.xlane.f32.xlu0 %v3752_v40 }
 0xd1e   :  { %3724 = vadd.xlane.f32.xlu1 %v3723_v3 }
 0xd20   :  { %3785 = vadd.xlane.f32.xlu0 %v3784_v16 }
 0xd22   :  { %3756 = vadd.xlane.f32.xlu1 %v3755_v10 }
 0xd24   :  { %3817 = vadd.xlane.f32.xlu0 %v3816_v25 }
 0xd26   :  { %3788 = vadd.xlane.f32.xlu1 %v3787_v54 }
 0xd28   :  { %3849 = vadd.xlane.f32.xlu0 %v3848_v2 }
 0xd2a   :  { %3820 = vadd.xlane.f32.xlu1 %v3819_v37  ;;  %v3713_v37 = vrot.slane %v6027_v18, %v4934_v50 }
 0xd2e   :  { %3852 = vadd.xlane.f32.xlu1 %v3851_v36 }
 0xd79   :  { %v3610_v56 = vpop.xlane.xlu0 %3609 }
 0xd7a   :  { %v3618_v43 = vmul.f32 %v3617_v8, %v3610_v56 }
 0xd7d   :  { %v3642_v41 = vpop.xlane.xlu0 %3641 }
 0xd7e   :  { %v3650_v16 = vmul.f32 %v3649_v19, %v3642_v41 }
 0xd7f   :  { %v3613_v23 = vpop.xlane.xlu1 %3612 }
 0xd80   :  { %v3619_v51 = vmul.f32 %v3617_v8, %v3613_v23 }
 0xd81   :  { %v3674_v60 = vpop.xlane.xlu0 %3673 }
 0xd82   :  { %v3682_v33 = vmul.f32 %v3681_v28, %v3674_v60 }
 0xd83   :  { %v3645_v7 = vpop.xlane.xlu1 %3644 }
 0xd84   :  { %v3651_v38 = vmul.f32 %v3649_v19, %v3645_v7 }
 0xd85   :  { %v3706_v35 = vpop.xlane.xlu0 %3705 }
 0xd86   :  { %v3714_v30 = vmul.f32 %v3713_v37, %v3706_v35  ;;  %v3777_v35 = vrot.slane %v6027_v18, %v4984_v61 }
 0xd87   :  { %v3677_v53 = vpop.xlane.xlu1 %3676 }
 0xd88   :  { %v3683_v15 = vmul.f32 %v3681_v28, %v3677_v53  ;;  %v3745_v53 = vrot.slane %v6027_v18, %v4987_v62 }
 0xd89   :  { %v6013_v14 = vpop.xlane.xlu0 %3737 }
 0xd8b   :  { %v3709_v48 = vpop.xlane.xlu1 %3708 }
 0xd8d   :  { %v6017_v47 = vpop.xlane.xlu0 %3769 }
 0xd8f   :  { %v6011_v26 = vpop.xlane.xlu1 %3740 }
 0xd91   :  { %v6021_v17 = vpop.xlane.xlu0 %3801 }
 0xd93   :  { %v6015_v12 = vpop.xlane.xlu1 %3772 }
 0xd95   :  { %v6025_v58 = vpop.xlane.xlu0 %3833 }
 0xd97   :  { %v6019_v63 = vpop.xlane.xlu1 %3804 }
 0xd99   :  { %v3626_v21 = vpop.xlane.xlu0 %3625 }
 0xd9a   :  { %v3634_v1 = vmul.f32 %v3633_v0, %v3626_v21 }
 0xd9b   :  { %v6023_v31 = vpop.xlane.xlu1 %3836 }
 0xd9d   :  { %v3658_v59 = vpop.xlane.xlu0 %3657 }
 0xd9e   :  { %v3666_v25 = vmul.f32 %v3665_v57, %v3658_v59 }
 0xd9f   :  { %v3629_v22 = vpop.xlane.xlu1 %3628 }
 0xda0   :  { %v3635_v39 = vmul.f32 %v3633_v0, %v3629_v22  ;;  %v3729_v22 = vrot.slane %v6029_v34, %v4934_v50 }
 0xda1   :  { %v3690_v44 = vpop.xlane.xlu0 %3689 }
 0xda2   :  { %v3698_v41 = vmul.f32 %v3697_v24, %v3690_v44  ;;  %v3747_v44 = vmul.f32 %v3745_v53, %v6011_v26  ;;  %v3778_v26 = vmul.f32 %v3777_v35, %v6017_v47  ;;  %v3841_v47 = vrot.slane %v6027_v18, %v5281_v13 }
 0xda3   :  { %v3661_v52 = vpop.xlane.xlu1 %3660 }
 0xda4   :  { %v3667_v10 = vmul.f32 %v3665_v57, %v3661_v52  ;;  %v3715_v52 = vmul.f32 %v3713_v37, %v3709_v48  ;;  %v3746_v48 = vmul.f32 %v3745_v53, %v6013_v14  ;;  %v3793_v57 = vrot.slane %v6029_v34, %v4984_v61 }
 0xda5   :  { %v3722_v3 = vpop.xlane.xlu0 %3721 }
 0xda7   :  { %v3693_v42 = vpop.xlane.xlu1 %3692 }
 0xda8   :  { %v3699_v23 = vmul.f32 %v3697_v24, %v3693_v42  ;;  %v3761_v42 = vrot.slane %v6029_v34, %v4987_v62  ;;  %v3779_v62 = vmul.f32 %v3777_v35, %v6015_v12 }
 0xda9   :  { %v3754_v56 = vpop.xlane.xlu0 %3753 }
 0xdab   :  { %v3725_v46 = vpop.xlane.xlu1 %3724 }
 0xdac   :  { %v3731_v8 = vmul.f32 %v3729_v22, %v3725_v46 }
 0xdaf   :  { %v3757_v29 = vpop.xlane.xlu1 %3756 }
 0xdc2   :  { %v4193_v20 = vpop.f32.mrb[22].mxu1 }
 0xdc3   :  { %v3621_v4 = vadd.f32 %v4193_v20, %v3619_v51  ;;  %v3597_v49 = vpop.f32.mrb[23].mxu1  ;;  %v3730_v51 = vmul.f32 %v3729_v22, %v3722_v3  ;;  %v3786_v20 = vpop.xlane.xlu0 %3785 }
 0xdc4   :  { %v3620_v40 = vadd.f32 %v3618_v43, %v3597_v49  ;;  %v3789_v43 = vpop.xlane.xlu1 %3788 }
 0xdc5   :  { %v3637_v5 = vadd.f32 %v3635_v39, %v3621_v4  ;;  %v3763_v4 = vmul.f32 %v3761_v42, %v3757_v29 }
 0xdc6   :  { %v3636_v32 = vadd.f32 %v3634_v1, %v3620_v40  ;;  %v3762_v1 = vmul.f32 %v3761_v42, %v3754_v56 }
 0xdc7   :  { %v3653_v55 = vadd.f32 %v3651_v38, %v3637_v5  ;;  %v3809_v38 = vrot.slane %v6027_v18, %v5272_v6  ;;  %v3818_v5 = vpop.xlane.xlu0 %3817 }
 0xdc8   :  { %v3652_v54 = vadd.f32 %v3650_v16, %v3636_v32  ;;  %v3821_v14 = vpop.xlane.xlu1 %3820  ;;  %v3795_v16 = vmul.f32 %v3793_v57, %v3789_v43  ;;  %v3794_v32 = vmul.f32 %v3793_v57, %v3786_v20 }
 0xdc9   :  { %v3669_v2 = vadd.f32 %v3667_v10, %v3653_v55  ;;  %v3825_v10 = vrot.slane %v6029_v34, %v5272_v6  ;;  %v3811_v61 = vmul.f32 %v3809_v38, %v6019_v63  ;;  %v3810_v12 = vmul.f32 %v3809_v38, %v6021_v17 }
 0xdca   :  { %v3668_v36 = vadd.f32 %v3666_v25, %v3652_v54  ;;  %v3842_v63 = vmul.f32 %v3841_v47, %v6025_v58  ;;  %v2722_v17 = vrot.slane %v5753_v11, %v5272_v6 }
 0xdcb   :  { %v3685_v7 = vadd.f32 %v3683_v15, %v3669_v2  ;;  %v3827_v54 = vmul.f32 %v3825_v10, %v3821_v14  ;;  %v3826_v2 = vmul.f32 %v3825_v10, %v3818_v5 }
 0xdcc   :  { %v3684_v21 = vadd.f32 %v3682_v33, %v3668_v36  ;;  %v3857_v33 = vrot.slane %v6029_v34, %v5281_v13  ;;  %v3853_v37 = vpop.xlane.xlu1 %3852  ;;  %v3843_v36 = vmul.f32 %v3841_v47, %v6023_v31  ;;  %v3060_v13 = vadd.f32 %v5776_v9, %v2722_v17 }
 0xdcd   :  { %v3701_v59 = vadd.f32 %v3699_v23, %v3685_v7  ;;  %v3850_v23 = vpop.xlane.xlu0 %3849 }
 0xdce   :  { %v3700_v60 = vadd.f32 %v3698_v41, %v3684_v21  ;;  %v3859_v18 = vmul.f32 %v3857_v33, %v3853_v37  ;;  %v3858_v22 = vmul.f32 %v3857_v33, %v3850_v23 }
 0xdcf   :  { %v3717_v0 = vadd.f32 %v3715_v52, %v3701_v59 }
 0xdd0   :  { %v3716_v19 = vadd.f32 %v3714_v30, %v3700_v60  ;;  %v3055_v30 = vadd.f32 %v5782_v27, %v2722_v17 }
 0xdd1   :  { %v3733_v50 = vadd.f32 %v3731_v8, %v3717_v0 }
 0xdd2   :  { %v3732_v39 = vadd.f32 %v3730_v51, %v3716_v19 }
 0xdd3   :  { %v3749_v49 = vadd.f32 %v3747_v44, %v3733_v50 }
 0xdd4   :  { %v3748_v46 = vadd.f32 %v3746_v48, %v3732_v39  ;;  %v4587_v48 = vld [vmem:[%s6107_s5] ss:$0 sm:$0xff] }
 0xdd5   :  { %v3765_v40 = vadd.f32 %v3763_v4, %v3749_v49  ;;  %v4588_v4 = vld [vmem:[%s6107_s5 + $0x1] ss:$0 sm:$0xff]  ;;  %s4753_s5 = smov [#allocation11]  }
 0xdd6   :  { %v3764_v3 = vadd.f32 %v3762_v1, %v3748_v46  ;;  %s3949_s0 = sshll.u32 %s4753_s5, 4  ;;  %s3950_s0 = int_to_ptr.vmem [resolvable:$true] %s3949_s0 }
 0xdd7   :  { %v3781_v28 = vadd.f32 %v3779_v62, %v3765_v40  ;;  %s4699_s22 = scalar_lea.vmem %s3950_s0, 256  ;;  %p4704_p13 = scmp.lt.s32.totalorder %s3950_s0, %s3950_s0 }
 0xdd8   :  { %v3780_v55 = vadd.f32 %v3778_v26, %v3764_v3  ;;  %p4700_p12 = scmp.ne.s32.totalorder %s3950_s0, %s4699_s22  ;;  %p4705_p0 = scmp.lt.s32.totalorder %s4699_s22, %s4699_s22 }
 0xdd9   :  { %v3797_v25 = vadd.f32 %v3795_v16, %v3781_v28 }
 0xdda   :  { %v3796_v24 = vadd.f32 %v3794_v32, %v3780_v55  ;;  %p4706_p1 = por %p4705_p0, %p4704_p13 }
 0xddb   :  { %v3813_v15 = vadd.f32 %v3811_v61, %v3797_v25 }
 0xddc   :  { %v3812_v29 = vadd.f32 %v3810_v12, %v3796_v24  ;;  %p4707_p2 = pnand %p4706_p1, %p4700_p12 }
 0xddd   :  { %v3829_v56 = vadd.f32 %v3827_v54, %v3813_v15 }
 0xdde   :  { %v3828_v7 = vadd.f32 %v3826_v2, %v3812_v29 }
 0xddf   :  { %v3845_v41 = vadd.f32 %v3843_v36, %v3829_v56 }
 0xde0   :  { %v3844_v21 = vadd.f32 %v3842_v63, %v3828_v7 }
 0xde1   :  { %v3861_v52 = vadd.f32 %v3859_v18, %v3845_v41 }
 0xde2   :  { %v3860_v59 = vadd.f32 %v3858_v22, %v3844_v21 }
 0xde3   :  { %v3863_v34 = vmul.f32 0.5, %v3861_v52 }
 0xde4   :  { %v3862_v31 = vmul.f32 0.5, %v3860_v59 }
 0xde5   :  { %v3865_v53 = vadd.f32 %v3863_v34, %v3060_v13 }
 0xde6   :  { %v3864_v60 = vadd.f32 %v3862_v31, %v3055_v30 }
 0xde7   :  { %3870 = vrot.lane.b32.xlu1 %v3865_v53, %s4749_s4 }
 0xde8   :  { %3868 = vrot.lane.b32.xlu0 %v3864_v60, %s4749_s4 }
 0xe59   :  { %v3871_v58 = vpop.permute.xlu1 %3870 }
 0xe5a   :  { %v3875_v6 = vsub.f32 %v3865_v53, %v3871_v58  ;;  %v3869_v11 = vpop.permute.xlu0 %3868 }
 0xe5b   :  { %v3874_v8 = vsub.f32 %v3864_v60, %v3869_v11 }
 0xe5c   :  { %v3877_v0 = vmul.f32 0.5, %v3875_v6 }
 0xe5d   :  { %v3876_v51 = vmul.f32 0.5, %v3874_v8 }
 0xe5e   :  { %v3879_v42 = vmul.f32 %v3877_v0, %v3877_v0 }
 0xe5f   :  { %v3878_v43 = vmul.f32 %v3876_v51, %v3876_v51 }
 0xe60   :  { %v3881_v19 = vadd.f32 1e-05, %v3879_v42 }
 0xe61   :  { %v3880_v9 = vadd.f32 1e-05, %v3878_v43 }
 0xe62   :  { %4537 = vrsqrt.f32 %v3881_v19 }
 0xe63   :  { %4539 = vrsqrt.f32 %v3880_v9 }
 0xe6c   :  { %v4538_v27 = vpop.eup %4537 }
 0xe6d   :  { %v4540_v44 = vpop.eup %4539  ;;  %v3885_v20 = vmul.f32 %v4538_v27, %v3877_v0 }
 0xe6e   :  { %v3884_v50 = vmul.f32 %v4540_v44, %v3876_v51 }
 0xe6f   :  { %v3887_v35 = vmul.f32 %v4587_v48, %v3885_v20 }
 0xe70   :  { %v3886_v39 = vmul.f32 %v4587_v48, %v3884_v50 }
 0xe71   :  { %v3889_v49 = vadd.f32 %v4588_v4, %v3887_v35 }
 0xe72   :  { %v3888_v1 = vadd.f32 %v4588_v4, %v3886_v39 }
 0xe73   :  { %v3893_v57 = vmul.f32 0.70710677, %v3889_v49  ;;  %v3891_v6 = vmul.f32 0.5, %v3889_v49 }
 0xe74   :  { %v3892_v46 = vmul.f32 0.70710677, %v3888_v1  ;;  %v3890_v8 = vmul.f32 0.5, %v3888_v1 }
 0xe75   :  { %v3899_v62 = vand.u32 2147483647, %v3893_v57  ;;  %vm3895_vm13 = vcmp.ge.f32.partialorder %v3893_v57, 0.0 }
 0xe76   :  { %v3898_v40 = vand.u32 2147483647, %v3892_v46  ;;  %vm3894_vm14 = vcmp.ge.f32.partialorder %v3892_v46, 0.0  ;;  %v3897_v30 = vsel %vm3895_vm13, 1.0, %v6151_v45 }
 0xe77   :  { %v3901_v26 = vmul.f32 0.3275911, %v3899_v62  ;;  %v3925_v5 = vsub.f32 0.0, %v3899_v62  ;;  %v3896_v53 = vsel %vm3894_vm14, 1.0, %v6151_v45 }
 0xe78   :  { %v3900_v38 = vmul.f32 0.3275911, %v3898_v40  ;;  %v3924_v16 = vsub.f32 0.0, %v3898_v40 }
 0xe79   :  { %v3903_v14 = vadd.f32 1.0, %v3901_v26  ;;  %v3927_v32 = vmul.f32 %v3925_v5, %v3899_v62 }
 0xe7a   :  { %v3902_v3 = vadd.f32 1.0, %v3900_v38  ;;  %v3926_v55 = vmul.f32 %v3924_v16, %v3898_v40 }
 0xe7b   :  { %4541 = vrcp.f32 %v3903_v14  ;;  %v3930_v47 = vmul.f32 1.442695, %v3927_v32 }
 0xe7c   :  { %4543 = vrcp.f32 %v3902_v3  ;;  %v3928_v54 = vmul.f32 1.442695, %v3926_v55 }
 0xe7d   :  { %4545 = vpow2.f32 %v3930_v47 }
 0xe7e   :  { %4547 = vpow2.f32 %v3928_v54 }
 0xe85   :  { %v4542_v28 = vpop.eup %4541 }
 0xe86   :  { %v4544_v10 = vpop.eup %4543  ;;  %v3907_v61 = vmul.f32 1.0614054, %v4542_v28 }
 0xe87   :  { %v3906_v25 = vmul.f32 1.0614054, %v4544_v10  ;;  %v4546_v22 = vpop.eup %4545 }
 0xe88   :  { %v3909_v12 = vadd.f32 -1.4531521, %v3907_v61  ;;  %v4548_v52 = vpop.eup %4547 }
 0xe89   :  { %v3908_v24 = vadd.f32 -1.4531521, %v3906_v25 }
 0xe8a   :  { %v3911_v15 = vmul.f32 %v4542_v28, %v3909_v12 }
 0xe8b   :  { %v3910_v2 = vmul.f32 %v4544_v10, %v3908_v24 }
 0xe8c   :  { %v3913_v33 = vadd.f32 1.4214138, %v3911_v15 }
 0xe8d   :  { %v3912_v37 = vadd.f32 1.4214138, %v3910_v2 }
 0xe8e   :  { %v3915_v29 = vmul.f32 %v4542_v28, %v3913_v33 }
 0xe8f   :  { %v3914_v36 = vmul.f32 %v4544_v10, %v3912_v37 }
 0xe90   :  { %v3917_v23 = vadd.f32 -0.28449672, %v3915_v29 }
 0xe91   :  { %v3916_v56 = vadd.f32 -0.28449672, %v3914_v36 }
 0xe92   :  { %v3919_v63 = vmul.f32 %v4542_v28, %v3917_v23 }
 0xe93   :  { %v3918_v7 = vmul.f32 %v4544_v10, %v3916_v56 }
 0xe94   :  { %v3921_v17 = vadd.f32 0.2548296, %v3919_v63 }
 0xe95   :  { %v3920_v18 = vadd.f32 0.2548296, %v3918_v7 }
 0xe96   :  { %v3923_v41 = vmul.f32 %v4542_v28, %v3921_v17 }
 0xe97   :  { %v3922_v21 = vmul.f32 %v4544_v10, %v3920_v18 }
 0xe98   :  { %v3933_v59 = vmul.f32 %v4546_v22, %v3923_v41 }
 0xe99   :  { %v3932_v13 = vmul.f32 %v4548_v52, %v3922_v21 }
 0xe9a   :  { %v3935_v34 = vsub.f32 1.0, %v3933_v59 }
 0xe9b   :  { %v3934_v31 = vsub.f32 1.0, %v3932_v13 }
 0xe9c   :  { %v3937_v60 = vmul.f32 %v3935_v34, %v3897_v30 }
 0xe9d   :  { %v3936_v58 = vmul.f32 %v3934_v31, %v3896_v53 }
 0xe9e   :  { %v3939_v11 = vadd.f32 1.0, %v3937_v60 }
 0xe9f   :  { %v3938_v0 = vadd.f32 1.0, %v3936_v58 }
 0xea0   :  { %v3941_v51 = vmul.f32 %v3939_v11, %v3891_v6 }
 0xea1   :  { %v3940_v42 = vmul.f32 %v3938_v0, %v3890_v8 }
 0xea2   :  { %3943 = vst.msk [vmem:[#allocation11 + $0x8] sm:$0xff] %vm1447_vm9, %v3941_v51 }
 0xea3   :  { %3942 = vst.msk [vmem:[#allocation11] sm:$0xff] %vm1447_vm9, %v3940_v42 }
 0xea4   :  { %4710 = shalt.err (!%p4707_p2)
}
 0xea5   :  { %s4711_s26 = scalar_lea.hbm %s6108_s6, 256 }
 0xea6   :  { %p4712_p3 = scmp.ne.s32.totalorder %s6108_s6, %s4711_s26  ;;  %p4715_p4 = scmp.lt.u32.totalorder %s4711_s26, %s6108_s6 }
 0xea8   :  { %p4717_p5 = pnand %p4715_p4, %p4712_p3 }
 0xeaa   :  { %4720 = shalt.err (!%p4717_p5)
}
 0xeab   :  { %3955 = dma.vmem_to_hbm [thread:$0]  %s3950_s0, 256, %s6108_s6, [#allocation4], %s4731_s9, %s4731_s9, %s4732_s10  }
 0xeac   :  { %4727 = dma.done.wait [#allocation4], 256  }
 0xead   :  { %4728 = vsyncadd [#allocation4], 4294967040 }
 0xeae   :  { %3959 = vsyncpa [#allocation3], 1 }
 0xeaf   :  { %3960 = vsyncpa [#allocation6], 1 }
 0xeb0   :  { %3961 = vsyncpa [#allocation9], 1 }
 0xeb1   :  { %3962 = vsyncpa [#allocation4], 1 }

</bundles_post_ra>
